<compile_context>
chip_gen: v5e
topology: v5e:2x2
jax: 0.10.0
libtpu: 0.0.40
codegen_flags: <defaults>
</compile_context>

<pallas_src>
import jax
import jax.numpy as jnp
from jax.experimental import pallas as pl
from jax.experimental.pallas import tpu as pltpu


# ----------------------------- "pretrained" stem kernel -----------------------------
def backbone_kernel(x_ref, w_ref, scale_ref, bias_ref, out_ref, patch_scr):
    """3x3 conv (pad=1, stride=1) + folded-BN affine + ReLU + 2x2 maxpool (stride 2).

    x_ref     : (1, H, W, Cin)        un-padded NHWC input tile (one sample per program)
    w_ref     : (9*Cin, Cpad) bf16    im2col conv weight, output channels lane-padded
    scale/bias: (1, Cpad) f32         folded batch-norm affine (padded channels -> 0)
    out_ref   : (1, H//2, W//2, Cpad) pooled feature map
    patch_scr : VMEM (1, H, W, 9*Cin) f32 im2col staging buffer
    """
    Bt, H, W, Cin = x_ref.shape
    Cp = out_ref.shape[-1]
    Hh, Wh = H // 2, W // 2

    # Build the im2col patch in VMEM. Zero first so border taps see an implicit zero-pad
    # (no jnp.pad / padded HBM copy of the input is needed).
    patch_scr[...] = jnp.zeros_like(patch_scr)
    for ky in range(3):
        for kx in range(3):
            tap = ky * 3 + kx
            h0, h1 = max(0, 1 - ky), min(H, H + 1 - ky)   # valid output rows for this tap
            w0, w1 = max(0, 1 - kx), min(W, W + 1 - kx)   # valid output cols for this tap
            patch_scr[:, h0:h1, w0:w1, tap * Cin:(tap + 1) * Cin] = (
                x_ref[:, h0 + ky - 1:h1 + ky - 1, w0 + kx - 1:w1 + kx - 1, :])

    # Single MXU matmul: (M, 9*Cin) @ (9*Cin, Cpad), bf16 operands, f32 accumulation.
    patch = patch_scr[...].reshape(Bt * H * W, 9 * Cin).astype(jnp.bfloat16)
    acc = jnp.dot(patch, w_ref[...], preferred_element_type=jnp.float32)   # (M, Cp)

    # Folded BN + ReLU on the VPU (f32).
    feat = jnp.maximum(acc * scale_ref[...] + bias_ref[...], 0.0)

    # 2x2 / stride-2 max pool entirely on the in-register value (no scratch round trip).
    t = feat.reshape(Bt * H * Wh, 2, Cp)
    wmax = jnp.max(t, axis=1)                   # pool along W
    r = wmax.reshape(Bt, Hh, 2, Wh, Cp)
    out_ref[...] = jnp.max(r, axis=2)           # pool along H -> (Bt, Hh, Wh, Cp)


def backbone_forward(x_nhwc, conv_w, bn_scale, bn_bias):
    B, H, W, Cin = x_nhwc.shape
    Cp = conv_w.shape[-1]
    Hh, Wh = H // 2, W // 2
    return pl.pallas_call(
        backbone_kernel,
        out_shape=jax.ShapeDtypeStruct((B, Hh, Wh, Cp), jnp.float32),
        grid_spec=pltpu.PrefetchScalarGridSpec(
            num_scalar_prefetch=0,
            grid=(B,),                                          # one sample per program
            in_specs=[
                pl.BlockSpec((1, H, W, Cin), lambda b: (b, 0, 0, 0)),
                pl.BlockSpec((9 * Cin, Cp), lambda b: (0, 0)),
                pl.BlockSpec((1, Cp), lambda b: (0, 0)),
                pl.BlockSpec((1, Cp), lambda b: (0, 0)),
            ],
            out_specs=pl.BlockSpec((1, Hh, Wh, Cp), lambda b: (b, 0, 0, 0)),
            scratch_shapes=[pltpu.VMEM((1, H, W, 9 * Cin), jnp.float32)],
        ),
        compiler_params=pltpu.CompilerParams(dimension_semantics=("parallel",)),
    )(x_nhwc, conv_w, bn_scale, bn_bias)


# ----------------------------- custom head (my_new_layers) -----------------------------
def head_kernel(x_ref, w1_ref, b1_ref, w2_ref, b2_ref, w3_ref, b3_ref, out_ref, acc_ref):
    """Linear(dim,512) -> Linear(512,256) -> Linear(256,1) with the first matmul K-tiled.

    Weights are stored (in, out) == torch Linear weight transposed, so y = x @ W + b.
    w3/b3/out are lane-padded to 128 columns; the real logit is column 0 (sliced outside).
    """
    k = pl.program_id(0)

    @pl.when(k == 0)
    def _init():
        acc_ref[...] = jnp.zeros_like(acc_ref)

    acc_ref[...] += jnp.dot(x_ref[...].astype(jnp.bfloat16), w1_ref[...],
                            preferred_element_type=jnp.float32)

    @pl.when(k == pl.num_programs(0) - 1)
    def _finalize():
        h1 = acc_ref[...] + b1_ref[...]                                    # (B, 512) f32
        h2 = jnp.dot(h1.astype(jnp.bfloat16), w2_ref[...],
                     preferred_element_type=jnp.float32) + b2_ref[...]     # (B, 256)
        out_ref[...] = jnp.dot(h2.astype(jnp.bfloat16), w3_ref[...],
                               preferred_element_type=jnp.float32) + b3_ref[...]


def head_forward(x_flat, w1, b1, w2, b2, w3, b3, *, tk=2048):
    B, D = x_flat.shape
    Np = w3.shape[-1]
    if D < tk or D % tk != 0:
        tk = D                                               # small-dim fallback
    nk = D // tk
    return pl.pallas_call(
        head_kernel,
        out_shape=jax.ShapeDtypeStruct((B, Np), jnp.float32),
        grid_spec=pltpu.PrefetchScalarGridSpec(
            num_scalar_prefetch=0,
            grid=(nk,),                                      # reduction axis of Linear #1
            in_specs=[
                pl.BlockSpec((B, tk), lambda k: (0, k)),
                pl.BlockSpec((tk, w1.shape[1]), lambda k: (k, 0)),
                pl.BlockSpec((1, b1.shape[1]), lambda k: (0, 0)),
                pl.BlockSpec(w2.shape, lambda k: (0, 0)),
                pl.BlockSpec((1, b2.shape[1]), lambda k: (0, 0)),
                pl.BlockSpec(w3.shape, lambda k: (0, 0)),
                pl.BlockSpec((1, b3.shape[1]), lambda k: (0, 0)),
            ],
            out_specs=pl.BlockSpec((B, Np), lambda k: (0, 0)),
            scratch_shapes=[pltpu.VMEM((B, w1.shape[1]), jnp.float32)],
        ),
        compiler_params=pltpu.CompilerParams(dimension_semantics=("arbitrary",)),
    )(x_flat, w1, b1, w2, b2, w3, b3)


# ----------------------------- full forward + parameters -----------------------------
def my_cnn_forward(x_nchw, kp):
    x = x_nchw.astype(jnp.float32)                    # x = x.float()
    x_nhwc = jnp.transpose(x, (0, 2, 3, 1))           # kernels run NHWC (channels on lanes)
    feat = backbone_forward(x_nhwc, kp["conv_w"], kp["bn_scale"], kp["bn_bias"])
    x_flat = feat.reshape(feat.shape[0], -1)          # free reshape; NCHW flatten order is
    #                                                   folded into w1's rows (prepare_params)
    out = head_forward(x_flat, kp["w1"], kp["b1"], kp["w2"], kp["b2"], kp["w3"], kp["b3"])
    return out[:, :1]                                 # drop lane padding of Linear(256,1)


def init_params(key, cin=3, cout=8, h=16, w=16):
    """Torch-equivalent (f32, NCHW-flatten-ordered) parameters."""
    h2, w2 = h // 2, w // 2
    dim = cout * h2 * w2                              # prod of backbone output (per sample)
    ks = jax.random.split(key, 7)
    return {
        "conv_w": jax.random.normal(ks[0], (3, 3, cin, cout), jnp.float32)
                  * (1.0 / (3 * 3 * cin) ** 0.5),
        "bn_scale": jnp.ones((cout,), jnp.float32),
        "bn_bias": jnp.full((cout,), 0.01, jnp.float32),
        "w1": jax.random.normal(ks[1], (dim, 512), jnp.float32) / dim ** 0.5,
        "b1": jax.random.normal(ks[2], (512,), jnp.float32) * 0.01,
        "w2": jax.random.normal(ks[3], (512, 256), jnp.float32) / 512 ** 0.5,
        "b2": jax.random.normal(ks[4], (256,), jnp.float32) * 0.01,
        "w3": jax.random.normal(ks[5], (256, 1), jnp.float32) / 256 ** 0.5,
        "b3": jax.random.normal(ks[6], (1,), jnp.float32) * 0.01,
    }


def prepare_params(p, cin=3, cout=8, h=16, w=16, cpad=128):
    """One-time fold of the torch-style parameters into kernel-ready form.

    Must be applied exactly once at parameter load time (it bakes the NCHW-flatten
    permutation and the lane padding into the weights).
    """
    h2, w2 = h // 2, w // 2

    # Conv weight -> im2col layout (9*Cin, Cpad), output channels lane-padded, bf16.
    cw = jnp.pad(p["conv_w"], ((0, 0), (0, 0), (0, 0), (0, cpad - cout)))
    conv_w = cw.reshape(9 * cin, cpad).astype(jnp.bfloat16)
    bn_scale = jnp.pad(p["bn_scale"], (0, cpad - cout), constant_values=1.0).reshape(1, cpad)
    bn_bias = jnp.pad(p["bn_bias"], (0, cpad - cout)).reshape(1, cpad)   # padded chans -> 0

    # Fold torch nn.Flatten(NCHW) ordering into w1's input axis: (c,h,w) -> (h,w,c), with
    # zero rows for the lane-padded channels. The backbone's NHWC output then flattens
    # directly (no transpose between kernels) with identical semantics.
    w1 = p["w1"].reshape(cout, h2, w2, 512).transpose(1, 2, 0, 3)        # (h2, w2, c, 512)
    w1 = jnp.pad(w1, ((0, 0), (0, 0), (0, cpad - cout), (0, 0)))
    w1 = w1.reshape(h2 * w2 * cpad, 512).astype(jnp.bfloat16)

    # Final Linear(256, 1): lane-pad the output to 128 columns (sliced back outside).
    w3 = jnp.pad(p["w3"], ((0, 0), (0, cpad - 1))).astype(jnp.bfloat16)
    b3 = jnp.pad(p["b3"], (0, cpad - 1)).reshape(1, cpad)

    return {
        "conv_w": conv_w, "bn_scale": bn_scale, "bn_bias": bn_bias,
        "w1": w1, "b1": p["b1"].reshape(1, 512),
        "w2": p["w2"].astype(jnp.bfloat16), "b2": p["b2"].reshape(1, 256),
        "w3": w3, "b3": b3,
    }


if __name__ == "__main__":
    key = jax.random.PRNGKey(0)
    k_x, k_p = jax.random.split(key)

    B, CIN, H, W = 2, 3, 16, 16                      # small NCHW input, like (3, 224, 224)
    x = jax.random.normal(k_x, (B, CIN, H, W), jnp.float32)
    params = init_params(k_p, cin=CIN, cout=8, h=H, w=W)
    kparams = prepare_params(params, cin=CIN, cout=8, h=H, w=W)

    out = my_cnn_forward(x, kparams)
    out = jax.block_until_ready(out)
    assert out.shape == (B, 1), out.shape
    print("KERNEL_OK")
</pallas_src>

<mosaic_0001>
module attributes {stable_mosaic.version = 11 : i64} {
  func.func @backbone_kernel(%arg0: i32, %arg1: memref<1x16x16x3xf32, #tpu.memory_space<vmem>>, %arg2: memref<27x128xbf16, #tpu.memory_space<vmem>>, %arg3: memref<1x128xf32, #tpu.memory_space<vmem>>, %arg4: memref<1x128xf32, #tpu.memory_space<vmem>>, %arg5: memref<1x8x8x128xf32, #tpu.memory_space<vmem>>, %arg6: memref<1x16x16x27xf32, #tpu.memory_space<vmem>>) attributes {dimension_semantics = [#tpu.dimension_semantics<parallel>], iteration_bounds = array<i64: 2>, scalar_prefetch = 0 : i64, scratch_operands = 1 : i64, tpu.core_type = #tpu.core_type<tc>, window_params = [{transform_indices = @transform_0, window_bounds = array<i64: 1, 16, 16, 3>}, {pipeline_mode = #tpu.pipeline_mode<synchronous>, transform_indices = @transform_1, window_bounds = array<i64: 27, 128>}, {pipeline_mode = #tpu.pipeline_mode<synchronous>, transform_indices = @transform_2, window_bounds = array<i64: 1, 128>}, {pipeline_mode = #tpu.pipeline_mode<synchronous>, transform_indices = @transform_3, window_bounds = array<i64: 1, 128>}, {transform_indices = @transform_4, window_bounds = array<i64: 1, 8, 8, 128>}]} {
    %cst = arith.constant 0.000000e+00 : f32
    %0 = vector.broadcast %cst : f32 to vector<1x16x16x27xf32>
    %c0 = arith.constant 0 : index
    %c0_0 = arith.constant 0 : index
    %c0_1 = arith.constant 0 : index
    %c0_2 = arith.constant 0 : index
    %1 = vector.load %arg6[%c0, %c0_0, %c0_1, %c0_2] : memref<1x16x16x27xf32, #tpu.memory_space<vmem>>, vector<1x16x16x27xf32>
    tpu.vector_store %arg6[%c0, %c0_0, %c0_1, %c0_2], %0 {strides = array<i32>} : memref<1x16x16x27xf32, #tpu.memory_space<vmem>>, vector<1x16x16x27xf32>,
    %c0_3 = arith.constant 0 : index
    %c0_4 = arith.constant 0 : index
    %c0_5 = arith.constant 0 : index
    %c0_6 = arith.constant 0 : index
    %2 = vector.load %arg1[%c0_3, %c0_4, %c0_5, %c0_6] : memref<1x16x16x3xf32, #tpu.memory_space<vmem>>, vector<1x15x15x3xf32>
    %c0_7 = arith.constant 0 : index
    %c1 = arith.constant 1 : index
    %c1_8 = arith.constant 1 : index
    %c0_9 = arith.constant 0 : index
    %3 = vector.load %arg6[%c0_7, %c1, %c1_8, %c0_9] : memref<1x16x16x27xf32, #tpu.memory_space<vmem>>, vector<1x15x15x3xf32>
    tpu.vector_store %arg6[%c0_7, %c1, %c1_8, %c0_9], %2 {strides = array<i32>} : memref<1x16x16x27xf32, #tpu.memory_space<vmem>>, vector<1x15x15x3xf32>,
    %c0_10 = arith.constant 0 : index
    %c0_11 = arith.constant 0 : index
    %c0_12 = arith.constant 0 : index
    %c0_13 = arith.constant 0 : index
    %4 = vector.load %arg1[%c0_10, %c0_11, %c0_12, %c0_13] : memref<1x16x16x3xf32, #tpu.memory_space<vmem>>, vector<1x15x16x3xf32>
    %c0_14 = arith.constant 0 : index
    %c1_15 = arith.constant 1 : index
    %c0_16 = arith.constant 0 : index
    %c3 = arith.constant 3 : index
    %5 = vector.load %arg6[%c0_14, %c1_15, %c0_16, %c3] : memref<1x16x16x27xf32, #tpu.memory_space<vmem>>, vector<1x15x16x3xf32>
    tpu.vector_store %arg6[%c0_14, %c1_15, %c0_16, %c3], %4 {strides = array<i32>} : memref<1x16x16x27xf32, #tpu.memory_space<vmem>>, vector<1x15x16x3xf32>,
    %c0_17 = arith.constant 0 : index
    %c0_18 = arith.constant 0 : index
    %c1_19 = arith.constant 1 : index
    %c0_20 = arith.constant 0 : index
    %6 = vector.load %arg1[%c0_17, %c0_18, %c1_19, %c0_20] : memref<1x16x16x3xf32, #tpu.memory_space<vmem>>, vector<1x15x15x3xf32>
    %c0_21 = arith.constant 0 : index
    %c1_22 = arith.constant 1 : index
    %c0_23 = arith.constant 0 : index
    %c6 = arith.constant 6 : index
    %7 = vector.load %arg6[%c0_21, %c1_22, %c0_23, %c6] : memref<1x16x16x27xf32, #tpu.memory_space<vmem>>, vector<1x15x15x3xf32>
    tpu.vector_store %arg6[%c0_21, %c1_22, %c0_23, %c6], %6 {strides = array<i32>} : memref<1x16x16x27xf32, #tpu.memory_space<vmem>>, vector<1x15x15x3xf32>,
    %c0_24 = arith.constant 0 : index
    %c0_25 = arith.constant 0 : index
    %c0_26 = arith.constant 0 : index
    %c0_27 = arith.constant 0 : index
    %8 = vector.load %arg1[%c0_24, %c0_25, %c0_26, %c0_27] : memref<1x16x16x3xf32, #tpu.memory_space<vmem>>, vector<1x16x15x3xf32>
    %c0_28 = arith.constant 0 : index
    %c0_29 = arith.constant 0 : index
    %c1_30 = arith.constant 1 : index
    %c9 = arith.constant 9 : index
    %9 = vector.load %arg6[%c0_28, %c0_29, %c1_30, %c9] : memref<1x16x16x27xf32, #tpu.memory_space<vmem>>, vector<1x16x15x3xf32>
    tpu.vector_store %arg6[%c0_28, %c0_29, %c1_30, %c9], %8 {strides = array<i32>} : memref<1x16x16x27xf32, #tpu.memory_space<vmem>>, vector<1x16x15x3xf32>,
    %c0_31 = arith.constant 0 : index
    %c0_32 = arith.constant 0 : index
    %c0_33 = arith.constant 0 : index
    %c0_34 = arith.constant 0 : index
    %10 = vector.load %arg1[%c0_31, %c0_32, %c0_33, %c0_34] : memref<1x16x16x3xf32, #tpu.memory_space<vmem>>, vector<1x16x16x3xf32>
    %c0_35 = arith.constant 0 : index
    %c0_36 = arith.constant 0 : index
    %c0_37 = arith.constant 0 : index
    %c12 = arith.constant 12 : index
    %11 = vector.load %arg6[%c0_35, %c0_36, %c0_37, %c12] : memref<1x16x16x27xf32, #tpu.memory_space<vmem>>, vector<1x16x16x3xf32>
    tpu.vector_store %arg6[%c0_35, %c0_36, %c0_37, %c12], %10 {strides = array<i32>} : memref<1x16x16x27xf32, #tpu.memory_space<vmem>>, vector<1x16x16x3xf32>,
    %c0_38 = arith.constant 0 : index
    %c0_39 = arith.constant 0 : index
    %c1_40 = arith.constant 1 : index
    %c0_41 = arith.constant 0 : index
    %12 = vector.load %arg1[%c0_38, %c0_39, %c1_40, %c0_41] : memref<1x16x16x3xf32, #tpu.memory_space<vmem>>, vector<1x16x15x3xf32>
    %c0_42 = arith.constant 0 : index
    %c0_43 = arith.constant 0 : index
    %c0_44 = arith.constant 0 : index
    %c15 = arith.constant 15 : index
    %13 = vector.load %arg6[%c0_42, %c0_43, %c0_44, %c15] : memref<1x16x16x27xf32, #tpu.memory_space<vmem>>, vector<1x16x15x3xf32>
    tpu.vector_store %arg6[%c0_42, %c0_43, %c0_44, %c15], %12 {strides = array<i32>} : memref<1x16x16x27xf32, #tpu.memory_space<vmem>>, vector<1x16x15x3xf32>,
    %c0_45 = arith.constant 0 : index
    %c1_46 = arith.constant 1 : index
    %c0_47 = arith.constant 0 : index
    %c0_48 = arith.constant 0 : index
    %14 = vector.load %arg1[%c0_45, %c1_46, %c0_47, %c0_48] : memref<1x16x16x3xf32, #tpu.memory_space<vmem>>, vector<1x15x15x3xf32>
    %c0_49 = arith.constant 0 : index
    %c0_50 = arith.constant 0 : index
    %c1_51 = arith.constant 1 : index
    %c18 = arith.constant 18 : index
    %15 = vector.load %arg6[%c0_49, %c0_50, %c1_51, %c18] : memref<1x16x16x27xf32, #tpu.memory_space<vmem>>, vector<1x15x15x3xf32>
    tpu.vector_store %arg6[%c0_49, %c0_50, %c1_51, %c18], %14 {strides = array<i32>} : memref<1x16x16x27xf32, #tpu.memory_space<vmem>>, vector<1x15x15x3xf32>,
    %c0_52 = arith.constant 0 : index
    %c1_53 = arith.constant 1 : index
    %c0_54 = arith.constant 0 : index
    %c0_55 = arith.constant 0 : index
    %16 = vector.load %arg1[%c0_52, %c1_53, %c0_54, %c0_55] : memref<1x16x16x3xf32, #tpu.memory_space<vmem>>, vector<1x15x16x3xf32>
    %c0_56 = arith.constant 0 : index
    %c0_57 = arith.constant 0 : index
    %c0_58 = arith.constant 0 : index
    %c21 = arith.constant 21 : index
    %17 = vector.load %arg6[%c0_56, %c0_57, %c0_58, %c21] : memref<1x16x16x27xf32, #tpu.memory_space<vmem>>, vector<1x15x16x3xf32>
    tpu.vector_store %arg6[%c0_56, %c0_57, %c0_58, %c21], %16 {strides = array<i32>} : memref<1x16x16x27xf32, #tpu.memory_space<vmem>>, vector<1x15x16x3xf32>,
    %c0_59 = arith.constant 0 : index
    %c1_60 = arith.constant 1 : index
    %c1_61 = arith.constant 1 : index
    %c0_62 = arith.constant 0 : index
    %18 = vector.load %arg1[%c0_59, %c1_60, %c1_61, %c0_62] : memref<1x16x16x3xf32, #tpu.memory_space<vmem>>, vector<1x15x15x3xf32>
    %c0_63 = arith.constant 0 : index
    %c0_64 = arith.constant 0 : index
    %c0_65 = arith.constant 0 : index
    %c24 = arith.constant 24 : index
    %19 = vector.load %arg6[%c0_63, %c0_64, %c0_65, %c24] : memref<1x16x16x27xf32, #tpu.memory_space<vmem>>, vector<1x15x15x3xf32>
    tpu.vector_store %arg6[%c0_63, %c0_64, %c0_65, %c24], %18 {strides = array<i32>} : memref<1x16x16x27xf32, #tpu.memory_space<vmem>>, vector<1x15x15x3xf32>,
    %c0_66 = arith.constant 0 : index
    %c0_67 = arith.constant 0 : index
    %c0_68 = arith.constant 0 : index
    %c0_69 = arith.constant 0 : index
    %20 = vector.load %arg6[%c0_66, %c0_67, %c0_68, %c0_69] : memref<1x16x16x27xf32, #tpu.memory_space<vmem>>, vector<1x16x16x27xf32>
    %21 = vector.shape_cast %20 : vector<1x16x16x27xf32> to vector<256x27xf32>
    %22 = arith.truncf %21 : vector<256x27xf32> to vector<256x27xbf16>
    %c0_70 = arith.constant 0 : index
    %c0_71 = arith.constant 0 : index
    %23 = vector.load %arg2[%c0_70, %c0_71] : memref<27x128xbf16, #tpu.memory_space<vmem>>, vector<27x128xbf16>
    %cst_72 = arith.constant dense<0.000000e+00> : vector<256x128xf32>
    %24 = tpu.matmul %22, %23, %cst_72 {dimension_numbers = #tpu.dot_dimension_numbers<[1], [0], [0], [1], [0, 0, 1, 1], [], []>} : vector<256x27xbf16>, vector<27x128xbf16>, vector<256x128xf32> -> vector<256x128xf32>
    %c0_73 = arith.constant 0 : index
    %c0_74 = arith.constant 0 : index
    %25 = vector.load %arg3[%c0_73, %c0_74] : memref<1x128xf32, #tpu.memory_space<vmem>>, vector<1x128xf32>
    %26 = vector.broadcast %25 : vector<1x128xf32> to vector<256x128xf32>
    %27 = arith.mulf %24, %26 : vector<256x128xf32>
    %c0_75 = arith.constant 0 : index
    %c0_76 = arith.constant 0 : index
    %28 = vector.load %arg4[%c0_75, %c0_76] : memref<1x128xf32, #tpu.memory_space<vmem>>, vector<1x128xf32>
    %29 = vector.broadcast %28 : vector<1x128xf32> to vector<256x128xf32>
    %30 = arith.addf %27, %29 : vector<256x128xf32>
    %cst_77 = arith.constant 0.000000e+00 : f32
    %31 = vector.broadcast %cst_77 : f32 to vector<256x128xf32>
    %32 = arith.maximumf %30, %31 : vector<256x128xf32>
    %33 = vector.shape_cast %32 : vector<256x128xf32> to vector<128x2x128xf32>
    %cst_78 = arith.constant dense<0xFF800000> : vector<128x128xf32>
    %34 = vector.multi_reduction <maximumf>, %33, %cst_78 [1] : vector<128x2x128xf32> to vector<128x128xf32>
    %35 = vector.shape_cast %34 : vector<128x128xf32> to vector<1x8x2x8x128xf32>
    %cst_79 = arith.constant dense<0xFF800000> : vector<1x8x8x128xf32>
    %36 = vector.multi_reduction <maximumf>, %35, %cst_79 [2] : vector<1x8x2x8x128xf32> to vector<1x8x8x128xf32>
    %c0_80 = arith.constant 0 : index
    %c0_81 = arith.constant 0 : index
    %c0_82 = arith.constant 0 : index
    %c0_83 = arith.constant 0 : index
    %37 = vector.load %arg5[%c0_80, %c0_81, %c0_82, %c0_83] : memref<1x8x8x128xf32, #tpu.memory_space<vmem>>, vector<1x8x8x128xf32>
    tpu.vector_store %arg5[%c0_80, %c0_81, %c0_82, %c0_83], %36 {strides = array<i32>} : memref<1x8x8x128xf32, #tpu.memory_space<vmem>>, vector<1x8x8x128xf32>,
    return
  }
  func.func @transform_0(%arg0: i32) -> (i32, i32, i32, i32) {
    %c0_i32 = arith.constant 0 : i32
    %c0_i32_0 = arith.constant 0 : i32
    %c0_i32_1 = arith.constant 0 : i32
    %c0_i32_2 = arith.constant 0 : i32
    return %arg0, %c0_i32, %c0_i32_0, %c0_i32_1 : i32, i32, i32, i32
  }
  func.func @transform_1(%arg0: i32) -> (i32, i32) {
    %c0_i32 = arith.constant 0 : i32
    %c0_i32_0 = arith.constant 0 : i32
    %c0_i32_1 = arith.constant 0 : i32
    return %c0_i32, %c0_i32_0 : i32, i32
  }
  func.func @transform_2(%arg0: i32) -> (i32, i32) {
    %c0_i32 = arith.constant 0 : i32
    %c0_i32_0 = arith.constant 0 : i32
    %c0_i32_1 = arith.constant 0 : i32
    return %c0_i32, %c0_i32_0 : i32, i32
  }
  func.func @transform_3(%arg0: i32) -> (i32, i32) {
    %c0_i32 = arith.constant 0 : i32
    %c0_i32_0 = arith.constant 0 : i32
    %c0_i32_1 = arith.constant 0 : i32
    return %c0_i32, %c0_i32_0 : i32, i32
  }
  func.func @transform_4(%arg0: i32) -> (i32, i32, i32, i32) {
    %c0_i32 = arith.constant 0 : i32
    %c0_i32_0 = arith.constant 0 : i32
    %c0_i32_1 = arith.constant 0 : i32
    %c0_i32_2 = arith.constant 0 : i32
    return %arg0, %c0_i32, %c0_i32_0, %c0_i32_1 : i32, i32, i32, i32
  }
}

</mosaic_0001>

<bundles_post_ra>
// kernel: tpu_custom_call.1
= control target key start
LH: loop header
LB: loop body
LE: loop exit
PB: predicated region body
PF: predicated region fallthrough
CT: control target
= control target key end

     0   :  { %9 = vsyncpa [#allocation4], 0  ;;  %s5500_s0 = inlined_call_operand.vmem [shape: f32[2,16,16,3], index: 0, kind: input, shape index: {}]   ;;  %s5501_s1 = inlined_call_operand.vmem [shape: bf16[27,128], index: 1, kind: input, shape index: {}]   ;;  %s5502_s2 = inlined_call_operand.vmem [shape: f32[1,128], index: 2, kind: input, shape index: {}]   ;;  %s5503_s3 = inlined_call_operand.vmem [shape: f32[1,128], index: 3, kind: input, shape index: {}]   ;;  %s5504_s4 = inlined_call_operand.hbm [shape: f32[2,8,8,128], index: 4, kind: output, shape index: {}]  }
   0x1   :  { %11 = vsyncpa [#allocation4 + $0x1], 0  ;;  %s3794_s15 = smov 0   ;;  %s3796_s16 = smov 0  }
   0x2   :  { %s3798_s17 = smov 0   ;;  %s3800_s18 = smov 0  }
   0x3 LB: > { %s3815_s19 = sadd.s32 4294967295, %s3755_s18   ;;  %s3500_s20 = sadd.s32 4294967294, %s3755_s18   ;;  %s3755_s18 = sphi %s3800_s18, %s5515_s18   ;;  %s3751_s17 = sphi %s3798_s17, %s5514_s17   ;;  %s3747_s16 = sphi %s3796_s16, %s5513_s16   ;;  %s3743_s15 = sphi %s3794_s15, %s5512_s15  }
   0x4   : > { %s3819_s21 = sadd.s32 1, %s3755_s18   ;;  %s113_s22 = sadd.s32 1, %s3751_s17 }
   0x5   : > { %s110_s23 = ssub.s32 %s3755_s18, %s3819_s21  ;;  %p123_p0 = scmp.ne.s32.totalorder %s3751_s17, %s3747_s16 }
   0x6   : > { %p111_p1 = scmp.eq.s32.totalorder %s110_s23, 0  ;;  %p124_p2 = scmp.eq.s32.totalorder %s3815_s19, 1 }
   0x7   : > { %p129_p3 = scmp.ne.s32.totalorder %s3747_s16, %s3743_s15  ;;  %p130_p4 = scmp.eq.s32.totalorder %s3500_s20, 1 }
   0x8   : > { %s3830_s24 = scalar_select %p111_p1, %s3751_s17, %s113_s22  }
   0x9   : > { %p3832_p5 = por %p124_p2, %p123_p0  ;;  %p3836_p6 = por %p130_p4, %p129_p3 }
   0xa   : > { %p3503_p7 = scmp.ge.s32.totalorder %s3755_s18, 1  ;;  %p165_p8 = scmp.lt.s32.totalorder %s3755_s18, 3 }
   0xc   : > { %p166_p9 = pnand %p3503_p7, %p165_p8 }
   0xe   : > { %169 = sbr.rel (%p166_p9) target bundleno = 1043 (0x413), region = 36 }
  0x13   : > { %p191_p10 = scmp.lt.s32.totalorder %s3815_s19, 1  ;;  %s3757_s6 = smov 3   ;;  %vm197_vm0 = vcmask 220160   ;;  %vm261_vm1 = vcmask 23552   ;;  %v3758_v24 = vmov 0.0   ;;  %vm443_vm2 = vcmask 48152  }
  0x14   : > { %204 = vst.msk [vmem:[#allocation2 + $0x30] sm:$0xff] %vm197_vm0, %v3758_v24  ;;  %s3759_s7 = smov 6   ;;  %vm263_vm3 = vcmask 22528   ;;  %s3760_s8 = smov 9   ;;  %vm624_vm4 = vcmask 72752   ;;  %vm626_vm5 = vcmask 71728  }
  0x15   : > { %s192_s27 = scalar_select %p191_p10, %s3815_s19, 1  ;;  %205 = vst.msk [vmem:[#allocation2 + $0x38] sm:$0xff] %vm197_vm0, %v3758_v24  ;;  %vm816_vm6 = vcmask 97352   ;;  %vm818_vm7 = vcmask 96328   ;;  %vm1010_vm8 = vcmask 121952   ;;  %vm1205_vm9 = vcmask 145528  }
  0x16   : > { %198 = vst.msk [vmem:[#allocation2] sm:$0xff] %vm197_vm0, %v3758_v24  ;;  %s3761_s9 = smov 12   ;;  %s3762_s10 = smov 15   ;;  %vm1203_vm10 = vcmask 146552   ;;  %vm1388_vm11 = vcmask 171152   ;;  %vm1390_vm12 = vcmask 170128  }
  0x17   : > { %s3626_s28 = sshll.u32 %s192_s27, 8  ;;  %199 = vst.msk [vmem:[#allocation2 + $0x8] sm:$0xff] %vm197_vm0, %v3758_v24  ;;  %s3763_s11 = smov 18   ;;  %vm1894_vm13 = vcmask 1044480   ;;  %vm1895_vm14 = vcmask 1045504   ;;  %vm1570_vm15 = vcmask 195752  }
  0x18   : > { %s3847_s5 = scalar_lea.vmem %s5500_s0, %s3626_s28  ;;  %200 = vst.msk [vmem:[#allocation2 + $0x10] sm:$0xff] %vm197_vm0, %v3758_v24  ;;  %s3764_s12 = smov 21  }
  0x19   : > { %v3850_v0 = vld [vmem:[%s3847_s5 + $0x20] sm:$0xff]  ;;  %v3853_v1 = vld [vmem:[%s3847_s5 + $0x10] sm:$0xff]  ;;  %v3865_v3 = vld [vmem:[%s3847_s5 + $0x28] sm:$0xff]  ;;  %201 = vst.msk [vmem:[#allocation2 + $0x18] sm:$0xff] %vm197_vm0, %v3758_v24  ;;  %s3765_s13 = smov 24   ;;  %s3629_s27 = sshll.u32 %s3815_s19, 6 }
  0x1a   : > { %v3856_v2 = vld [vmem:[%s3847_s5] sm:$0xff]  ;;  %361 = vrot.lane.b32.xlu2 %v3850_v0, %s3757_s6  ;;  %357 = vrot.lane.b32.xlu1 %v3853_v1, %s3757_s6  ;;  %v3868_v4 = vld [vmem:[%s3847_s5 + $0x18] sm:$0xff]  ;;  %267 = vst.msk [vmem:[#allocation2 + $0x31] sm:$0xff] %vm261_vm1, %v3850_v0  ;;  %s3434_s29 = scalar_lea.hbm %s5504_s4, %s3629_s27 }
  0x1b   : > { %353 = vrot.lane.b32.xlu0 %v3856_v2, %s3757_s6  ;;  %v3871_v5 = vld [vmem:[%s3847_s5 + $0x8] sm:$0xff]  ;;  %v3880_v6 = vld [vmem:[%s3847_s5 + $0x40] sm:$0xff]  ;;  %v3883_v7 = vld [vmem:[%s3847_s5 + $0x38] sm:$0xff]  ;;  %202 = vst.msk [vmem:[#allocation2 + $0x20] sm:$0xff] %vm197_vm0, %v3758_v24 }
  0x1c   : > { %v3886_v8 = vld [vmem:[%s3847_s5 + $0x30] sm:$0xff]  ;;  %v3895_v9 = vld [vmem:[%s3847_s5 + $0x58] sm:$0xff]  ;;  %v3901_v11 = vld [vmem:[%s3847_s5 + $0x48] sm:$0xff]  ;;  %203 = vst.msk [vmem:[#allocation2 + $0x28] sm:$0xff] %vm197_vm0, %v3758_v24 }
  0x1d   : > { %v3898_v10 = vld [vmem:[%s3847_s5 + $0x50] sm:$0xff]  ;;  %v3913_v13 = vld [vmem:[%s3847_s5 + $0x68] sm:$0xff]  ;;  %v3916_v14 = vld [vmem:[%s3847_s5 + $0x60] sm:$0xff]  ;;  %206 = vst.msk [vmem:[#allocation2 + $0x40] sm:$0xff] %vm197_vm0, %v3758_v24 }
  0x1e   : > { %v3910_v12 = vld [vmem:[%s3847_s5 + $0x70] sm:$0xff]  ;;  %v3925_v15 = vld [vmem:[%s3847_s5 + $0x88] sm:$0xff]  ;;  %v3928_v16 = vld [vmem:[%s3847_s5 + $0x80] sm:$0xff]  ;;  %207 = vst.msk [vmem:[#allocation2 + $0x48] sm:$0xff] %vm197_vm0, %v3758_v24 }
  0x1f   : > { %v3931_v17 = vld [vmem:[%s3847_s5 + $0x78] sm:$0xff]  ;;  %v3940_v18 = vld [vmem:[%s3847_s5 + $0xa0] sm:$0xff]  ;;  %v3946_v20 = vld [vmem:[%s3847_s5 + $0x90] sm:$0xff]  ;;  %208 = vst.msk [vmem:[#allocation2 + $0x50] sm:$0xff] %vm197_vm0, %v3758_v24 }
  0x20   : > { %v3943_v19 = vld [vmem:[%s3847_s5 + $0x98] sm:$0xff]  ;;  %v3958_v22 = vld [vmem:[%s3847_s5 + $0xb0] sm:$0xff]  ;;  %v3961_v23 = vld [vmem:[%s3847_s5 + $0xa8] sm:$0xff]  ;;  %209 = vst.msk [vmem:[#allocation2 + $0x58] sm:$0xff] %vm197_vm0, %v3758_v24 }
  0x21   : > { %v3955_v21 = vld [vmem:[%s3847_s5 + $0xb8] sm:$0xff]  ;;  %v3974_v25 = vld [vmem:[%s3847_s5 + $0xd0] sm:$0xff]  ;;  %v3977_v26 = vld [vmem:[%s3847_s5 + $0xc8] sm:$0xff]  ;;  %210 = vst.msk [vmem:[#allocation2 + $0x60] sm:$0xff] %vm197_vm0, %v3758_v24 }
  0x22   : > { %363 = vrot.lane.b32.xlu2 %v3865_v3, %s3757_s6  ;;  %359 = vrot.lane.b32.xlu1 %v3868_v4, %s3757_s6  ;;  %v3981_v27 = vld [vmem:[%s3847_s5 + $0xc0] sm:$0xff]  ;;  %v3997_v28 = vld [vmem:[%s3847_s5 + $0xe8] sm:$0xff]  ;;  %211 = vst.msk [vmem:[#allocation2 + $0x68] sm:$0xff] %vm197_vm0, %v3758_v24 }
  0x23   : > { %355 = vrot.lane.b32.xlu0 %v3871_v5, %s3757_s6  ;;  %v4000_v29 = vld [vmem:[%s3847_s5 + $0xe0] sm:$0xff]  ;;  %v4004_v30 = vld [vmem:[%s3847_s5 + $0xd8] sm:$0xff]  ;;  %212 = vst.msk [vmem:[#allocation2 + $0x70] sm:$0xff] %vm197_vm0, %v3758_v24  ;;  %v475_v32 = vld [vmem:[%s3847_s5 + $0x9] sm:$0x7f] }
  0x24   : > { %213 = vst.msk [vmem:[#allocation2 + $0x78] sm:$0xff] %vm197_vm0, %v3758_v24  ;;  %v4020_v31 = vld [vmem:[%s3847_s5 + $0x11] sm:$0xff]  ;;  %v4025_v33 = vld [vmem:[%s3847_s5 + $0x1] sm:$0xff]  ;;  %v479_v34 = vld [vmem:[%s3847_s5 + $0x29] sm:$0x7f] }
  0x25   : > { %214 = vst.msk [vmem:[#allocation2 + $0x80] sm:$0xff] %vm197_vm0, %v3758_v24  ;;  %v4041_v35 = vld [vmem:[%s3847_s5 + $0x21] sm:$0xff]  ;;  %v477_v36 = vld [vmem:[%s3847_s5 + $0x19] sm:$0x7f]  ;;  %v4065_v42 = vld [vmem:[%s3847_s5 + $0x31] sm:$0xff] }
  0x26   : > { %215 = vst.msk [vmem:[#allocation2 + $0x88] sm:$0xff] %vm197_vm0, %v3758_v24  ;;  %v235_v37 = vld [vmem:[%s3847_s5 + $0x28] sm:$0x7f]  ;;  %v241_v39 = vld [vmem:[%s3847_s5 + $0x58] sm:$0x7f] }
  0x27   : > { %216 = vst.msk [vmem:[#allocation2 + $0x90] sm:$0xff] %vm197_vm0, %v3758_v24  ;;  %v4059_v40 = vld [vmem:[%s3847_s5 + $0x41] sm:$0xff]  ;;  %v481_v41 = vld [vmem:[%s3847_s5 + $0x39] sm:$0x7f]  ;;  %v4088_v48 = vld [vmem:[%s3847_s5 + $0x51] sm:$0xff] }
  0x28   : > { %217 = vst.msk [vmem:[#allocation2 + $0x98] sm:$0xff] %vm197_vm0, %v3758_v24  ;;  %v233_v43 = vld [vmem:[%s3847_s5 + $0x18] sm:$0x7f]  ;;  %v231_v45 = vld [vmem:[%s3847_s5 + $0x8] sm:$0x7f] }
  0x29   : > { %218 = vst.msk [vmem:[#allocation2 + $0xa0] sm:$0xff] %vm197_vm0, %v3758_v24  ;;  %v247_v46 = vld [vmem:[%s3847_s5 + $0x88] sm:$0x7f]  ;;  %v485_v47 = vld [vmem:[%s3847_s5 + $0x59] sm:$0x7f]  ;;  %v4109_v53 = vld [vmem:[%s3847_s5 + $0x71] sm:$0xff] }
  0x2a   : > { %369 = vrot.lane.b32.xlu2 %v3880_v6, %s3757_s6  ;;  %367 = vrot.lane.b32.xlu1 %v3883_v7, %s3757_s6  ;;  %219 = vst.msk [vmem:[#allocation2 + $0xa8] sm:$0xff] %vm197_vm0, %v3758_v24  ;;  %v483_v49 = vld [vmem:[%s3847_s5 + $0x49] sm:$0x7f]  ;;  %v237_v50 = vld [vmem:[%s3847_s5 + $0x38] sm:$0x7f] }
  0x2b   : > { %365 = vrot.lane.b32.xlu0 %v3886_v8, %s3757_s6  ;;  %220 = vst.msk [vmem:[#allocation2 + $0xb0] sm:$0xff] %vm197_vm0, %v3758_v24  ;;  %v239_v52 = vld [vmem:[%s3847_s5 + $0x48] sm:$0x7f]  ;;  %v253_v59 = vld [vmem:[%s3847_s5 + $0xb8] sm:$0x7f] }
  0x2c   : > { %221 = vst.msk [vmem:[#allocation2 + $0xb8] sm:$0xff] %vm197_vm0, %v3758_v24  ;;  %v487_v54 = vld [vmem:[%s3847_s5 + $0x69] sm:$0x7f]  ;;  %v4115_v55 = vld [vmem:[%s3847_s5 + $0x61] sm:$0xff]  ;;  %v489_v63 = vld [vmem:[%s3847_s5 + $0x79] sm:$0x7f] }
  0x2d   : > { %222 = vst.msk [vmem:[#allocation2 + $0xc0] sm:$0xff] %vm197_vm0, %v3758_v24  ;;  %v243_v60 = vld [vmem:[%s3847_s5 + $0x68] sm:$0x7f] }
  0x2e   : > { %223 = vst.msk [vmem:[#allocation2 + $0xc8] sm:$0xff] %vm197_vm0, %v3758_v24  ;;  %v491_v61 = vld [vmem:[%s3847_s5 + $0x89] sm:$0x7f]  ;;  %v4139_v62 = vld [vmem:[%s3847_s5 + $0x81] sm:$0xff] }
  0x2f   : > { %224 = vst.msk [vmem:[#allocation2 + $0xd0] sm:$0xff] %vm197_vm0, %v3758_v24 }
  0x30   : > { %225 = vst.msk [vmem:[#allocation2 + $0xd8] sm:$0xff] %vm197_vm0, %v3758_v24 }
  0x31   : > { %226 = vst.msk [vmem:[#allocation2 + $0xe0] sm:$0xff] %vm197_vm0, %v3758_v24 }
  0x32   : > { %375 = vrot.lane.b32.xlu2 %v3895_v9, %s3757_s6  ;;  %373 = vrot.lane.b32.xlu1 %v3898_v10, %s3757_s6  ;;  %227 = vst.msk [vmem:[#allocation2 + $0xe8] sm:$0xff] %vm197_vm0, %v3758_v24 }
  0x33   : > { %371 = vrot.lane.b32.xlu0 %v3901_v11, %s3757_s6  ;;  %228 = vst.msk [vmem:[#allocation2 + $0xf0] sm:$0xff] %vm197_vm0, %v3758_v24 }
  0x34   : > { %229 = vst.msk [vmem:[#allocation2 + $0xf8] sm:$0xff] %vm197_vm0, %v3758_v24 }
  0x35   : > { %268 = vst.msk [vmem:[#allocation2 + $0x39] sm:$0x7f] %vm263_vm3, %v235_v37  ;;  %v4153_v37 = vld [vmem:[%s3847_s5 + $0xa1] sm:$0xff] }
  0x36   : > { %271 = vst.msk [vmem:[#allocation2 + $0x51] sm:$0xff] %vm261_vm1, %v3880_v6 }
  0x37   : > { %273 = vst.msk [vmem:[#allocation2 + $0x61] sm:$0xff] %vm261_vm1, %v3898_v10 }
  0x38   : > { %274 = vst.msk [vmem:[#allocation2 + $0x69] sm:$0x7f] %vm263_vm3, %v241_v39  ;;  %v4157_v39 = vld [vmem:[%s3847_s5 + $0x91] sm:$0xff] }
  0x39   : > { %265 = vst.msk [vmem:[#allocation2 + $0x21] sm:$0xff] %vm261_vm1, %v3853_v1 }
  0x3a   : > { %381 = vrot.lane.b32.xlu2 %v3910_v12, %s3757_s6  ;;  %379 = vrot.lane.b32.xlu1 %v3913_v13, %s3757_s6  ;;  %262 = vst.msk [vmem:[#allocation2 + $0x11] sm:$0xff] %vm261_vm1, %v3856_v2 }
  0x3b   : > { %377 = vrot.lane.b32.xlu0 %v3916_v14, %s3757_s6  ;;  %277 = vst.msk [vmem:[#allocation2 + $0x81] sm:$0xff] %vm261_vm1, %v3910_v12 }
  0x3c   : > { %266 = vst.msk [vmem:[#allocation2 + $0x29] sm:$0x7f] %vm263_vm3, %v233_v43 }
  0x3d   : > { %264 = vst.msk [vmem:[#allocation2 + $0x19] sm:$0x7f] %vm263_vm3, %v231_v45  ;;  %v259_v45 = vld [vmem:[%s3847_s5 + $0xe8] sm:$0x7f] }
  0x3e   : > { %279 = vst.msk [vmem:[#allocation2 + $0x91] sm:$0xff] %vm261_vm1, %v3928_v16 }
  0x3f   : > { %280 = vst.msk [vmem:[#allocation2 + $0x99] sm:$0x7f] %vm263_vm3, %v247_v46  ;;  %v249_v46 = vld [vmem:[%s3847_s5 + $0x98] sm:$0x7f] }
  0x40   : > { %269 = vst.msk [vmem:[#allocation2 + $0x41] sm:$0xff] %vm261_vm1, %v3886_v8 }
  0x41   : > { %270 = vst.msk [vmem:[#allocation2 + $0x49] sm:$0x7f] %vm263_vm3, %v237_v50  ;;  %v495_v50 = vld [vmem:[%s3847_s5 + $0xa9] sm:$0x7f] }
  0x42   : > { %387 = vrot.lane.b32.xlu2 %v3925_v15, %s3757_s6  ;;  %385 = vrot.lane.b32.xlu1 %v3928_v16, %s3757_s6  ;;  %283 = vst.msk [vmem:[#allocation2 + $0xb1] sm:$0xff] %vm261_vm1, %v3940_v18 }
  0x43   : > { %383 = vrot.lane.b32.xlu0 %v3931_v17, %s3757_s6  ;;  %272 = vst.msk [vmem:[#allocation2 + $0x59] sm:$0x7f] %vm263_vm3, %v239_v52 }
  0x44   : > { %285 = vst.msk [vmem:[#allocation2 + $0xc1] sm:$0xff] %vm261_vm1, %v3958_v22 }
  0x45   : > { %275 = vst.msk [vmem:[#allocation2 + $0x71] sm:$0xff] %vm261_vm1, %v3916_v14 }
  0x46   : > { %289 = vst.msk [vmem:[#allocation2 + $0xe1] sm:$0xff] %vm261_vm1, %v3974_v25 }
  0x47   : > { %291 = vst.msk [vmem:[#allocation2 + $0xf1] sm:$0xff] %vm261_vm1, %v4000_v29 }
  0x48   : > { %281 = vst.msk [vmem:[#allocation2 + $0xa1] sm:$0xff] %vm261_vm1, %v3946_v20 }
  0x49   : > { %287 = vst.msk [vmem:[#allocation2 + $0xd1] sm:$0xff] %vm261_vm1, %v3981_v27  ;;  %vm1753_vm1 = vcmask 219328  }
  0x4a   : > { %393 = vrot.lane.b32.xlu2 %v3940_v18, %s3757_s6  ;;  %391 = vrot.lane.b32.xlu1 %v3943_v19, %s3757_s6  ;;  %286 = vst.msk [vmem:[#allocation2 + $0xc9] sm:$0x7f] %vm263_vm3, %v253_v59  ;;  %v4190_v59 = vld [vmem:[%s3847_s5 + $0xc1] sm:$0xff] }
  0x4b   : > { %389 = vrot.lane.b32.xlu0 %v3946_v20, %s3757_s6  ;;  %276 = vst.msk [vmem:[#allocation2 + $0x79] sm:$0x7f] %vm263_vm3, %v243_v60 }
  0x4c   : > { %292 = vst.msk [vmem:[#allocation2 + $0xf9] sm:$0x7f] %vm263_vm3, %v259_v45  ;;  %v657_v45 = vld [vmem:[%s3847_s5 + $0x8] sm:$0x7f] }
  0x4d   : > { %282 = vst.msk [vmem:[#allocation2 + $0xa9] sm:$0x7f] %vm263_vm3, %v249_v46 }
  0x52   : > { %399 = vrot.lane.b32.xlu2 %v3955_v21, %s3757_s6  ;;  %397 = vrot.lane.b32.xlu1 %v3958_v22, %s3757_s6 }
  0x53   : > { %395 = vrot.lane.b32.xlu0 %v3961_v23, %s3757_s6 }
  0x5a   : > { %405 = vrot.lane.b32.xlu2 %v3974_v25, %s3757_s6  ;;  %403 = vrot.lane.b32.xlu1 %v3977_v26, %s3757_s6 }
  0x5b   : > { %401 = vrot.lane.b32.xlu0 %v3981_v27, %s3757_s6 }
  0x62   : > { %411 = vrot.lane.b32.xlu2 %v3997_v28, %s3757_s6  ;;  %409 = vrot.lane.b32.xlu1 %v4000_v29, %s3757_s6 }
  0x63   : > { %407 = vrot.lane.b32.xlu0 %v4004_v30, %s3757_s6 }
  0x6a   : > { %538 = vrot.lane.b32.xlu2 %v4020_v31, %s3759_s7  ;;  %536 = vrot.lane.b32.xlu1 %v475_v32, %s3759_s7 }
  0x6b   : > { %534 = vrot.lane.b32.xlu0 %v4025_v33, %s3759_s7 }
  0x72   : > { %544 = vrot.lane.b32.xlu2 %v479_v34, %s3759_s7  ;;  %542 = vrot.lane.b32.xlu1 %v4041_v35, %s3759_s7 }
  0x73   : > { %540 = vrot.lane.b32.xlu0 %v477_v36, %s3759_s7  ;;  %v245_v36 = vld [vmem:[%s3847_s5 + $0x78] sm:$0x7f] }
  0x74   : > { %v362_v38 = vpop.permute.xlu2 %361  ;;  %278 = vst.msk [vmem:[#allocation2 + $0x89] sm:$0x7f] %vm263_vm3, %v245_v36  ;;  %v501_v36 = vld [vmem:[%s3847_s5 + $0xd9] sm:$0x7f] }
  0x75   : > { %448 = vst.msk [vmem:[#allocation2 + $0x30] sm:$0xff] %vm443_vm2, %v362_v38  ;;  %v493_v38 = vld [vmem:[%s3847_s5 + $0x99] sm:$0x7f] }
  0x7a   : > { %550 = vrot.lane.b32.xlu2 %v4059_v40, %s3759_s7  ;;  %548 = vrot.lane.b32.xlu1 %v481_v41, %s3759_s7 }
  0x7b   : > { %546 = vrot.lane.b32.xlu0 %v4065_v42, %s3759_s7 }
  0x7c   : > { %v364_v44 = vpop.permute.xlu2 %363 }
  0x7d   : > { %449 = vst.msk [vmem:[#allocation2 + $0x38] sm:$0xff] %vm443_vm2, %v364_v44 }
  0x82   : > { %556 = vrot.lane.b32.xlu2 %v485_v47, %s3759_s7  ;;  %554 = vrot.lane.b32.xlu1 %v4088_v48, %s3759_s7  ;;  %v497_v47 = vld [vmem:[%s3847_s5 + $0xb9] sm:$0x7f] }
  0x83   : > { %552 = vrot.lane.b32.xlu0 %v483_v49, %s3759_s7  ;;  %v4172_v49 = vld [vmem:[%s3847_s5 + $0xb1] sm:$0xff] }
  0x84   : > { %v370_v51 = vpop.permute.xlu2 %369 }
  0x85   : > { %452 = vst.msk [vmem:[#allocation2 + $0x50] sm:$0xff] %vm443_vm2, %v370_v51 }
  0x8a   : > { %562 = vrot.lane.b32.xlu2 %v4109_v53, %s3759_s7  ;;  %560 = vrot.lane.b32.xlu1 %v487_v54, %s3759_s7 }
  0x8b   : > { %558 = vrot.lane.b32.xlu0 %v4115_v55, %s3759_s7 }
  0x8c   : > { %v376_v56 = vpop.permute.xlu2 %375  ;;  %v358_v57 = vpop.permute.xlu1 %357 }
  0x8d   : > { %455 = vst.msk [vmem:[#allocation2 + $0x68] sm:$0xff] %vm443_vm2, %v376_v56  ;;  %v354_v58 = vpop.permute.xlu0 %353  ;;  %v251_v56 = vld [vmem:[%s3847_s5 + $0xa8] sm:$0x7f] }
  0x8e   : > { %446 = vst.msk [vmem:[#allocation2 + $0x20] sm:$0xff] %vm443_vm2, %v358_v57  ;;  %v4186_v57 = vld [vmem:[%s3847_s5 + $0xd1] sm:$0xff] }
  0x8f   : > { %444 = vst.msk [vmem:[#allocation2 + $0x10] sm:$0xff] %vm443_vm2, %v354_v58  ;;  %v499_v58 = vld [vmem:[%s3847_s5 + $0xc9] sm:$0x7f] }
  0x90   : > { %284 = vst.msk [vmem:[#allocation2 + $0xb9] sm:$0x7f] %vm263_vm3, %v251_v56 }
  0x92   : > { %568 = vrot.lane.b32.xlu2 %v491_v61, %s3759_s7  ;;  %566 = vrot.lane.b32.xlu1 %v4139_v62, %s3759_s7 }
  0x93   : > { %564 = vrot.lane.b32.xlu0 %v489_v63, %s3759_s7 }
  0x94   : > { %v382_v24 = vpop.permute.xlu2 %381  ;;  %v360_v32 = vpop.permute.xlu1 %359 }
  0x95   : > { %458 = vst.msk [vmem:[#allocation2 + $0x80] sm:$0xff] %vm443_vm2, %v382_v24  ;;  %v356_v34 = vpop.permute.xlu0 %355  ;;  %v255_v24 = vld [vmem:[%s3847_s5 + $0xc8] sm:$0x7f] }
  0x96   : > { %447 = vst.msk [vmem:[#allocation2 + $0x28] sm:$0xff] %vm443_vm2, %v360_v32  ;;  %v503_v32 = vld [vmem:[%s3847_s5 + $0xe9] sm:$0x7f] }
  0x97   : > { %445 = vst.msk [vmem:[#allocation2 + $0x18] sm:$0xff] %vm443_vm2, %v356_v34  ;;  %v4204_v34 = vld [vmem:[%s3847_s5 + $0xe1] sm:$0xff] }
  0x98   : > { %288 = vst.msk [vmem:[#allocation2 + $0xd9] sm:$0x7f] %vm263_vm3, %v255_v24 }
  0x9a   : > { %574 = vrot.lane.b32.xlu2 %v4153_v37, %s3759_s7  ;;  %572 = vrot.lane.b32.xlu1 %v493_v38, %s3759_s7 }
  0x9b   : > { %570 = vrot.lane.b32.xlu0 %v4157_v39, %s3759_s7 }
  0x9c   : > { %v388_v41 = vpop.permute.xlu2 %387  ;;  %v368_v43 = vpop.permute.xlu1 %367 }
  0x9d   : > { %461 = vst.msk [vmem:[#allocation2 + $0x98] sm:$0xff] %vm443_vm2, %v388_v41  ;;  %v366_v44 = vpop.permute.xlu0 %365 }
  0x9e   : > { %451 = vst.msk [vmem:[#allocation2 + $0x48] sm:$0xff] %vm443_vm2, %v368_v43 }
  0x9f   : > { %450 = vst.msk [vmem:[#allocation2 + $0x40] sm:$0xff] %vm443_vm2, %v366_v44  ;;  %v257_v44 = vld [vmem:[%s3847_s5 + $0xd8] sm:$0x7f] }
  0xa0   : > { %290 = vst.msk [vmem:[#allocation2 + $0xe9] sm:$0x7f] %vm263_vm3, %v257_v44  ;;  %v669_v44 = vld [vmem:[%s3847_s5 + $0x68] sm:$0x7f]  ;;  %vm2318_vm3 = vcmask 1041408  }
  0xa2   : > { %580 = vrot.lane.b32.xlu2 %v497_v47, %s3759_s7  ;;  %578 = vrot.lane.b32.xlu1 %v4172_v49, %s3759_s7 }
  0xa3   : > { %576 = vrot.lane.b32.xlu0 %v495_v50, %s3759_s7 }
  0xa4   : > { %v394_v51 = vpop.permute.xlu2 %393  ;;  %v374_v52 = vpop.permute.xlu1 %373 }
  0xa5   : > { %464 = vst.msk [vmem:[#allocation2 + $0xb0] sm:$0xff] %vm443_vm2, %v394_v51  ;;  %v372_v54 = vpop.permute.xlu0 %371  ;;  %v661_v51 = vld [vmem:[%s3847_s5 + $0x28] sm:$0x7f] }
  0xa6   : > { %454 = vst.msk [vmem:[#allocation2 + $0x60] sm:$0xff] %vm443_vm2, %v374_v52  ;;  %v659_v52 = vld [vmem:[%s3847_s5 + $0x18] sm:$0x7f] }
  0xa7   : > { %453 = vst.msk [vmem:[#allocation2 + $0x58] sm:$0xff] %vm443_vm2, %v372_v54 }
  0xaa   : > { %586 = vrot.lane.b32.xlu2 %v4186_v57, %s3759_s7  ;;  %584 = vrot.lane.b32.xlu1 %v499_v58, %s3759_s7 }
  0xab   : > { %582 = vrot.lane.b32.xlu0 %v4190_v59, %s3759_s7 }
  0xac   : > { %v400_v60 = vpop.permute.xlu2 %399  ;;  %v380_v61 = vpop.permute.xlu1 %379 }
  0xad   : > { %467 = vst.msk [vmem:[#allocation2 + $0xc8] sm:$0xff] %vm443_vm2, %v400_v60  ;;  %v378_v63 = vpop.permute.xlu0 %377  ;;  %v663_v60 = vld [vmem:[%s3847_s5 + $0x38] sm:$0x7f] }
  0xae   : > { %457 = vst.msk [vmem:[#allocation2 + $0x78] sm:$0xff] %vm443_vm2, %v380_v61 }
  0xaf   : > { %456 = vst.msk [vmem:[#allocation2 + $0x70] sm:$0xff] %vm443_vm2, %v378_v63 }
  0xb2   : > { %592 = vrot.lane.b32.xlu2 %v503_v32, %s3759_s7  ;;  %590 = vrot.lane.b32.xlu1 %v4204_v34, %s3759_s7  ;;  %v667_v32 = vld [vmem:[%s3847_s5 + $0x58] sm:$0x7f] }
  0xb3   : > { %588 = vrot.lane.b32.xlu0 %v501_v36, %s3759_s7  ;;  %v665_v36 = vld [vmem:[%s3847_s5 + $0x48] sm:$0x7f]  ;;  %s188_s7 = sand.u32 1, %s3747_s16  }
  0xb4   : > { %v406_v38 = vpop.permute.xlu2 %405  ;;  %v386_v41 = vpop.permute.xlu1 %385  ;;  %s3423_s6 = scalar_lea.sflag [#allocation4], %s188_s7 }
  0xb5   : > { %470 = vst.msk [vmem:[#allocation2 + $0xe0] sm:$0xff] %vm443_vm2, %v406_v38  ;;  %v384_v43 = vpop.permute.xlu0 %383 }
  0xb6   : > { %460 = vst.msk [vmem:[#allocation2 + $0x90] sm:$0xff] %vm443_vm2, %v386_v41 }
  0xb7   : > { %459 = vst.msk [vmem:[#allocation2 + $0x88] sm:$0xff] %vm443_vm2, %v384_v43 }
  0xba   : > { %724 = vrot.lane.b32.xlu2 %v3853_v1, %s3760_s8  ;;  %722 = vrot.lane.b32.xlu1 %v657_v45, %s3760_s8 }
  0xbb   : > { %720 = vrot.lane.b32.xlu0 %v3856_v2, %s3760_s8 }
  0xbc   : > { %v412_v46 = vpop.permute.xlu2 %411  ;;  %v392_v47 = vpop.permute.xlu1 %391 }
  0xbd   : > { %473 = vst.msk [vmem:[#allocation2 + $0xf8] sm:$0xff] %vm443_vm2, %v412_v46  ;;  %v390_v50 = vpop.permute.xlu0 %389 }
  0xbe   : > { %463 = vst.msk [vmem:[#allocation2 + $0xa8] sm:$0xff] %vm443_vm2, %v392_v47 }
  0xbf   : > { %462 = vst.msk [vmem:[#allocation2 + $0xa0] sm:$0xff] %vm443_vm2, %v390_v50  ;;  %v673_v50 = vld [vmem:[%s3847_s5 + $0x88] sm:$0x7f] }
  0xc2   : > { %730 = vrot.lane.b32.xlu2 %v661_v51, %s3760_s8  ;;  %728 = vrot.lane.b32.xlu1 %v3850_v0, %s3760_s8  ;;  %v671_v51 = vld [vmem:[%s3847_s5 + $0x78] sm:$0x7f] }
  0xc3   : > { %726 = vrot.lane.b32.xlu0 %v659_v52, %s3760_s8 }
  0xc4   : > { %v539_v54 = vpop.permute.xlu2 %538  ;;  %v398_v56 = vpop.permute.xlu1 %397 }
  0xc5   : > { %628 = vst.msk [vmem:[#allocation2 + $0x20] sm:$0xff] %vm624_vm4, %v539_v54  ;;  %v396_v58 = vpop.permute.xlu0 %395 }
  0xc6   : > { %466 = vst.msk [vmem:[#allocation2 + $0xc0] sm:$0xff] %vm443_vm2, %v398_v56 }
  0xc7   : > { %465 = vst.msk [vmem:[#allocation2 + $0xb8] sm:$0xff] %vm443_vm2, %v396_v58  ;;  %v675_v58 = vld [vmem:[%s3847_s5 + $0x98] sm:$0x7f] }
  0xca   : > { %736 = vrot.lane.b32.xlu2 %v3880_v6, %s3760_s8  ;;  %734 = vrot.lane.b32.xlu1 %v663_v60, %s3760_s8 }
  0xcb   : > { %732 = vrot.lane.b32.xlu0 %v3886_v8, %s3760_s8 }
  0xcc   : > { %v545_v61 = vpop.permute.xlu2 %544  ;;  %v404_v63 = vpop.permute.xlu1 %403 }
  0xcd   : > { %631 = vst.msk [vmem:[#allocation2 + $0x38] sm:$0x7f] %vm626_vm5, %v545_v61  ;;  %v402_v24 = vpop.permute.xlu0 %401 }
  0xce   : > { %469 = vst.msk [vmem:[#allocation2 + $0xd8] sm:$0xff] %vm443_vm2, %v404_v63 }
  0xcf   : > { %468 = vst.msk [vmem:[#allocation2 + $0xd0] sm:$0xff] %vm443_vm2, %v402_v24  ;;  %v679_v24 = vld [vmem:[%s3847_s5 + $0xb8] sm:$0x7f] }
  0xd2   : > { %742 = vrot.lane.b32.xlu2 %v667_v32, %s3760_s8  ;;  %740 = vrot.lane.b32.xlu1 %v3898_v10, %s3760_s8  ;;  %v677_v32 = vld [vmem:[%s3847_s5 + $0xa8] sm:$0x7f] }
  0xd3   : > { %738 = vrot.lane.b32.xlu0 %v665_v36, %s3760_s8 }
  0xd4   : > { %v551_v38 = vpop.permute.xlu2 %550  ;;  %v410_v41 = vpop.permute.xlu1 %409 }
  0xd5   : > { %634 = vst.msk [vmem:[#allocation2 + $0x50] sm:$0xff] %vm624_vm4, %v551_v38  ;;  %v408_v43 = vpop.permute.xlu0 %407 }
  0xd6   : > { %472 = vst.msk [vmem:[#allocation2 + $0xf0] sm:$0xff] %vm443_vm2, %v410_v41 }
  0xd7   : > { %471 = vst.msk [vmem:[#allocation2 + $0xe8] sm:$0xff] %vm443_vm2, %v408_v43  ;;  %v681_v43 = vld [vmem:[%s3847_s5 + $0xc8] sm:$0x7f]  ;;  %vm1751_vm2 = vcmask 220352  }
  0xda   : > { %748 = vrot.lane.b32.xlu2 %v3910_v12, %s3760_s8  ;;  %746 = vrot.lane.b32.xlu1 %v669_v44, %s3760_s8 }
  0xdb   : > { %744 = vrot.lane.b32.xlu0 %v3916_v14, %s3760_s8 }
  0xdc   : > { %v557_v45 = vpop.permute.xlu2 %556  ;;  %v537_v46 = vpop.permute.xlu1 %536 }
  0xdd   : > { %637 = vst.msk [vmem:[#allocation2 + $0x68] sm:$0x7f] %vm626_vm5, %v557_v45  ;;  %v535_v47 = vpop.permute.xlu0 %534 }
  0xde   : > { %627 = vst.msk [vmem:[#allocation2 + $0x18] sm:$0x7f] %vm626_vm5, %v537_v46 }
  0xdf   : > { %625 = vst.msk [vmem:[#allocation2 + $0x10] sm:$0xff] %vm624_vm4, %v535_v47  ;;  %v685_v47 = vld [vmem:[%s3847_s5 + $0xe8] sm:$0x7f] }
  0xe2   : > { %754 = vrot.lane.b32.xlu2 %v673_v50, %s3760_s8  ;;  %752 = vrot.lane.b32.xlu1 %v3928_v16, %s3760_s8  ;;  %v683_v50 = vld [vmem:[%s3847_s5 + $0xd8] sm:$0x7f] }
  0xe3   : > { %750 = vrot.lane.b32.xlu0 %v671_v51, %s3760_s8 }
  0xe4   : > { %v563_v52 = vpop.permute.xlu2 %562  ;;  %v543_v54 = vpop.permute.xlu1 %542 }
  0xe5   : > { %640 = vst.msk [vmem:[#allocation2 + $0x80] sm:$0xff] %vm624_vm4, %v563_v52  ;;  %v541_v56 = vpop.permute.xlu0 %540 }
  0xe6   : > { %630 = vst.msk [vmem:[#allocation2 + $0x30] sm:$0xff] %vm624_vm4, %v543_v54 }
  0xe7   : > { %629 = vst.msk [vmem:[#allocation2 + $0x28] sm:$0x7f] %vm626_vm5, %v541_v56  ;;  %v687_v56 = vld [vmem:[%s3847_s5 + $0xf8] sm:$0x7f] }
  0xea   : > { %760 = vrot.lane.b32.xlu2 %v3940_v18, %s3760_s8  ;;  %758 = vrot.lane.b32.xlu1 %v675_v58, %s3760_s8  ;;  %v4309_v58 = vld [vmem:[%s3847_s5 + $0xf0] sm:$0xff] }
  0xeb   : > { %756 = vrot.lane.b32.xlu0 %v3946_v20, %s3760_s8 }
  0xec   : > { %v569_v60 = vpop.permute.xlu2 %568  ;;  %v549_v61 = vpop.permute.xlu1 %548 }
  0xed   : > { %643 = vst.msk [vmem:[#allocation2 + $0x98] sm:$0x7f] %vm626_vm5, %v569_v60  ;;  %v547_v63 = vpop.permute.xlu0 %546 }
  0xee   : > { %633 = vst.msk [vmem:[#allocation2 + $0x48] sm:$0x7f] %vm626_vm5, %v549_v61 }
  0xef   : > { %632 = vst.msk [vmem:[#allocation2 + $0x40] sm:$0xff] %vm624_vm4, %v547_v63 }
  0xf2   : > { %766 = vrot.lane.b32.xlu2 %v679_v24, %s3760_s8  ;;  %764 = vrot.lane.b32.xlu1 %v3958_v22, %s3760_s8 }
  0xf3   : > { %762 = vrot.lane.b32.xlu0 %v677_v32, %s3760_s8 }
  0xf4   : > { %v575_v36 = vpop.permute.xlu2 %574  ;;  %v555_v38 = vpop.permute.xlu1 %554 }
  0xf5   : > { %646 = vst.msk [vmem:[#allocation2 + $0xb0] sm:$0xff] %vm624_vm4, %v575_v36  ;;  %v553_v41 = vpop.permute.xlu0 %552  ;;  %v1044_v36 = vld [vmem:[%s3847_s5 + $0x9] sm:$0x7f] }
  0xf6   : > { %636 = vst.msk [vmem:[#allocation2 + $0x60] sm:$0xff] %vm624_vm4, %v555_v38  ;;  %v4411_v38 = vld [vmem:[%s3847_s5 + $0xf8] sm:$0xff] }
  0xf7   : > { %635 = vst.msk [vmem:[#allocation2 + $0x58] sm:$0x7f] %vm626_vm5, %v553_v41 }
  0xfa   : > { %772 = vrot.lane.b32.xlu2 %v3974_v25, %s3760_s8  ;;  %770 = vrot.lane.b32.xlu1 %v681_v43, %s3760_s8  ;;  %v1046_v43 = vld [vmem:[%s3847_s5 + $0x19] sm:$0x7f] }
  0xfb   : > { %768 = vrot.lane.b32.xlu0 %v3981_v27, %s3760_s8 }
  0xfc   : > { %v581_v44 = vpop.permute.xlu2 %580  ;;  %v561_v45 = vpop.permute.xlu1 %560 }
  0xfd   : > { %649 = vst.msk [vmem:[#allocation2 + $0xc8] sm:$0x7f] %vm626_vm5, %v581_v44  ;;  %v559_v46 = vpop.permute.xlu0 %558 }
  0xfe   : > { %639 = vst.msk [vmem:[#allocation2 + $0x78] sm:$0x7f] %vm626_vm5, %v561_v45 }
  0xff   : > { %638 = vst.msk [vmem:[#allocation2 + $0x70] sm:$0xff] %vm624_vm4, %v559_v46  ;;  %v1050_v46 = vld [vmem:[%s3847_s5 + $0x39] sm:$0x7f] }
 0x102   : > { %778 = vrot.lane.b32.xlu2 %v685_v47, %s3760_s8  ;;  %776 = vrot.lane.b32.xlu1 %v4000_v29, %s3760_s8  ;;  %v1048_v47 = vld [vmem:[%s3847_s5 + $0x29] sm:$0x7f] }
 0x103   : > { %774 = vrot.lane.b32.xlu0 %v683_v50, %s3760_s8 }
 0x104   : > { %v587_v51 = vpop.permute.xlu2 %586  ;;  %v567_v52 = vpop.permute.xlu1 %566 }
 0x105   : > { %652 = vst.msk [vmem:[#allocation2 + $0xe0] sm:$0xff] %vm624_vm4, %v587_v51  ;;  %v565_v54 = vpop.permute.xlu0 %564  ;;  %v1052_v51 = vld [vmem:[%s3847_s5 + $0x49] sm:$0x7f] }
 0x106   : > { %642 = vst.msk [vmem:[#allocation2 + $0x90] sm:$0xff] %vm624_vm4, %v567_v52 }
 0x107   : > { %641 = vst.msk [vmem:[#allocation2 + $0x88] sm:$0x7f] %vm626_vm5, %v565_v54 }
 0x10a   : > { %914 = vrot.lane.b32.xlu2 %v3856_v2, %s3761_s9  ;;  %782 = vrot.lane.b32.xlu1 %v687_v56, %s3760_s8  ;;  %v1056_v56 = vld [vmem:[%s3847_s5 + $0x69] sm:$0x7f] }
 0x10b   : > { %780 = vrot.lane.b32.xlu0 %v4309_v58, %s3760_s8  ;;  %s3504_s8 = sshll.u32 %s188_s7, 6 }
 0x10c   : > { %v593_v60 = vpop.permute.xlu2 %592  ;;  %v573_v61 = vpop.permute.xlu1 %572 }
 0x10d   : > { %655 = vst.msk [vmem:[#allocation2 + $0xf8] sm:$0x7f] %vm626_vm5, %v593_v60  ;;  %v571_v63 = vpop.permute.xlu0 %570  ;;  %v1054_v60 = vld [vmem:[%s3847_s5 + $0x59] sm:$0x7f] }
 0x10e   : > { %645 = vst.msk [vmem:[#allocation2 + $0xa8] sm:$0x7f] %vm626_vm5, %v573_v61 }
 0x10f   : > { %644 = vst.msk [vmem:[#allocation2 + $0xa0] sm:$0xff] %vm624_vm4, %v571_v63  ;;  %v1058_v63 = vld [vmem:[%s3847_s5 + $0x79] sm:$0x7f] }
 0x112   : > { %920 = vrot.lane.b32.xlu2 %v3868_v4, %s3761_s9  ;;  %918 = vrot.lane.b32.xlu1 %v3853_v1, %s3761_s9 }
 0x113   : > { %916 = vrot.lane.b32.xlu0 %v3871_v5, %s3761_s9 }
 0x114   : > { %v725_v2 = vpop.permute.xlu2 %724  ;;  %v579_v24 = vpop.permute.xlu1 %578 }
 0x115   : > { %820 = vst.msk [vmem:[#allocation2 + $0x11] sm:$0xff] %vm816_vm6, %v725_v2  ;;  %v577_v32 = vpop.permute.xlu0 %576 }
 0x116   : > { %648 = vst.msk [vmem:[#allocation2 + $0xc0] sm:$0xff] %vm624_vm4, %v579_v24 }
 0x117   : > { %647 = vst.msk [vmem:[#allocation2 + $0xb8] sm:$0x7f] %vm626_vm5, %v577_v32  ;;  %v1062_v32 = vld [vmem:[%s3847_s5 + $0x99] sm:$0x7f] }
 0x11a   : > { %926 = vrot.lane.b32.xlu2 %v3886_v8, %s3761_s9  ;;  %924 = vrot.lane.b32.xlu1 %v3865_v3, %s3761_s9 }
 0x11b   : > { %922 = vrot.lane.b32.xlu0 %v3850_v0, %s3761_s9 }
 0x11c   : > { %v731_v1 = vpop.permute.xlu2 %730  ;;  %v585_v4 = vpop.permute.xlu1 %584 }
 0x11d   : > { %823 = vst.msk [vmem:[#allocation2 + $0x29] sm:$0x7f] %vm818_vm7, %v731_v1  ;;  %v583_v5 = vpop.permute.xlu0 %582  ;;  %v1060_v1 = vld [vmem:[%s3847_s5 + $0x89] sm:$0x7f] }
 0x11e   : > { %651 = vst.msk [vmem:[#allocation2 + $0xd8] sm:$0x7f] %vm626_vm5, %v585_v4 }
 0x11f   : > { %650 = vst.msk [vmem:[#allocation2 + $0xd0] sm:$0xff] %vm624_vm4, %v583_v5  ;;  %v1064_v5 = vld [vmem:[%s3847_s5 + $0xa9] sm:$0x7f] }
 0x122   : > { %932 = vrot.lane.b32.xlu2 %v3901_v11, %s3761_s9  ;;  %930 = vrot.lane.b32.xlu1 %v3880_v6, %s3761_s9 }
 0x123   : > { %928 = vrot.lane.b32.xlu0 %v3883_v7, %s3761_s9 }
 0x124   : > { %v737_v0 = vpop.permute.xlu2 %736  ;;  %v591_v3 = vpop.permute.xlu1 %590 }
 0x125   : > { %826 = vst.msk [vmem:[#allocation2 + $0x41] sm:$0xff] %vm816_vm6, %v737_v0  ;;  %v589_v8 = vpop.permute.xlu0 %588 }
 0x126   : > { %654 = vst.msk [vmem:[#allocation2 + $0xf0] sm:$0xff] %vm624_vm4, %v591_v3  ;;  %vm3343_vm4 = vcmask 1041409  }
 0x127   : > { %653 = vst.msk [vmem:[#allocation2 + $0xe8] sm:$0x7f] %vm626_vm5, %v589_v8  ;;  %vm3345_vm5 = vcmask 1042434  }
 0x12a   : > { %938 = vrot.lane.b32.xlu2 %v3916_v14, %s3761_s9  ;;  %936 = vrot.lane.b32.xlu1 %v3895_v9, %s3761_s9 }
 0x12b   : > { %934 = vrot.lane.b32.xlu0 %v3898_v10, %s3761_s9 }
 0x12c   : > { %v743_v6 = vpop.permute.xlu2 %742  ;;  %v723_v7 = vpop.permute.xlu1 %722 }
 0x12d   : > { %829 = vst.msk [vmem:[#allocation2 + $0x59] sm:$0x7f] %vm818_vm7, %v743_v6  ;;  %v721_v11 = vpop.permute.xlu0 %720  ;;  %v1068_v6 = vld [vmem:[%s3847_s5 + $0xc9] sm:$0x7f] }
 0x12e   : > { %819 = vst.msk [vmem:[#allocation2 + $0x9] sm:$0x7f] %vm818_vm7, %v723_v7  ;;  %v1066_v7 = vld [vmem:[%s3847_s5 + $0xb9] sm:$0x7f] }
 0x12f   : > { %817 = vst.msk [vmem:[#allocation2 + $0x1] sm:$0xff] %vm816_vm6, %v721_v11 }
 0x132   : > { %944 = vrot.lane.b32.xlu2 %v3931_v17, %s3761_s9  ;;  %942 = vrot.lane.b32.xlu1 %v3910_v12, %s3761_s9 }
 0x133   : > { %940 = vrot.lane.b32.xlu0 %v3913_v13, %s3761_s9 }
 0x134   : > { %v749_v9 = vpop.permute.xlu2 %748  ;;  %v729_v10 = vpop.permute.xlu1 %728 }
 0x135   : > { %832 = vst.msk [vmem:[#allocation2 + $0x71] sm:$0xff] %vm816_vm6, %v749_v9  ;;  %v727_v14 = vpop.permute.xlu0 %726  ;;  %v1070_v9 = vld [vmem:[%s3847_s5 + $0xd9] sm:$0x7f] }
 0x136   : > { %822 = vst.msk [vmem:[#allocation2 + $0x21] sm:$0xff] %vm816_vm6, %v729_v10 }
 0x137   : > { %821 = vst.msk [vmem:[#allocation2 + $0x19] sm:$0x7f] %vm818_vm7, %v727_v14 }
 0x13a   : > { %950 = vrot.lane.b32.xlu2 %v3946_v20, %s3761_s9  ;;  %948 = vrot.lane.b32.xlu1 %v3925_v15, %s3761_s9 }
 0x13b   : > { %946 = vrot.lane.b32.xlu0 %v3928_v16, %s3761_s9 }
 0x13c   : > { %v755_v12 = vpop.permute.xlu2 %754  ;;  %v735_v13 = vpop.permute.xlu1 %734 }
 0x13d   : > { %835 = vst.msk [vmem:[#allocation2 + $0x89] sm:$0x7f] %vm818_vm7, %v755_v12  ;;  %v733_v17 = vpop.permute.xlu0 %732  ;;  %v1074_v12 = vld [vmem:[%s3847_s5 + $0xf9] sm:$0x7f] }
 0x13e   : > { %825 = vst.msk [vmem:[#allocation2 + $0x39] sm:$0x7f] %vm818_vm7, %v735_v13  ;;  %v4504_v13 = vld [vmem:[%s3847_s5 + $0xf1] sm:$0xff] }
 0x13f   : > { %824 = vst.msk [vmem:[#allocation2 + $0x31] sm:$0xff] %vm816_vm6, %v733_v17 }
 0x142   : > { %956 = vrot.lane.b32.xlu2 %v3961_v23, %s3761_s9  ;;  %954 = vrot.lane.b32.xlu1 %v3940_v18, %s3761_s9 }
 0x143   : > { %952 = vrot.lane.b32.xlu0 %v3943_v19, %s3761_s9 }
 0x144   : > { %v761_v15 = vpop.permute.xlu2 %760  ;;  %v741_v16 = vpop.permute.xlu1 %740 }
 0x145   : > { %838 = vst.msk [vmem:[#allocation2 + $0xa1] sm:$0xff] %vm816_vm6, %v761_v15  ;;  %v739_v20 = vpop.permute.xlu0 %738 }
 0x146   : > { %828 = vst.msk [vmem:[#allocation2 + $0x51] sm:$0xff] %vm816_vm6, %v741_v16 }
 0x147   : > { %827 = vst.msk [vmem:[#allocation2 + $0x49] sm:$0x7f] %vm818_vm7, %v739_v20  ;;  %v3508_v20 = vld [vmem:[%s3847_s5 + $0x18] sm:$0x7f] }
 0x14a   : > { %962 = vrot.lane.b32.xlu2 %v3981_v27, %s3761_s9  ;;  %960 = vrot.lane.b32.xlu1 %v3955_v21, %s3761_s9 }
 0x14b   : > { %958 = vrot.lane.b32.xlu0 %v3958_v22, %s3761_s9 }
 0x14c   : > { %v767_v18 = vpop.permute.xlu2 %766  ;;  %v747_v19 = vpop.permute.xlu1 %746 }
 0x14d   : > { %841 = vst.msk [vmem:[#allocation2 + $0xb9] sm:$0x7f] %vm818_vm7, %v767_v18  ;;  %v745_v23 = vpop.permute.xlu0 %744  ;;  %v3553_v18 = vld [vmem:[%s3847_s5 + $0x90] sm:$0xff] }
 0x14e   : > { %831 = vst.msk [vmem:[#allocation2 + $0x69] sm:$0x7f] %vm818_vm7, %v747_v19  ;;  %v3507_v19 = vld [vmem:[%s3847_s5 + $0x10] sm:$0xff] }
 0x14f   : > { %830 = vst.msk [vmem:[#allocation2 + $0x61] sm:$0xff] %vm816_vm6, %v745_v23 }
 0x152   : > { %968 = vrot.lane.b32.xlu2 %v4004_v30, %s3761_s9  ;;  %966 = vrot.lane.b32.xlu1 %v3974_v25, %s3761_s9 }
 0x153   : > { %964 = vrot.lane.b32.xlu0 %v3977_v26, %s3761_s9 }
 0x154   : > { %v773_v21 = vpop.permute.xlu2 %772  ;;  %v753_v22 = vpop.permute.xlu1 %752 }
 0x155   : > { %844 = vst.msk [vmem:[#allocation2 + $0xd1] sm:$0xff] %vm816_vm6, %v773_v21  ;;  %v751_v27 = vpop.permute.xlu0 %750 }
 0x156   : > { %834 = vst.msk [vmem:[#allocation2 + $0x81] sm:$0xff] %vm816_vm6, %v753_v22 }
 0x157   : > { %833 = vst.msk [vmem:[#allocation2 + $0x79] sm:$0x7f] %vm818_vm7, %v751_v27  ;;  %v3531_v27 = vld [vmem:[%s3847_s5 + $0xd0] sm:$0xff] }
 0x15a   : > { %974 = vrot.lane.b32.xlu2 %v4309_v58, %s3761_s9  ;;  %972 = vrot.lane.b32.xlu1 %v3997_v28, %s3761_s9 }
 0x15b   : > { %970 = vrot.lane.b32.xlu0 %v4000_v29, %s3761_s9 }
 0x15c   : > { %v779_v25 = vpop.permute.xlu2 %778  ;;  %v759_v26 = vpop.permute.xlu1 %758 }
 0x15d   : > { %847 = vst.msk [vmem:[#allocation2 + $0xe9] sm:$0x7f] %vm818_vm7, %v779_v25  ;;  %v757_v30 = vpop.permute.xlu0 %756  ;;  %v3532_v25 = vld [vmem:[%s3847_s5 + $0xd8] sm:$0x7f] }
 0x15e   : > { %837 = vst.msk [vmem:[#allocation2 + $0x99] sm:$0x7f] %vm818_vm7, %v759_v26  ;;  %v3524_v26 = vld [vmem:[%s3847_s5 + $0x98] sm:$0x7f] }
 0x15f   : > { %836 = vst.msk [vmem:[#allocation2 + $0x91] sm:$0xff] %vm816_vm6, %v757_v30 }
 0x162   : > { %1109 = vrot.lane.b32.xlu2 %v1044_v36, %s3762_s10  ;;  %1107 = vrot.lane.b32.xlu1 %v4025_v33, %s3762_s10 }
 0x163   : > { %976 = vrot.lane.b32.xlu0 %v4411_v38, %s3761_s9 }
 0x164   : > { %v915_v28 = vpop.permute.xlu2 %914  ;;  %v765_v29 = vpop.permute.xlu1 %764 }
 0x165   : > { %1011 = vst.msk [vmem:[#allocation2] sm:$0xff] %vm1010_vm8, %v915_v28  ;;  %v763_v41 = vpop.permute.xlu0 %762 }
 0x166   : > { %840 = vst.msk [vmem:[#allocation2 + $0xb1] sm:$0xff] %vm816_vm6, %v765_v29  ;;  %v3554_v29 = vld [vmem:[%s3847_s5 + $0x98] sm:$0xff] }
 0x167   : > { %839 = vst.msk [vmem:[#allocation2 + $0xa9] sm:$0x7f] %vm818_vm7, %v763_v41 }
 0x16a   : > { %1115 = vrot.lane.b32.xlu2 %v4041_v35, %s3762_s10  ;;  %1113 = vrot.lane.b32.xlu1 %v1046_v43, %s3762_s10 }
 0x16b   : > { %1111 = vrot.lane.b32.xlu0 %v4020_v31, %s3762_s10 }
 0x16c   : > { %v921_v33 = vpop.permute.xlu2 %920  ;;  %v771_v44 = vpop.permute.xlu1 %770 }
 0x16d   : > { %1014 = vst.msk [vmem:[#allocation2 + $0x18] sm:$0xff] %vm1010_vm8, %v921_v33  ;;  %v769_v45 = vpop.permute.xlu0 %768 }
 0x16e   : > { %843 = vst.msk [vmem:[#allocation2 + $0xc9] sm:$0x7f] %vm818_vm7, %v771_v44  ;;  %v3584_v44 = vld [vmem:[%s3847_s5 + $0x99] sm:$0x7f] }
 0x16f   : > { %842 = vst.msk [vmem:[#allocation2 + $0xc1] sm:$0xff] %vm816_vm6, %v769_v45  ;;  %v3562_v45 = vld [vmem:[%s3847_s5 + $0xd8] sm:$0xff] }
 0x172   : > { %1121 = vrot.lane.b32.xlu2 %v1050_v46, %s3762_s10  ;;  %1119 = vrot.lane.b32.xlu1 %v4065_v42, %s3762_s10 }
 0x173   : > { %1117 = vrot.lane.b32.xlu0 %v1048_v47, %s3762_s10 }
 0x174   : > { %v927_v31 = vpop.permute.xlu2 %926  ;;  %v777_v35 = vpop.permute.xlu1 %776 }
 0x175   : > { %1017 = vst.msk [vmem:[#allocation2 + $0x30] sm:$0xff] %vm1010_vm8, %v927_v31  ;;  %v775_v50 = vpop.permute.xlu0 %774 }
 0x176   : > { %846 = vst.msk [vmem:[#allocation2 + $0xe1] sm:$0xff] %vm816_vm6, %v777_v35  ;;  %v3592_v35 = vld [vmem:[%s3847_s5 + $0xd9] sm:$0x7f] }
 0x177   : > { %845 = vst.msk [vmem:[#allocation2 + $0xd9] sm:$0x7f] %vm818_vm7, %v775_v50  ;;  %v3545_v50 = vld [vmem:[%s3847_s5 + $0x50] sm:$0xff] }
 0x17a   : > { %1127 = vrot.lane.b32.xlu2 %v4088_v48, %s3762_s10  ;;  %1125 = vrot.lane.b32.xlu1 %v1052_v51, %s3762_s10 }
 0x17b   : > { %1123 = vrot.lane.b32.xlu0 %v4059_v40, %s3762_s10 }
 0x17c   : > { %v933_v42 = vpop.permute.xlu2 %932  ;;  %v783_v52 = vpop.permute.xlu1 %782 }
 0x17d   : > { %1020 = vst.msk [vmem:[#allocation2 + $0x48] sm:$0xff] %vm1010_vm8, %v933_v42  ;;  %v781_v54 = vpop.permute.xlu0 %780 }
 0x17e   : > { %849 = vst.msk [vmem:[#allocation2 + $0xf9] sm:$0x7f] %vm818_vm7, %v783_v52  ;;  %v3538_v52 = vld [vmem:[%s3847_s5 + $0x18] sm:$0xff]  ;;  %vm3349_vm7 = vcmask 1044484  }
 0x17f   : > { %848 = vst.msk [vmem:[#allocation2 + $0xf1] sm:$0xff] %vm816_vm6, %v781_v54  ;;  %v3516_v54 = vld [vmem:[%s3847_s5 + $0x58] sm:$0x7f]  ;;  %vm3347_vm6 = vcmask 1043459  }
 0x182   : > { %1133 = vrot.lane.b32.xlu2 %v1056_v56, %s3762_s10  ;;  %1131 = vrot.lane.b32.xlu1 %v4115_v55, %s3762_s10 }
 0x183   : > { %1129 = vrot.lane.b32.xlu0 %v1054_v60, %s3762_s10 }
 0x184   : > { %v939_v40 = vpop.permute.xlu2 %938  ;;  %v919_v48 = vpop.permute.xlu1 %918 }
 0x185   : > { %1023 = vst.msk [vmem:[#allocation2 + $0x60] sm:$0xff] %vm1010_vm8, %v939_v40  ;;  %v917_v61 = vpop.permute.xlu0 %916  ;;  %v3546_v40 = vld [vmem:[%s3847_s5 + $0x58] sm:$0xff] }
 0x186   : > { %1013 = vst.msk [vmem:[#allocation2 + $0x10] sm:$0xff] %vm1010_vm8, %v919_v48  ;;  %v3567_v48 = vld [vmem:[%s3847_s5 + $0x11] sm:$0xff] }
 0x187   : > { %1012 = vst.msk [vmem:[#allocation2 + $0x8] sm:$0xff] %vm1010_vm8, %v917_v61 }
 0x18a   : > { %1139 = vrot.lane.b32.xlu2 %v4139_v62, %s3762_s10  ;;  %1137 = vrot.lane.b32.xlu1 %v1058_v63, %s3762_s10 }
 0x18b   : > { %1135 = vrot.lane.b32.xlu0 %v4109_v53, %s3762_s10 }
 0x18c   : > { %v945_v55 = vpop.permute.xlu2 %944  ;;  %v925_v2 = vpop.permute.xlu1 %924 }
 0x18d   : > { %1026 = vst.msk [vmem:[#allocation2 + $0x78] sm:$0xff] %vm1010_vm8, %v945_v55  ;;  %v923_v24 = vpop.permute.xlu0 %922 }
 0x18e   : > { %1016 = vst.msk [vmem:[#allocation2 + $0x28] sm:$0xff] %vm1010_vm8, %v925_v2  ;;  %v3575_v2 = vld [vmem:[%s3847_s5 + $0x51] sm:$0xff] }
 0x18f   : > { %1015 = vst.msk [vmem:[#allocation2 + $0x20] sm:$0xff] %vm1010_vm8, %v923_v24  ;;  %v3576_v24 = vld [vmem:[%s3847_s5 + $0x59] sm:$0x7f] }
 0x192   : > { %1145 = vrot.lane.b32.xlu2 %v1062_v32, %s3762_s10  ;;  %1143 = vrot.lane.b32.xlu1 %v4157_v39, %s3762_s10  ;;  %v3568_v32 = vld [vmem:[%s3847_s5 + $0x19] sm:$0x7f] }
 0x193   : > { %1141 = vrot.lane.b32.xlu0 %v1060_v1, %s3762_s10 }
 0x194   : > { %v951_v53 = vpop.permute.xlu2 %950  ;;  %v931_v62 = vpop.permute.xlu1 %930 }
 0x195   : > { %1029 = vst.msk [vmem:[#allocation2 + $0x90] sm:$0xff] %vm1010_vm8, %v951_v53  ;;  %v929_v4 = vpop.permute.xlu0 %928 }
 0x196   : > { %1019 = vst.msk [vmem:[#allocation2 + $0x40] sm:$0xff] %vm1010_vm8, %v931_v62 }
 0x197   : > { %1018 = vst.msk [vmem:[#allocation2 + $0x38] sm:$0xff] %vm1010_vm8, %v929_v4  ;;  %v3526_v4 = vld [vmem:[%s3847_s5 + $0xa8] sm:$0x7f] }
 0x19a   : > { %1151 = vrot.lane.b32.xlu2 %v4172_v49, %s3762_s10  ;;  %1149 = vrot.lane.b32.xlu1 %v1064_v5, %s3762_s10  ;;  %v3563_v5 = vld [vmem:[%s3847_s5 + $0xe0] sm:$0xff] }
 0x19b   : > { %1147 = vrot.lane.b32.xlu0 %v4153_v37, %s3762_s10 }
 0x19c   : > { %v957_v0 = vpop.permute.xlu2 %956  ;;  %v937_v3 = vpop.permute.xlu1 %936 }
 0x19d   : > { %1032 = vst.msk [vmem:[#allocation2 + $0xa8] sm:$0xff] %vm1010_vm8, %v957_v0  ;;  %v935_v8 = vpop.permute.xlu0 %934  ;;  %v3525_v0 = vld [vmem:[%s3847_s5 + $0xa0] sm:$0xff] }
 0x19e   : > { %1022 = vst.msk [vmem:[#allocation2 + $0x58] sm:$0xff] %vm1010_vm8, %v937_v3 }
 0x19f   : > { %1021 = vst.msk [vmem:[#allocation2 + $0x50] sm:$0xff] %vm1010_vm8, %v935_v8 }
 0x1a2   : > { %1157 = vrot.lane.b32.xlu2 %v1068_v6, %s3762_s10  ;;  %1155 = vrot.lane.b32.xlu1 %v4190_v59, %s3762_s10 }
 0x1a3   : > { %1153 = vrot.lane.b32.xlu0 %v1066_v7, %s3762_s10  ;;  %v3556_v7 = vld [vmem:[%s3847_s5 + $0xa8] sm:$0xff] }
 0x1a4   : > { %v963_v37 = vpop.permute.xlu2 %962  ;;  %v943_v49 = vpop.permute.xlu1 %942 }
 0x1a5   : > { %1035 = vst.msk [vmem:[#allocation2 + $0xc0] sm:$0xff] %vm1010_vm8, %v963_v37  ;;  %v941_v11 = vpop.permute.xlu0 %940  ;;  %v3534_v37 = vld [vmem:[%s3847_s5 + $0xe8] sm:$0x7f] }
 0x1a6   : > { %1025 = vst.msk [vmem:[#allocation2 + $0x70] sm:$0xff] %vm1010_vm8, %v943_v49 }
 0x1a7   : > { %1024 = vst.msk [vmem:[#allocation2 + $0x68] sm:$0xff] %vm1010_vm8, %v941_v11 }
 0x1aa   : > { %1163 = vrot.lane.b32.xlu2 %v4204_v34, %s3762_s10  ;;  %1161 = vrot.lane.b32.xlu1 %v1070_v9, %s3762_s10  ;;  %v1072_v34 = vld [vmem:[%s3847_s5 + $0xe9] sm:$0x7f] }
 0x1ab   : > { %1159 = vrot.lane.b32.xlu0 %v4186_v57, %s3762_s10 }
 0x1ac   : > { %v969_v59 = vpop.permute.xlu2 %968  ;;  %v949_v10 = vpop.permute.xlu1 %948 }
 0x1ad   : > { %1038 = vst.msk [vmem:[#allocation2 + $0xd8] sm:$0xff] %vm1010_vm8, %v969_v59  ;;  %v947_v14 = vpop.permute.xlu0 %946  ;;  %v3564_v59 = vld [vmem:[%s3847_s5 + $0xe8] sm:$0xff] }
 0x1ae   : > { %1028 = vst.msk [vmem:[#allocation2 + $0x88] sm:$0xff] %vm1010_vm8, %v949_v10  ;;  %v3585_v10 = vld [vmem:[%s3847_s5 + $0xa1] sm:$0xff] }
 0x1af   : > { %1027 = vst.msk [vmem:[#allocation2 + $0x80] sm:$0xff] %vm1010_vm8, %v947_v14 }
 0x1b2   : > { %1169 = vrot.lane.b32.xlu2 %v1074_v12, %s3762_s10  ;;  %1167 = vrot.lane.b32.xlu1 %v4504_v13, %s3762_s10 }
 0x1b3   : > { %1165 = vrot.lane.b32.xlu0 %v1072_v34, %s3762_s10 }
 0x1b4   : > { %v975_v17 = vpop.permute.xlu2 %974  ;;  %v955_v15 = vpop.permute.xlu1 %954 }
 0x1b5   : > { %1041 = vst.msk [vmem:[#allocation2 + $0xf0] sm:$0xff] %vm1010_vm8, %v975_v17  ;;  %v953_v16 = vpop.permute.xlu0 %952  ;;  %v3593_v17 = vld [vmem:[%s3847_s5 + $0xe1] sm:$0xff] }
 0x1b6   : > { %1031 = vst.msk [vmem:[#allocation2 + $0xa0] sm:$0xff] %vm1010_vm8, %v955_v15  ;;  %v3594_v15 = vld [vmem:[%s3847_s5 + $0xe9] sm:$0x7f] }
 0x1b7   : > { %1030 = vst.msk [vmem:[#allocation2 + $0x98] sm:$0xff] %vm1010_vm8, %v953_v16  ;;  %v3586_v16 = vld [vmem:[%s3847_s5 + $0xa9] sm:$0x7f] }
 0x1ba   : > { %1300 = vrot.lane.b32.xlu1 %v3508_v20, %s3763_s11  ;;  %1330 = vrot.lane.b32.xlu2 %v3553_v18, %s3763_s11 }
 0x1bb   : > { %1298 = vrot.lane.b32.xlu0 %v3507_v19, %s3763_s11 }
 0x1bc   : > { %v1110_v23 = vpop.permute.xlu2 %1109  ;;  %v961_v21 = vpop.permute.xlu1 %960 }
 0x1bd   : > { %1206 = vst.msk [vmem:[#allocation2 + $0x8] sm:$0x7f] %vm1205_vm9, %v1110_v23  ;;  %v959_v22 = vpop.permute.xlu0 %958  ;;  %v3510_v23 = vld [vmem:[%s3847_s5 + $0x28] sm:$0x7f] }
 0x1be   : > { %1034 = vst.msk [vmem:[#allocation2 + $0xb8] sm:$0xff] %vm1010_vm8, %v961_v21  ;;  %v3547_v21 = vld [vmem:[%s3847_s5 + $0x60] sm:$0xff] }
 0x1bf   : > { %1033 = vst.msk [vmem:[#allocation2 + $0xb0] sm:$0xff] %vm1010_vm8, %v959_v22  ;;  %v3509_v22 = vld [vmem:[%s3847_s5 + $0x20] sm:$0xff] }
 0x1c2   : > { %1346 = vrot.lane.b32.xlu1 %v3531_v27, %s3763_s11  ;;  %1348 = vrot.lane.b32.xlu2 %v3532_v25, %s3763_s11 }
 0x1c3   : > { %1332 = vrot.lane.b32.xlu0 %v3524_v26, %s3763_s11 }
 0x1c4   : > { %v1116_v30 = vpop.permute.xlu2 %1115  ;;  %v967_v36 = vpop.permute.xlu1 %966 }
 0x1c5   : > { %1209 = vst.msk [vmem:[#allocation2 + $0x20] sm:$0xff] %vm1203_vm10, %v1116_v30  ;;  %v965_v28 = vpop.permute.xlu0 %964  ;;  %v3540_v30 = vld [vmem:[%s3847_s5 + $0x28] sm:$0xff] }
 0x1c6   : > { %1037 = vst.msk [vmem:[#allocation2 + $0xd0] sm:$0xff] %vm1010_vm8, %v967_v36  ;;  %v3518_v36 = vld [vmem:[%s3847_s5 + $0x68] sm:$0x7f] }
 0x1c7   : > { %1036 = vst.msk [vmem:[#allocation2 + $0xc8] sm:$0xff] %vm1010_vm8, %v965_v28 }
 0x1ca   : > { %1514 = vrot.lane.b32.xlu1 %v3554_v29, %s3764_s12  ;;  %1528 = vrot.lane.b32.xlu2 %v3531_v27, %s3764_s12 }
 0x1cb   : > { %1512 = vrot.lane.b32.xlu0 %v3553_v18, %s3764_s12 }
 0x1cc   : > { %v1122_v41 = vpop.permute.xlu2 %1121  ;;  %v973_v43 = vpop.permute.xlu1 %972 }
 0x1cd   : > { %1212 = vst.msk [vmem:[#allocation2 + $0x38] sm:$0x7f] %vm1205_vm9, %v1122_v41  ;;  %v971_v33 = vpop.permute.xlu0 %970 }
 0x1ce   : > { %1040 = vst.msk [vmem:[#allocation2 + $0xe8] sm:$0xff] %vm1010_vm8, %v973_v43  ;;  %v3603_v43 = vld [vmem:[%s5501_s1 + $0x8] sm:$0xf] }
 0x1cf   : > { %1039 = vst.msk [vmem:[#allocation2 + $0xe0] sm:$0xff] %vm1010_vm8, %v971_v33  ;;  %v3628_v33 = vld [vmem:[%s5501_s1 + $0x8] sm:$0x30] }
 0x1d2   : > { %1693 = vrot.lane.b32.xlu1 %v4157_v39, %s3765_s13  ;;  %1695 = vrot.lane.b32.xlu2 %v3584_v44, %s3765_s13  ;;  %v3604_v44 = vor.u32 %v3628_v33, %v3603_v43 }
 0x1d3   : > { %1530 = vrot.lane.b32.xlu0 %v3562_v45, %s3764_s12  ;;  %v3548_v45 = vld [vmem:[%s3847_s5 + $0x68] sm:$0xff] }
 0x1d4   : > { %v1128_v46 = vpop.permute.xlu2 %1127  ;;  %v1108_v47 = vpop.permute.xlu1 %1107 }
 0x1d5   : > { %1215 = vst.msk [vmem:[#allocation2 + $0x50] sm:$0xff] %vm1203_vm10, %v1128_v46  ;;  %v977_v31 = vpop.permute.xlu0 %976  ;;  %v3569_v46 = vld [vmem:[%s3847_s5 + $0x21] sm:$0xff] }
 0x1d6   : > { %1204 = vst.msk [vmem:[#allocation2] sm:$0xff] %vm1203_vm10, %v1108_v47  ;;  %v3766_v47 = vmov 65535  }
 0x1d7   : > { %1042 = vst.msk [vmem:[#allocation2 + $0xf8] sm:$0xff] %vm1010_vm8, %v977_v31  ;;  %v1896_v31 = vsel %vm1894_vm13, 4294967295, %v3766_v47  ;;  %vm3351_vm8 = vcmask 1045509  }
 0x1da   : > { %1711 = vrot.lane.b32.xlu1 %v3592_v35, %s3765_s13  ;;  %1314 = vrot.lane.b32.xlu2 %v3545_v50, %s3763_s11  ;;  %v1897_v35 = vsel %vm1895_vm14, %v1896_v31, 0 }
 0x1db   : > { %1709 = vrot.lane.b32.xlu0 %v4186_v57, %s3765_s13 }
 0x1dc   : > { %v1134_v39 = vpop.permute.xlu2 %1133  ;;  %v1114_v51 = vpop.permute.xlu1 %1113 }
 0x1dd   : > { %1218 = vst.msk [vmem:[#allocation2 + $0x68] sm:$0x7f] %vm1205_vm9, %v1134_v39  ;;  %v1112_v42 = vpop.permute.xlu0 %1111  ;;  %v3627_v39 = vld [vmem:[%s5501_s1] sm:$0xff] }
 0x1de   : > { %1208 = vst.msk [vmem:[#allocation2 + $0x18] sm:$0x7f] %vm1205_vm9, %v1114_v51 }
 0x1df   : > { %1207 = vst.msk [vmem:[#allocation2 + $0x10] sm:$0xff] %vm1203_vm10, %v1112_v42 }
 0x1e2   : > { %1480 = vrot.lane.b32.xlu1 %v3507_v19, %s3764_s12  ;;  %1482 = vrot.lane.b32.xlu2 %v3538_v52, %s3764_s12 }
 0x1e3   : > { %1316 = vrot.lane.b32.xlu0 %v3516_v54, %s3763_s11  ;;  %v3577_v54 = vld [vmem:[%s3847_s5 + $0x61] sm:$0xff] }
 0x1e4   : > { %v1140_v57 = vpop.permute.xlu2 %1139  ;;  %v1120_v56 = vpop.permute.xlu1 %1119 }
 0x1e5   : > { %1221 = vst.msk [vmem:[#allocation2 + $0x80] sm:$0xff] %vm1203_vm10, %v1140_v57  ;;  %v1118_v60 = vpop.permute.xlu0 %1117  ;;  %v3578_v57 = vld [vmem:[%s3847_s5 + $0x69] sm:$0x7f] }
 0x1e6   : > { %1211 = vst.msk [vmem:[#allocation2 + $0x30] sm:$0xff] %vm1203_vm10, %v1120_v56  ;;  %v3570_v56 = vld [vmem:[%s3847_s5 + $0x29] sm:$0x7f] }
 0x1e7   : > { %1210 = vst.msk [vmem:[#allocation2 + $0x28] sm:$0x7f] %vm1205_vm9, %v1118_v60 }
 0x1ea   : > { %1498 = vrot.lane.b32.xlu1 %v3546_v40, %s3764_s12  ;;  %1661 = vrot.lane.b32.xlu2 %v3567_v48, %s3765_s13 }
 0x1eb   : > { %1496 = vrot.lane.b32.xlu0 %v3545_v50, %s3764_s12  ;;  %v1899_v50 = vand.u32 %v3604_v44, %v1897_v35  ;;  %v3579_v44 = vld [vmem:[%s3847_s5 + $0x71] sm:$0xff] }
 0x1ec   : > { %v1146_v61 = vpop.permute.xlu2 %1145  ;;  %v1126_v63 = vpop.permute.xlu1 %1125 }
 0x1ed   : > { %1224 = vst.msk [vmem:[#allocation2 + $0x98] sm:$0x7f] %vm1205_vm9, %v1146_v61  ;;  %v1124_v55 = vpop.permute.xlu0 %1123  ;;  %3631 = vmatpush.bf16.msra.mxu2 %v1899_v50  ;;  %3632 = vmatpush.bf16.msra.mxu3 %v1899_v50  ;;  %v3528_v61 = vld [vmem:[%s3847_s5 + $0xb8] sm:$0x7f] }
 0x1ee   : > { %1214 = vst.msk [vmem:[#allocation2 + $0x48] sm:$0x7f] %vm1205_vm9, %v1126_v63  ;;  %1907 = vmatpush.bf16.msra.mxu0 %v1899_v50  ;;  %3630 = vmatpush.bf16.msra.mxu1 %v1899_v50  ;;  %v3527_v63 = vld [vmem:[%s3847_s5 + $0xb0] sm:$0xff]  ;;  %v3530_v50 = vld [vmem:[%s3847_s5 + $0xc8] sm:$0x7f] }
 0x1ef   : > { %1213 = vst.msk [vmem:[#allocation2 + $0x40] sm:$0xff] %vm1203_vm10, %v1124_v55 }
 0x1f1   : > { %3634 = vmatpush.bf16.msra.mxu2 %v3627_v39  ;;  %3635 = vmatpush.bf16.msra.mxu3 %v3627_v39 }
 0x1f2   : > { %1677 = vrot.lane.b32.xlu1 %v3575_v2, %s3765_s13  ;;  %1679 = vrot.lane.b32.xlu2 %v3576_v24, %s3765_s13 }
 0x1f3   : > { %1663 = vrot.lane.b32.xlu0 %v3568_v32, %s3765_s13  ;;  %1908 = vmatpush.bf16.msra.mxu0 %v3627_v39  ;;  %v3558_v32 = vld [vmem:[%s3847_s5 + $0xb8] sm:$0xff] }
 0x1f4   : > { %v1152_v1 = vpop.permute.xlu2 %1151  ;;  %v1132_v53 = vpop.permute.xlu1 %1131  ;;  %3633 = vmatpush.bf16.msra.mxu1 %v3627_v39  ;;  %v3529_v39 = vld [vmem:[%s3847_s5 + $0xc0] sm:$0xff] }
 0x1f5   : > { %1227 = vst.msk [vmem:[#allocation2 + $0xb0] sm:$0xff] %vm1203_vm10, %v1152_v1  ;;  %v1130_v62 = vpop.permute.xlu0 %1129  ;;  %v3536_v1 = vld [vmem:[%s3847_s5 + $0xf8] sm:$0x7f] }
 0x1f6   : > { %1217 = vst.msk [vmem:[#allocation2 + $0x60] sm:$0xff] %vm1203_vm10, %v1132_v53 }
 0x1f7   : > { %1216 = vst.msk [vmem:[#allocation2 + $0x58] sm:$0x7f] %vm1205_vm9, %v1130_v62 }
 0x1fa   : > { %1336 = vrot.lane.b32.xlu1 %v3526_v4, %s3763_s11  ;;  %1350 = vrot.lane.b32.xlu2 %v3563_v5, %s3763_s11 }
 0x1fb   : > { %1334 = vrot.lane.b32.xlu0 %v3525_v0, %s3763_s11 }
 0x1fc   : > { %v1158_v3 = vpop.permute.xlu2 %1157  ;;  %v1138_v8 = vpop.permute.xlu1 %1137 }
 0x1fd   : > { %1230 = vst.msk [vmem:[#allocation2 + $0xc8] sm:$0x7f] %vm1205_vm9, %v1158_v3  ;;  %v1136_v6 = vpop.permute.xlu0 %1135 }
 0x1fe   : > { %1220 = vst.msk [vmem:[#allocation2 + $0x78] sm:$0x7f] %vm1205_vm9, %v1138_v8 }
 0x1ff   : > { %1219 = vst.msk [vmem:[#allocation2 + $0x70] sm:$0xff] %vm1203_vm10, %v1136_v6 }
 0x202   : > { %1516 = vrot.lane.b32.xlu1 %v3525_v0, %s3764_s12  ;;  %1518 = vrot.lane.b32.xlu2 %v3556_v7, %s3764_s12 }
 0x203   : > { %1352 = vrot.lane.b32.xlu0 %v3534_v37, %s3763_s11 }
 0x204   : > { %v1164_v49 = vpop.permute.xlu2 %1163  ;;  %v1144_v11 = vpop.permute.xlu1 %1143 }
 0x205   : > { %1233 = vst.msk [vmem:[#allocation2 + $0xe0] sm:$0xff] %vm1203_vm10, %v1164_v49  ;;  %v1142_v9 = vpop.permute.xlu0 %1141  ;;  %v3588_v49 = vld [vmem:[%s3847_s5 + $0xb9] sm:$0x7f] }
 0x206   : > { %1223 = vst.msk [vmem:[#allocation2 + $0x90] sm:$0xff] %vm1203_vm10, %v1144_v11 }
 0x207   : > { %1222 = vst.msk [vmem:[#allocation2 + $0x88] sm:$0x7f] %vm1205_vm9, %v1142_v9 }
 0x20a   : > { %1534 = vrot.lane.b32.xlu1 %v3564_v59, %s3764_s12  ;;  %1697 = vrot.lane.b32.xlu2 %v3585_v10, %s3765_s13 }
 0x20b   : > { %1532 = vrot.lane.b32.xlu0 %v3563_v5, %s3764_s12  ;;  %v3587_v5 = vld [vmem:[%s3847_s5 + $0xb1] sm:$0xff] }
 0x20c   : > { %v1170_v14 = vpop.permute.xlu2 %1169  ;;  %v1150_v12 = vpop.permute.xlu1 %1149 }
 0x20d   : > { %1236 = vst.msk [vmem:[#allocation2 + $0xf8] sm:$0x7f] %vm1205_vm9, %v1170_v14  ;;  %v1148_v34 = vpop.permute.xlu0 %1147 }
 0x20e   : > { %1226 = vst.msk [vmem:[#allocation2 + $0xa8] sm:$0x7f] %vm1205_vm9, %v1150_v12  ;;  %v3512_v12 = vld [vmem:[%s3847_s5 + $0x38] sm:$0x7f] }
 0x20f   : > { %1225 = vst.msk [vmem:[#allocation2 + $0xa0] sm:$0xff] %vm1203_vm10, %v1148_v34  ;;  %v3511_v34 = vld [vmem:[%s3847_s5 + $0x30] sm:$0xff] }
 0x212   : > { %1713 = vrot.lane.b32.xlu1 %v3593_v17, %s3765_s13  ;;  %1715 = vrot.lane.b32.xlu2 %v3594_v15, %s3765_s13 }
 0x213   : > { %1699 = vrot.lane.b32.xlu0 %v3586_v16, %s3765_s13 }
 0x214   : > { %v1156_v20 = vpop.permute.xlu1 %1155  ;;  %v1331_v18 = vpop.permute.xlu2 %1330 }
 0x215   : > { %1229 = vst.msk [vmem:[#allocation2 + $0xc0] sm:$0xff] %vm1203_vm10, %v1156_v20  ;;  %v1154_v19 = vpop.permute.xlu0 %1153  ;;  %v3542_v20 = vld [vmem:[%s3847_s5 + $0x38] sm:$0xff] }
 0x216   : > { %1228 = vst.msk [vmem:[#allocation2 + $0xb8] sm:$0x7f] %vm1205_vm9, %v1154_v19 }
 0x217   : > { %1406 = vst.msk [vmem:[#allocation2 + $0x81] sm:$0xff] %vm1388_vm11, %v1331_v18  ;;  %v3520_v18 = vld [vmem:[%s3847_s5 + $0x78] sm:$0x7f] }
 0x21a   : > { %1304 = vrot.lane.b32.xlu1 %v3510_v23, %s3763_s11  ;;  %1318 = vrot.lane.b32.xlu2 %v3547_v21, %s3763_s11 }
 0x21b   : > { %1302 = vrot.lane.b32.xlu0 %v3509_v22, %s3763_s11 }
 0x21c   : > { %v1162_v27 = vpop.permute.xlu1 %1161  ;;  %v1349_v25 = vpop.permute.xlu2 %1348 }
 0x21d   : > { %1232 = vst.msk [vmem:[#allocation2 + $0xd8] sm:$0x7f] %vm1205_vm9, %v1162_v27  ;;  %v1160_v26 = vpop.permute.xlu0 %1159  ;;  %v3571_v27 = vld [vmem:[%s3847_s5 + $0x31] sm:$0xff] }
 0x21e   : > { %1231 = vst.msk [vmem:[#allocation2 + $0xd0] sm:$0xff] %vm1203_vm10, %v1160_v26 }
 0x21f   : > { %1415 = vst.msk [vmem:[#allocation2 + $0xc9] sm:$0x7f] %vm1390_vm12, %v1349_v25 }
 0x222   : > { %1484 = vrot.lane.b32.xlu1 %v3509_v22, %s3764_s12  ;;  %1486 = vrot.lane.b32.xlu2 %v3540_v30, %s3764_s12  ;;  %v3550_v22 = vld [vmem:[%s3847_s5 + $0x78] sm:$0xff] }
 0x223   : > { %1320 = vrot.lane.b32.xlu0 %v3518_v36, %s3763_s11 }
 0x224   : > { %v1168_v28 = vpop.permute.xlu1 %1167  ;;  %v1529_v29 = vpop.permute.xlu2 %1528 }
 0x225   : > { %1235 = vst.msk [vmem:[#allocation2 + $0xf0] sm:$0xff] %vm1203_vm10, %v1168_v28  ;;  %v1166_v41 = vpop.permute.xlu0 %1165  ;;  %vm3355_vm10 = vcmask 1047559  }
 0x226   : > { %1234 = vst.msk [vmem:[#allocation2 + $0xe8] sm:$0x7f] %vm1205_vm9, %v1166_v41  ;;  %vm3353_vm9 = vcmask 1046534  }
 0x22a   : > { %1502 = vrot.lane.b32.xlu1 %v3548_v45, %s3764_s12  ;;  %1665 = vrot.lane.b32.xlu2 %v3569_v46, %s3765_s13  ;;  %v3580_v45 = vld [vmem:[%s3847_s5 + $0x79] sm:$0x7f] }
 0x22b   : > { %1500 = vrot.lane.b32.xlu0 %v3547_v21, %s3764_s12  ;;  %v3572_v46 = vld [vmem:[%s3847_s5 + $0x39] sm:$0x7f] }
 0x22c   : > { %v1301_v51 = vpop.permute.xlu1 %1300  ;;  %v1696_v42 = vpop.permute.xlu2 %1695 }
 0x22d   : > { %1391 = vst.msk [vmem:[#allocation2 + $0x9] sm:$0x7f] %vm1390_vm12, %v1301_v51  ;;  %v1299_v52 = vpop.permute.xlu0 %1298 }
 0x22e   : > { %1389 = vst.msk [vmem:[#allocation2 + $0x1] sm:$0xff] %vm1388_vm11, %v1299_v52 }
 0x232   : > { %1681 = vrot.lane.b32.xlu1 %v3577_v54, %s3765_s13  ;;  %1683 = vrot.lane.b32.xlu2 %v3578_v57, %s3765_s13  ;;  %v3589_v54 = vld [vmem:[%s3847_s5 + $0xc1] sm:$0xff]  ;;  %v3590_v57 = vld [vmem:[%s3847_s5 + $0xc9] sm:$0x7f] }
 0x233   : > { %1667 = vrot.lane.b32.xlu0 %v3570_v56, %s3765_s13  ;;  %v3560_v56 = vld [vmem:[%s3847_s5 + $0xc8] sm:$0xff] }
 0x234   : > { %v1347_v60 = vpop.permute.xlu1 %1346  ;;  %v1315_v40 = vpop.permute.xlu2 %1314 }
 0x235   : > { %1414 = vst.msk [vmem:[#allocation2 + $0xc1] sm:$0xff] %vm1388_vm11, %v1347_v60  ;;  %v1333_v48 = vpop.permute.xlu0 %1332 }
 0x236   : > { %1407 = vst.msk [vmem:[#allocation2 + $0x89] sm:$0x7f] %vm1390_vm12, %v1333_v48 }
 0x237   : > { %1595 = vst.msk [vmem:[#allocation2 + $0xc0] sm:$0xff] %vm1570_vm15, %v1529_v29 }
 0x238   : > { %1398 = vst.msk [vmem:[#allocation2 + $0x41] sm:$0xff] %vm1388_vm11, %v1315_v40 }
 0x23a   : > { %1340 = vrot.lane.b32.xlu1 %v3528_v61, %s3763_s11  ;;  %1354 = vrot.lane.b32.xlu2 %v4309_v58, %s3763_s11  ;;  %v3514_v61 = vld [vmem:[%s3847_s5 + $0x48] sm:$0x7f] }
 0x23b   : > { %1338 = vrot.lane.b32.xlu0 %v3527_v63, %s3763_s11 }
 0x23c   : > { %v1515_v55 = vpop.permute.xlu1 %1514  ;;  %v1483_v2 = vpop.permute.xlu2 %1482 }
 0x23d   : > { %1588 = vst.msk [vmem:[#allocation2 + $0x88] sm:$0xff] %vm1570_vm15, %v1515_v55  ;;  %v1513_v24 = vpop.permute.xlu0 %1512  ;;  %v3513_v55 = vld [vmem:[%s3847_s5 + $0x40] sm:$0xff] }
 0x23e   : > { %1587 = vst.msk [vmem:[#allocation2 + $0x80] sm:$0xff] %vm1570_vm15, %v1513_v24 }
 0x23f   : > { %1770 = vst.msk [vmem:[#allocation2 + $0x88] sm:$0x7f] %vm1753_vm1, %v1696_v42 }
 0x240   : > { %1572 = vst.msk [vmem:[#allocation2 + $0x8] sm:$0xff] %vm1570_vm15, %v1483_v2 }
 0x242   : > { %1520 = vrot.lane.b32.xlu1 %v3527_v63, %s3764_s12  ;;  %1522 = vrot.lane.b32.xlu2 %v3558_v32, %s3764_s12  ;;  %v3551_v63 = vld [vmem:[%s3847_s5 + $0x80] sm:$0xff] }
 0x243   : > { %1356 = vrot.lane.b32.xlu0 %v3536_v1, %s3763_s11 }
 0x244   : > { %v1694_v53 = vpop.permute.xlu1 %1693  ;;  %v1662_v62 = vpop.permute.xlu2 %1661 }
 0x245   : > { %1769 = vst.msk [vmem:[#allocation2 + $0x80] sm:$0xff] %vm1751_vm2, %v1694_v53  ;;  %v1531_v4 = vpop.permute.xlu0 %1530 }
 0x246   : > { %1596 = vst.msk [vmem:[#allocation2 + $0xc8] sm:$0xff] %vm1570_vm15, %v1531_v4  ;;  %v1800_v8 = vld [vmem:[#allocation2 + $0x88] sm:$0xff] }
 0x24a   : > { %1538 = vrot.lane.b32.xlu1 %v4411_v38, %s3764_s12  ;;  %1701 = vrot.lane.b32.xlu2 %v3587_v5, %s3765_s13  ;;  %v3596_v38 = vld [vmem:[%s3847_s5 + $0xf9] sm:$0x7f] }
 0x24b   : > { %1536 = vrot.lane.b32.xlu0 %v4309_v58, %s3764_s12 }
 0x24c   : > { %v1712_v0 = vpop.permute.xlu1 %1711  ;;  %v1799_v3 = vld [vmem:[#allocation2 + $0x80] sm:$0xff]  ;;  %v1680_v6 = vpop.permute.xlu2 %1679 }
 0x24d   : > { %1778 = vst.msk [vmem:[#allocation2 + $0xc8] sm:$0x7f] %vm1753_vm1, %v1712_v0  ;;  %v1710_v7 = vpop.permute.xlu0 %1709  ;;  %v1823_v37 = vpack.c.bf16 %v1800_v8, %v1799_v3  ;;  %v3544_v3 = vld [vmem:[%s3847_s5 + $0x48] sm:$0xff] }
 0x24e   : > { %1777 = vst.msk [vmem:[#allocation2 + $0xc0] sm:$0xff] %vm1751_vm2, %v1710_v7  ;;  %v3522_v8 = vld [vmem:[%s3847_s5 + $0x88] sm:$0x7f] }
 0x24f   : > { %3613 = vmatmul.msk.bf16.vlgmr.msra.gmra.mxu2 %vm197_vm0, %v1823_v37 }
 0x252   : > { %1717 = vrot.lane.b32.xlu1 %v4504_v13, %s3765_s13  ;;  %1719 = vrot.lane.b32.xlu2 %v3596_v38, %s3765_s13  ;;  %v3549_v13 = vld [vmem:[%s3847_s5 + $0x70] sm:$0xff]  ;;  %v3552_v38 = vld [vmem:[%s3847_s5 + $0x88] sm:$0xff] }
 0x253   : > { %1703 = vrot.lane.b32.xlu0 %v3588_v49, %s3765_s13  ;;  %v3573_v49 = vld [vmem:[%s3847_s5 + $0x41] sm:$0xff] }
 0x254   : > { %v1481_v58 = vpop.permute.xlu1 %1480  ;;  %v1808_v11 = vld [vmem:[#allocation2 + $0xc8] sm:$0xff]  ;;  %v1351_v9 = vpop.permute.xlu2 %1350 }
 0x255   : > { %1571 = vst.msk [vmem:[#allocation2] sm:$0xff] %vm1570_vm15, %v1481_v58  ;;  %v1317_v59 = vpop.permute.xlu0 %1316  ;;  %v1807_v10 = vld [vmem:[#allocation2 + $0xc0] sm:$0xff] }
 0x256   : > { %1399 = vst.msk [vmem:[#allocation2 + $0x49] sm:$0x7f] %vm1390_vm12, %v1317_v59  ;;  %v1827_v14 = vpack.c.bf16 %v1808_v11, %v1807_v10  ;;  %v3581_v59 = vld [vmem:[%s3847_s5 + $0x81] sm:$0xff]  ;;  %v3582_v10 = vld [vmem:[%s3847_s5 + $0x89] sm:$0x7f] }
 0x257   : > { %1752 = vst.msk [vmem:[#allocation2] sm:$0xff] %vm1751_vm2, %v1662_v62 }
 0x258   : > { %3617 = vmatmul.msk.bf16.vlgmr.msra.gmra.mxu3 %vm197_vm0, %v1827_v14  ;;  %1416 = vst.msk [vmem:[#allocation2 + $0xd1] sm:$0xff] %vm1388_vm11, %v1351_v9  ;;  %v3574_v14 = vld [vmem:[%s3847_s5 + $0x49] sm:$0x7f]  ;;  %s3437_s5 = sshll.u32 %s3434_s29, 4  ;;  %s3438_s5 = int_to_ptr.hbm [resolvable:$true] %s3437_s5 }
 0x25a   : > { %1308 = vrot.lane.b32.xlu1 %v3512_v12, %s3763_s11  ;;  %1322 = vrot.lane.b32.xlu2 %v3549_v13, %s3763_s11 }
 0x25b   : > { %1306 = vrot.lane.b32.xlu0 %v3511_v34, %s3763_s11 }
 0x25c   : > { %v1499_v17 = vpop.permute.xlu1 %1498  ;;  %v1519_v15 = vpop.permute.xlu2 %1518 }
 0x25d   : > { %1580 = vst.msk [vmem:[#allocation2 + $0x48] sm:$0xff] %vm1570_vm15, %v1499_v17  ;;  %v1497_v16 = vpop.permute.xlu0 %1496 }
 0x25e   : > { %1579 = vst.msk [vmem:[#allocation2 + $0x40] sm:$0xff] %vm1570_vm15, %v1497_v16  ;;  %v1783_v29 = vld [vmem:[#allocation2] sm:$0xff] }
 0x25f   : > { %1762 = vst.msk [vmem:[#allocation2 + $0x48] sm:$0x7f] %vm1753_vm1, %v1680_v6 }
 0x262   : > { %1488 = vrot.lane.b32.xlu1 %v3511_v34, %s3764_s12  ;;  %1490 = vrot.lane.b32.xlu2 %v3542_v20, %s3764_s12 }
 0x263   : > { %1324 = vrot.lane.b32.xlu0 %v3520_v18, %s3763_s11 }
 0x264   : > { %v1678_v19 = vpop.permute.xlu1 %1677  ;;  %v1698_v23 = vpop.permute.xlu2 %1697 }
 0x265   : > { %1761 = vst.msk [vmem:[#allocation2 + $0x40] sm:$0xff] %vm1751_vm2, %v1678_v19  ;;  %v1664_v21 = vpop.permute.xlu0 %1663 }
 0x266   : > { %1754 = vst.msk [vmem:[#allocation2 + $0x8] sm:$0x7f] %vm1753_vm1, %v1664_v21  ;;  %v1792_v30 = vld [vmem:[#allocation2 + $0x48] sm:$0xff] }
 0x26a   : > { %1506 = vrot.lane.b32.xlu1 %v3550_v22, %s3764_s12  ;;  %1669 = vrot.lane.b32.xlu2 %v3571_v27, %s3765_s13 }
 0x26b   : > { %1504 = vrot.lane.b32.xlu0 %v3549_v13, %s3764_s12 }
 0x26c   : > { %v1337_v25 = vpop.permute.xlu1 %1336  ;;  %v1791_v26 = vld [vmem:[#allocation2 + $0x40] sm:$0xff]  ;;  %v1716_v36 = vpop.permute.xlu2 %1715 }
 0x26d   : > { %1409 = vst.msk [vmem:[#allocation2 + $0x99] sm:$0x7f] %vm1390_vm12, %v1337_v25  ;;  %v1335_v28 = vpop.permute.xlu0 %1334  ;;  %v1784_v41 = vld [vmem:[#allocation2 + $0x8] sm:$0xff]  ;;  %v1819_v43 = vpack.c.bf16 %v1792_v30, %v1791_v26 }
 0x26e   : > { %1408 = vst.msk [vmem:[#allocation2 + $0x91] sm:$0xff] %vm1388_vm11, %v1335_v28  ;;  %v1815_v33 = vpack.c.bf16 %v1784_v41, %v1783_v29 }
 0x26f   : > { %1590 = vst.msk [vmem:[#allocation2 + $0x98] sm:$0xff] %vm1570_vm15, %v1519_v15  ;;  %3609 = vmatmul.msk.bf16.vlgmr.msra.gmra.mxu1 %vm197_vm0, %v1819_v43 }
 0x270   : > { %3605 = vmatmul.msk.bf16.vlgmr.msra.gmra.mxu0 %vm197_vm0, %v1815_v33 }
 0x272   : > { %1685 = vrot.lane.b32.xlu1 %v3579_v44, %s3765_s13  ;;  %1687 = vrot.lane.b32.xlu2 %v3580_v45, %s3765_s13 }
 0x273   : > { %1671 = vrot.lane.b32.xlu0 %v3572_v46, %s3765_s13 }
 0x274   : > { %v1517_v47 = vpop.permute.xlu1 %1516  ;;  %v1319_v31 = vpop.permute.xlu2 %1318 }
 0x275   : > { %1589 = vst.msk [vmem:[#allocation2 + $0x90] sm:$0xff] %vm1570_vm15, %v1517_v47  ;;  %v1353_v35 = vpop.permute.xlu0 %1352 }
 0x276   : > { %1417 = vst.msk [vmem:[#allocation2 + $0xd9] sm:$0x7f] %vm1390_vm12, %v1353_v35 }
 0x277   : > { %1771 = vst.msk [vmem:[#allocation2 + $0x90] sm:$0xff] %vm1751_vm2, %v1698_v23 }
 0x278   : > { %1400 = vst.msk [vmem:[#allocation2 + $0x51] sm:$0xff] %vm1388_vm11, %v1319_v31 }
 0x27a   : > { %1344 = vrot.lane.b32.xlu1 %v3530_v50, %s3763_s11  ;;  %1524 = vrot.lane.b32.xlu2 %v3529_v39, %s3764_s12 }
 0x27b   : > { %1342 = vrot.lane.b32.xlu0 %v3529_v39, %s3763_s11  ;;  %v4804_v39 = vld [vmem:[%s5502_s2] ss:$0 sm:$0xff] }
 0x27c   : > { %v1535_v51 = vpop.permute.xlu1 %1534  ;;  %v1487_v42 = vpop.permute.xlu2 %1486 }
 0x27d   : > { %1598 = vst.msk [vmem:[#allocation2 + $0xd8] sm:$0xff] %vm1570_vm15, %v1535_v51  ;;  %v1533_v52 = vpop.permute.xlu0 %1532  ;;  %v4810_v51 = vld [vmem:[%s5503_s3] ss:$0 sm:$0xff] }
 0x27e   : > { %1597 = vst.msk [vmem:[#allocation2 + $0xd0] sm:$0xff] %vm1570_vm15, %v1533_v52  ;;  %v1801_v62 = vld [vmem:[#allocation2 + $0x90] sm:$0xff] }
 0x27f   : > { %1780 = vst.msk [vmem:[#allocation2 + $0xd8] sm:$0x7f] %vm1753_vm1, %v1716_v36 }
 0x282   : > { %1705 = vrot.lane.b32.xlu1 %v3589_v54, %s3765_s13  ;;  %1707 = vrot.lane.b32.xlu2 %v3590_v57, %s3765_s13 }
 0x283   : > { %1526 = vrot.lane.b32.xlu0 %v3560_v56, %s3764_s12 }
 0x284   : > { %v1714_v60 = vpop.permute.xlu1 %1713  ;;  %v1666_v40 = vpop.permute.xlu2 %1665 }
 0x285   : > { %1779 = vst.msk [vmem:[#allocation2 + $0xd0] sm:$0xff] %vm1751_vm2, %v1714_v60  ;;  %v1700_v48 = vpop.permute.xlu0 %1699 }
 0x286   : > { %1772 = vst.msk [vmem:[#allocation2 + $0x98] sm:$0x7f] %vm1753_vm1, %v1700_v48  ;;  %v1810_v32 = vld [vmem:[#allocation2 + $0xd8] sm:$0xff] }
 0x28a   : > { %1312 = vrot.lane.b32.xlu1 %v3514_v61, %s3763_s11  ;;  %1326 = vrot.lane.b32.xlu2 %v3551_v63, %s3763_s11 }
 0x28b   : > { %1310 = vrot.lane.b32.xlu0 %v3513_v55, %s3763_s11 }
 0x28c   : > { %v1305_v2 = vpop.permute.xlu1 %1304  ;;  %v1809_v24 = vld [vmem:[#allocation2 + $0xd0] sm:$0xff]  ;;  %v1684_v1 = vpop.permute.xlu2 %1683 }
 0x28d   : > { %1393 = vst.msk [vmem:[#allocation2 + $0x19] sm:$0x7f] %vm1390_vm12, %v1305_v2  ;;  %v1303_v53 = vpop.permute.xlu0 %1302  ;;  %v1802_v4 = vld [vmem:[#allocation2 + $0x98] sm:$0xff]  ;;  %v1828_v5 = vpack.c.bf16 %v1810_v32, %v1809_v24  ;;  %v1813_v32 = vld [vmem:[#allocation2 + $0xf0] sm:$0xff] }
 0x28e   : > { %1392 = vst.msk [vmem:[#allocation2 + $0x11] sm:$0xff] %vm1388_vm11, %v1303_v53  ;;  %v1824_v0 = vpack.c.bf16 %v1802_v4, %v1801_v62 }
 0x28f   : > { %1574 = vst.msk [vmem:[#allocation2 + $0x18] sm:$0xff] %vm1570_vm15, %v1487_v42  ;;  %3618 = vmatmul.msk.bf16.gmra.mxu3 %vm197_vm0, %v1828_v5 }
 0x290   : > { %3614 = vmatmul.msk.bf16.gmra.mxu2 %vm197_vm0, %v1824_v0 }
 0x292   : > { %1492 = vrot.lane.b32.xlu1 %v3513_v55, %s3764_s12  ;;  %1494 = vrot.lane.b32.xlu2 %v3544_v3, %s3764_s12 }
 0x293   : > { %1328 = vrot.lane.b32.xlu0 %v3522_v8, %s3763_s11  ;;  %s5055_s11 = scalar_lea.vmem [#allocation3], %s3504_s8  ;;  %s3707_s8 = sshra.s32 %s3438_s5, 4  ;;  %s3708_s8 = int_to_ptr.hbm [resolvable:$true] %s3707_s8 }
 0x294   : > { %v1485_v6 = vpop.permute.xlu1 %1484  ;;  %v1355_v7 = vpop.permute.xlu2 %1354  ;;  %s3435_s30 = sshll.u32 %s5055_s11, 4  ;;  %s3709_s9 = scalar_lea.hbm %s3708_s8, 64  ;;  %s3436_s30 = int_to_ptr.vmem [resolvable:$true] %s3435_s30 }
 0x295   : > { %1573 = vst.msk [vmem:[#allocation2 + $0x10] sm:$0xff] %vm1570_vm15, %v1485_v6  ;;  %v1321_v37 = vpop.permute.xlu0 %1320  ;;  %p3710_p11 = scmp.ne.s32.totalorder %s3708_s8, %s3709_s9  ;;  %p3714_p0 = scmp.lt.s32.totalorder %s3708_s8, %s5504_s4 }
 0x296   : > { %1401 = vst.msk [vmem:[#allocation2 + $0x59] sm:$0x7f] %vm1390_vm12, %v1321_v37  ;;  %v1814_v37 = vld [vmem:[#allocation2 + $0xf8] sm:$0xff] }
 0x297   : > { %1755 = vst.msk [vmem:[#allocation2 + $0x10] sm:$0xff] %vm1751_vm2, %v1666_v40  ;;  %p3711_p12 = pnand %p3710_p11, %p3832_p5 }
 0x298   : > { %1418 = vst.msk [vmem:[#allocation2 + $0xe1] sm:$0xff] %vm1388_vm11, %v1355_v7 }
 0x299   : > { %p3712_p13 = pneg %p3711_p12 }
 0x29a   : > { %1510 = vrot.lane.b32.xlu1 %v3552_v38, %s3764_s12  ;;  %1673 = vrot.lane.b32.xlu2 %v3573_v49, %s3765_s13 }
 0x29b   : > { %1508 = vrot.lane.b32.xlu0 %v3551_v63, %s3764_s12 }
 0x29c   : > { %v1503_v58 = vpop.permute.xlu1 %1502  ;;  %v1523_v11 = vpop.permute.xlu2 %1522 }
 0x29d   : > { %1582 = vst.msk [vmem:[#allocation2 + $0x58] sm:$0xff] %vm1570_vm15, %v1503_v58  ;;  %v1501_v9 = vpop.permute.xlu0 %1500  ;;  %v1830_v58 = vpack.c.bf16 %v1814_v37, %v1813_v32 }
 0x29e   : > { %1581 = vst.msk [vmem:[#allocation2 + $0x50] sm:$0xff] %vm1570_vm15, %v1501_v9  ;;  %v1785_v19 = vld [vmem:[#allocation2 + $0x10] sm:$0xff] }
 0x29f   : > { %1764 = vst.msk [vmem:[#allocation2 + $0x58] sm:$0x7f] %vm1753_vm1, %v1684_v1 }
 0x2a2   : > { %1689 = vrot.lane.b32.xlu1 %v3581_v59, %s3765_s13  ;;  %1691 = vrot.lane.b32.xlu2 %v3582_v10, %s3765_s13 }
 0x2a3   : > { %1675 = vrot.lane.b32.xlu0 %v3574_v14, %s3765_s13  ;;  %s3713_s13 = scalar_lea.hbm %s5504_s4, 128 }
 0x2a4   : > { %v1682_v12 = vpop.permute.xlu1 %1681  ;;  %v1702_v13 = vpop.permute.xlu2 %1701  ;;  %p3715_p1 = scmp.lt.s32.totalorder %s3713_s13, %s3709_s9 }
 0x2a5   : > { %1763 = vst.msk [vmem:[#allocation2 + $0x50] sm:$0xff] %vm1751_vm2, %v1682_v12  ;;  %v1668_v34 = vpop.permute.xlu0 %1667 }
 0x2a6   : > { %1756 = vst.msk [vmem:[#allocation2 + $0x18] sm:$0x7f] %vm1753_vm1, %v1668_v34  ;;  %v1794_v16 = vld [vmem:[#allocation2 + $0x58] sm:$0xff]  ;;  %p3716_p2 = por %p3715_p1, %p3714_p0 }
 0x2a8   : > { %p3717_p3 = pnand %p3716_p2, %p3712_p13 }
 0x2ac   : > { %v1341_v17 = vpop.permute.xlu1 %1340  ;;  %v1793_v15 = vld [vmem:[#allocation2 + $0x50] sm:$0xff]  ;;  %v1720_v20 = vpop.permute.xlu2 %1719 }
 0x2ad   : > { %1411 = vst.msk [vmem:[#allocation2 + $0xa9] sm:$0x7f] %vm1390_vm12, %v1341_v17  ;;  %v1339_v18 = vpop.permute.xlu0 %1338  ;;  %v1786_v23 = vld [vmem:[#allocation2 + $0x18] sm:$0xff]  ;;  %v1820_v21 = vpack.c.bf16 %v1794_v16, %v1793_v15 }
 0x2ae   : > { %1410 = vst.msk [vmem:[#allocation2 + $0xa1] sm:$0xff] %vm1388_vm11, %v1339_v18  ;;  %v1816_v22 = vpack.c.bf16 %v1786_v23, %v1785_v19 }
 0x2af   : > { %1592 = vst.msk [vmem:[#allocation2 + $0xa8] sm:$0xff] %vm1570_vm15, %v1523_v11  ;;  %3610 = vmatmul.msk.bf16.gmra.mxu1 %vm197_vm0, %v1820_v21 }
 0x2b0   : > { %3606 = vmatmul.msk.bf16.gmra.mxu0 %vm197_vm0, %v1816_v22 }
 0x2b4   : > { %v1521_v27 = vpop.permute.xlu1 %1520  ;;  %v1323_v26 = vpop.permute.xlu2 %1322 }
 0x2b5   : > { %1591 = vst.msk [vmem:[#allocation2 + $0xa0] sm:$0xff] %vm1570_vm15, %v1521_v27  ;;  %v1357_v25 = vpop.permute.xlu0 %1356 }
 0x2b6   : > { %1419 = vst.msk [vmem:[#allocation2 + $0xe9] sm:$0x7f] %vm1390_vm12, %v1357_v25 }
 0x2b7   : > { %1773 = vst.msk [vmem:[#allocation2 + $0xa0] sm:$0xff] %vm1751_vm2, %v1702_v13 }
 0x2b8   : > { %1402 = vst.msk [vmem:[#allocation2 + $0x61] sm:$0xff] %vm1388_vm11, %v1323_v26 }
 0x2bc   : > { %v1539_v30 = vpop.permute.xlu1 %1538  ;;  %v1491_v28 = vpop.permute.xlu2 %1490 }
 0x2bd   : > { %1600 = vst.msk [vmem:[#allocation2 + $0xe8] sm:$0xff] %vm1570_vm15, %v1539_v30  ;;  %v1537_v36 = vpop.permute.xlu0 %1536 }
 0x2be   : > { %1599 = vst.msk [vmem:[#allocation2 + $0xe0] sm:$0xff] %vm1570_vm15, %v1537_v36  ;;  %v1803_v47 = vld [vmem:[#allocation2 + $0xa0] sm:$0xff] }
 0x2bf   : > { %1782 = vst.msk [vmem:[#allocation2 + $0xe8] sm:$0x7f] %vm1753_vm1, %v1720_v20 }
 0x2c4   : > { %v1718_v29 = vpop.permute.xlu1 %1717  ;;  %v1670_v43 = vpop.permute.xlu2 %1669 }
 0x2c5   : > { %1781 = vst.msk [vmem:[#allocation2 + $0xe0] sm:$0xff] %vm1751_vm2, %v1718_v29  ;;  %v1704_v41 = vpop.permute.xlu0 %1703 }
 0x2c6   : > { %1774 = vst.msk [vmem:[#allocation2 + $0xa8] sm:$0x7f] %vm1753_vm1, %v1704_v41  ;;  %v1812_v45 = vld [vmem:[#allocation2 + $0xe8] sm:$0xff] }
 0x2cc   : > { %v1309_v33 = vpop.permute.xlu1 %1308  ;;  %v1811_v44 = vld [vmem:[#allocation2 + $0xe0] sm:$0xff]  ;;  %v1688_v54 = vpop.permute.xlu2 %1687 }
 0x2cd   : > { %1395 = vst.msk [vmem:[#allocation2 + $0x29] sm:$0x7f] %vm1390_vm12, %v1309_v33  ;;  %v1307_v46 = vpop.permute.xlu0 %1306  ;;  %v1804_v31 = vld [vmem:[#allocation2 + $0xa8] sm:$0xff]  ;;  %v1829_v35 = vpack.c.bf16 %v1812_v45, %v1811_v44 }
 0x2ce   : > { %1394 = vst.msk [vmem:[#allocation2 + $0x21] sm:$0xff] %vm1388_vm11, %v1307_v46  ;;  %v1825_v50 = vpack.c.bf16 %v1804_v31, %v1803_v47 }
 0x2cf   : > { %1576 = vst.msk [vmem:[#allocation2 + $0x28] sm:$0xff] %vm1570_vm15, %v1491_v28  ;;  %3619 = vmatmul.msk.bf16.gmra.mxu3 %vm197_vm0, %v1829_v35 }
 0x2d0   : > { %3615 = vmatmul.msk.bf16.gmra.mxu2 %vm197_vm0, %v1825_v50 }
 0x2d2   : > { %v1950_v42 = vpop.f32.mrf.mxu2 }
 0x2d3   : > { %v2010_v52 = vmul.f32 %v4804_v39, %v1950_v42 }
 0x2d4   : > { %v1489_v57 = vpop.permute.xlu1 %1488  ;;  %v4824_v11 = vpop.permute.xlu2 %1524 }
 0x2d5   : > { %v2046_v56 = vadd.f32 %v4810_v51, %v2010_v52  ;;  %1575 = vst.msk [vmem:[#allocation2 + $0x20] sm:$0xff] %vm1570_vm15, %v1489_v57  ;;  %v1325_v60 = vpop.permute.xlu0 %1324 }
 0x2d6   : > { %1403 = vst.msk [vmem:[#allocation2 + $0x69] sm:$0x7f] %vm1390_vm12, %v1325_v60 }
 0x2d7   : > { %v2078_v40 = vmax.f32 %v2046_v56, 0.0  ;;  %1757 = vst.msk [vmem:[#allocation2 + $0x20] sm:$0xff] %vm1751_vm2, %v1670_v43 }
 0x2d9   : > { %v2174_v48 = vrot.slane %v2078_v40, 2  ;;  %v2175_v61 = vrot.slane %v2078_v40, 4  ;;  %v2176_v63 = vrot.slane %v2078_v40, 6  ;;  %v2767_v55 = vsel %vm2318_vm3, %v2078_v40, -inf }
 0x2da   : > { %v2768_v2 = vrot.slane %v2767_v55, 4  ;;  %v1952_v24 = vpop.f32.mrf.mxu2 }
 0x2db   : > { %v2774_v1 = vsel %vm2318_vm3, %v2174_v48, -inf  ;;  %v2781_v53 = vsel %vm2318_vm3, %v2175_v61, -inf  ;;  %v2788_v62 = vsel %vm2318_vm3, %v2176_v63, -inf  ;;  %v2011_v4 = vmul.f32 %v4804_v39, %v1952_v24  ;;  %v1970_v5 = vpop.f32.mrf.mxu3 }
 0x2dc   : > { %v2769_v0 = vmax.f32 %v2767_v55, %v2768_v2  ;;  %v2775_v3 = vrot.slane %v2774_v1, 4  ;;  %v2782_v8 = vrot.slane %v2781_v53, 4  ;;  %v2789_v6 = vrot.slane %v2788_v62, 4  ;;  %v1507_v7 = vpop.permute.xlu1 %1506  ;;  %v4837_v50 = vpop.permute.xlu2 %1707 }
 0x2dd   : > { %v2047_v38 = vadd.f32 %v4810_v51, %v2011_v4  ;;  %1584 = vst.msk [vmem:[#allocation2 + $0x68] sm:$0xff] %vm1570_vm15, %v1507_v7  ;;  %v1505_v49 = vpop.permute.xlu0 %1504  ;;  %v2018_v10 = vmul.f32 %v4804_v39, %v1970_v5 }
 0x2de   : > { %v2776_v9 = vmax.f32 %v2774_v1, %v2775_v3  ;;  %v2783_v59 = vmax.f32 %v2781_v53, %v2782_v8  ;;  %1583 = vst.msk [vmem:[#allocation2 + $0x60] sm:$0xff] %vm1570_vm15, %v1505_v49  ;;  %v2770_v12 = vrot.slane %v2769_v0, 2  ;;  %v2790_v34 = vmax.f32 %v2788_v62, %v2789_v6 }
 0x2df   : > { %v2079_v14 = vmax.f32 %v2047_v38, 0.0  ;;  %1766 = vst.msk [vmem:[#allocation2 + $0x68] sm:$0x7f] %vm1753_vm1, %v1688_v54  ;;  %3620 = vmatmul.msk.bf16.gmra.mxu3 %vm197_vm0, %v1830_v58  ;;  %v2054_v19 = vadd.f32 %v4810_v51, %v2018_v10 }
 0x2e0   : > { %v2777_v13 = vrot.slane %v2776_v9, 2  ;;  %v2784_v18 = vrot.slane %v2783_v59, 2  ;;  %v2771_v25 = vmax.f32 %v2769_v0, %v2770_v12  ;;  %v2791_v30 = vrot.slane %v2790_v34, 2 }
 0x2e1   : > { %v2177_v17 = vrot.slane %v2079_v14, 2  ;;  %v2178_v15 = vrot.slane %v2079_v14, 4  ;;  %v2179_v16 = vrot.slane %v2079_v14, 6  ;;  %v2795_v20 = vsel %vm2318_vm3, %v2079_v14, -inf }
 0x2e2   : > { %v2796_v23 = vrot.slane %v2795_v20, 4  ;;  %v2778_v26 = vmax.f32 %v2776_v9, %v2777_v13  ;;  %v2785_v44 = vmax.f32 %v2783_v59, %v2784_v18  ;;  %v2086_v45 = vmax.f32 %v2054_v19, 0.0  ;;  %v1787_v18 = vld [vmem:[#allocation2 + $0x20] sm:$0xff] }
 0x2e3   : > { %v2802_v21 = vsel %vm2318_vm3, %v2177_v17, -inf  ;;  %v2809_v22 = vsel %vm2318_vm3, %v2178_v15, -inf  ;;  %v2816_v27 = vsel %vm2318_vm3, %v2179_v16, -inf  ;;  %v2772_v56 = vrot.slane %v2771_v25, 1  ;;  %v1972_v3 = vpop.f32.mrf.mxu3 }
 0x2e4   : > { %v1686_v36 = vpop.permute.xlu1 %1685  ;;  %v2797_v28 = vmax.f32 %v2795_v20, %v2796_v23  ;;  %v2803_v29 = vrot.slane %v2802_v21, 4  ;;  %v2810_v41 = vrot.slane %v2809_v22, 4  ;;  %v2817_v43 = vrot.slane %v2816_v27, 4 }
 0x2e5   : > { %1765 = vst.msk [vmem:[#allocation2 + $0x60] sm:$0xff] %vm1751_vm2, %v1686_v36  ;;  %v1672_v33 = vpop.permute.xlu0 %1671  ;;  %v2198_v42 = vrot.slane %v2086_v45, 2  ;;  %v2199_v52 = vrot.slane %v2086_v45, 4  ;;  %v2200_v54 = vrot.slane %v2086_v45, 6  ;;  %v2991_v57 = vsel %vm2318_vm3, %v2086_v45, -inf }
 0x2e6   : > { %1758 = vst.msk [vmem:[#allocation2 + $0x28] sm:$0x7f] %vm1753_vm1, %v1672_v33  ;;  %v2798_v46 = vrot.slane %v2797_v28, 2  ;;  %v2804_v47 = vmax.f32 %v2802_v21, %v2803_v29  ;;  %v2811_v31 = vmax.f32 %v2809_v22, %v2810_v41  ;;  %v2818_v35 = vmax.f32 %v2816_v27, %v2817_v43  ;;  %v1796_v29 = vld [vmem:[#allocation2 + $0x68] sm:$0xff] }
 0x2e7   : > { %v2779_v60 = vrot.slane %v2778_v26, 1  ;;  %v2792_v40 = vmax.f32 %v2790_v34, %v2791_v30  ;;  %v2992_v61 = vrot.slane %v2991_v57, 4  ;;  %v2998_v63 = vsel %vm2318_vm3, %v2198_v42, -inf }
 0x2e8   : > { %v2799_v48 = vmax.f32 %v2797_v28, %v2798_v46  ;;  %v3005_v55 = vsel %vm2318_vm3, %v2199_v52, -inf  ;;  %v3012_v2 = vsel %vm2318_vm3, %v2200_v54, -inf  ;;  %v2786_v24 = vrot.slane %v2785_v44, 1 }
 0x2e9   : > { %v2805_v32 = vrot.slane %v2804_v47, 2  ;;  %v2812_v1 = vrot.slane %v2811_v31, 2  ;;  %v2819_v53 = vrot.slane %v2818_v35, 2  ;;  %v2993_v62 = vmax.f32 %v2991_v57, %v2992_v61 }
 0x2ea   : > { %v2999_v4 = vrot.slane %v2998_v63, 4  ;;  %v3006_v5 = vrot.slane %v3005_v55, 4  ;;  %v3013_v0 = vrot.slane %v3012_v2, 4  ;;  %v2793_v6 = vrot.slane %v2792_v40, 1 }
 0x2eb   : > { %v2800_v7 = vrot.slane %v2799_v48, 1  ;;  %v2994_v38 = vrot.slane %v2993_v62, 2  ;;  %v4845_v14 = vmax.f32 %v2771_v25, %v2772_v56  ;;  %v4847_v12 = vmax.f32 %v2778_v26, %v2779_v60  ;;  %v1327_v26 = vpop.permute.xlu2 %1326 }
 0x2ec   : > { %v1345_v8 = vpop.permute.xlu1 %1344  ;;  %v3000_v49 = vmax.f32 %v2998_v63, %v2999_v4  ;;  %v3007_v58 = vmax.f32 %v3005_v55, %v3006_v5  ;;  %v3014_v9 = vmax.f32 %v3012_v2, %v3013_v0  ;;  %v4849_v13 = vmax.f32 %v2804_v47, %v2805_v32  ;;  %v1795_v19 = vld [vmem:[#allocation2 + $0x60] sm:$0xff]  ;;  %v1930_v27 = vpop.f32.mrf.mxu1  ;;  %1404 = vst.msk [vmem:[#allocation2 + $0x71] sm:$0xff] %vm1388_vm11, %v1327_v26 }
 0x2ed   : > { %1413 = vst.msk [vmem:[#allocation2 + $0xb9] sm:$0x7f] %vm1390_vm12, %v1345_v8  ;;  %v1343_v37 = vpop.permute.xlu0 %1342  ;;  %v1910_v59 = vpop.f32.mrf.mxu0  ;;  %v1788_v10 = vld [vmem:[#allocation2 + $0x28] sm:$0xff]  ;;  %v2019_v34 = vmul.f32 %v4804_v39, %v1972_v3  ;;  %v4854_v17 = vmax.f32 %v2785_v44, %v2786_v24  ;;  %v4856_v15 = vmax.f32 %v2811_v31, %v2812_v1  ;;  %v4858_v16 = vmax.f32 %v2818_v35, %v2819_v53 }
 0x2ee   : > { %1412 = vst.msk [vmem:[#allocation2 + $0xb1] sm:$0xff] %vm1388_vm11, %v1343_v37  ;;  %v4860_v20 = vmax.f32 %v2993_v62, %v2994_v38  ;;  %v4862_v23 = vmax.f32 %v2792_v40, %v2793_v6  ;;  %v1994_v22 = vmul.f32 %v4804_v39, %v1910_v59  ;;  %v1817_v25 = vpack.c.bf16 %v1788_v10, %v1787_v18 }
 0x2ef   : > { %1593 = vst.msk [vmem:[#allocation2 + $0xb0] sm:$0xff] %vm1570_vm15, %v4824_v11  ;;  %v2055_v21 = vadd.f32 %v4810_v51, %v2019_v34  ;;  %v4866_v11 = vmax.f32 %v2799_v48, %v2800_v7  ;;  %v3001_v30 = vrot.slane %v3000_v49, 2  ;;  %v3008_v36 = vrot.slane %v3007_v58, 2 }
 0x2f0   : > { %v3015_v28 = vrot.slane %v3014_v9, 2  ;;  %v2807_v41 = vrot.slane %v4849_v13, 1  ;;  %v2030_v33 = vadd.f32 %v4810_v51, %v1994_v22  ;;  %3607 = vmatmul.msk.bf16.gmra.mxu0 %vm197_vm0, %v1817_v25  ;;  %v1821_v44 = vpack.c.bf16 %v1796_v29, %v1795_v19 }
 0x2f1   : > { %v2087_v43 = vmax.f32 %v2055_v21, 0.0  ;;  %v2814_v45 = vrot.slane %v4856_v15, 1  ;;  %v2821_v46 = vrot.slane %v4858_v16, 1  ;;  %v2996_v47 = vrot.slane %v4860_v20, 1 }
 0x2f2   : > { %v2002_v31 = vmul.f32 %v4804_v39, %v1930_v27  ;;  %3611 = vmatmul.msk.bf16.gmra.mxu1 %vm197_vm0, %v1821_v44  ;;  %v3002_v60 = vmax.f32 %v3000_v49, %v3001_v30  ;;  %v3009_v40 = vmax.f32 %v3007_v58, %v3008_v36  ;;  %v3016_v48 = vmax.f32 %v3014_v9, %v3015_v28 }
 0x2f3   : > { %v2201_v42 = vrot.slane %v2087_v43, 2  ;;  %v2202_v52 = vrot.slane %v2087_v43, 4  ;;  %v2203_v54 = vrot.slane %v2087_v43, 6  ;;  %v3019_v57 = vsel %vm2318_vm3, %v2087_v43, -inf  ;;  %v1495_v8 = vpop.permute.xlu2 %1494 }
 0x2f4   : > { %v1706_v35 = vpop.permute.xlu1 %1705  ;;  %v3020_v61 = vrot.slane %v3019_v57, 4  ;;  %v2062_v24 = vmax.f32 %v2030_v33, 0.0  ;;  %v2038_v18 = vadd.f32 %v4810_v51, %v2002_v31  ;;  %v3003_v30 = vrot.slane %v3002_v60, 1 }
 0x2f5   : > { %1775 = vst.msk [vmem:[#allocation2 + $0xb0] sm:$0xff] %vm1751_vm2, %v1706_v35  ;;  %v1527_v56 = vpop.permute.xlu0 %1526  ;;  %v3026_v63 = vsel %vm2318_vm3, %v2201_v42, -inf  ;;  %v3033_v55 = vsel %vm2318_vm3, %v2202_v52, -inf  ;;  %v3040_v2 = vsel %vm2318_vm3, %v2203_v54, -inf  ;;  %v3010_v36 = vrot.slane %v3009_v40, 1 }
 0x2f6   : > { %1594 = vst.msk [vmem:[#allocation2 + $0xb8] sm:$0xff] %vm1570_vm15, %v1527_v56  ;;  %v3021_v32 = vmax.f32 %v3019_v57, %v3020_v61  ;;  %v3027_v1 = vrot.slane %v3026_v63, 4  ;;  %v3034_v53 = vrot.slane %v3033_v55, 4  ;;  %v3041_v62 = vrot.slane %v3040_v2, 4 }
 0x2f7   : > { %1776 = vst.msk [vmem:[#allocation2 + $0xb8] sm:$0x7f] %vm1753_vm1, %v4837_v50  ;;  %v2126_v4 = vrot.slane %v2062_v24, 2  ;;  %v2127_v5 = vrot.slane %v2062_v24, 4  ;;  %v2128_v0 = vrot.slane %v2062_v24, 6  ;;  %v2319_v3 = vsel %vm2318_vm3, %v2062_v24, -inf }
 0x2f8   : > { %v3022_v6 = vrot.slane %v3021_v32, 2  ;;  %v3028_v7 = vmax.f32 %v3026_v63, %v3027_v1  ;;  %v3035_v37 = vmax.f32 %v3033_v55, %v3034_v53  ;;  %v3042_v38 = vmax.f32 %v3040_v2, %v3041_v62 }
 0x2f9   : > { %v2320_v49 = vrot.slane %v2319_v3, 4  ;;  %v2326_v58 = vsel %vm2318_vm3, %v2126_v4, -inf  ;;  %v2333_v9 = vsel %vm2318_vm3, %v2127_v5, -inf  ;;  %v2340_v50 = vsel %vm2318_vm3, %v2128_v0, -inf }
 0x2fa   : > { %v3029_v59 = vrot.slane %v3028_v7, 2  ;;  %v3036_v10 = vrot.slane %v3035_v37, 2  ;;  %v3043_v34 = vrot.slane %v3042_v38, 2  ;;  %v2327_v22 = vrot.slane %v2326_v58, 4 }
 0x2fb   : > { %v2321_v21 = vmax.f32 %v2319_v3, %v2320_v49  ;;  %v2334_v27 = vrot.slane %v2333_v9, 4  ;;  %v2341_v25 = vrot.slane %v2340_v50, 4  ;;  %v3017_v28 = vrot.slane %v3016_v48, 1 }
 0x2fc   : > { %v1313_v19 = vpop.permute.xlu1 %1312  ;;  %v3023_v29 = vmax.f32 %v3021_v32, %v3022_v6  ;;  %v2328_v33 = vmax.f32 %v2326_v58, %v2327_v22  ;;  %v4896_v31 = vmax.f32 %v4849_v13, %v2807_v41  ;;  %v4899_v42 = vmax.f32 %v4856_v15, %v2814_v45  ;;  %v1674_v41 = vpop.permute.xlu2 %1673  ;;  %v1805_v0 = vld [vmem:[#allocation2 + $0xb0] sm:$0xff] }
 0x2fd   : > { %1397 = vst.msk [vmem:[#allocation2 + $0x39] sm:$0x7f] %vm1390_vm12, %v1313_v19  ;;  %v1311_v26 = vpop.permute.xlu0 %1310  ;;  %v2322_v43 = vrot.slane %v2321_v21, 2  ;;  %v2335_v44 = vmax.f32 %v2333_v9, %v2334_v27  ;;  %v2342_v35 = vmax.f32 %v2340_v50, %v2341_v25  ;;  %v4902_v52 = vmax.f32 %v4858_v16, %v2821_v46 }
 0x2fe   : > { %1396 = vst.msk [vmem:[#allocation2 + $0x31] sm:$0xff] %vm1388_vm11, %v1311_v26  ;;  %v4905_v54 = vmax.f32 %v4860_v20, %v2996_v47  ;;  %v3030_v57 = vmax.f32 %v3028_v7, %v3029_v59  ;;  %v3037_v56 = vmax.f32 %v3035_v37, %v3036_v10  ;;  %v3044_v61 = vmax.f32 %v3042_v38, %v3043_v34  ;;  %v1932_v38 = vpop.f32.mrf.mxu1 }
 0x2ff   : > { %1578 = vst.msk [vmem:[#allocation2 + $0x38] sm:$0xff] %vm1570_vm15, %v1495_v8  ;;  %v2329_v63 = vrot.slane %v2328_v33, 2  ;;  %v4907_v55 = vmax.f32 %v3002_v60, %v3003_v30  ;;  %v4909_v2 = vmax.f32 %v3009_v40, %v3010_v36  ;;  %v4911_v24 = vmax.f32 %v3016_v48, %v3017_v28  ;;  %v1912_v40 = vpop.f32.mrf.mxu0  ;;  %v1806_v48 = vld [vmem:[#allocation2 + $0xb8] sm:$0xff] }
 0x300   : > { %v2070_v13 = vmax.f32 %v2038_v18, 0.0  ;;  %v3024_v15 = vrot.slane %v3023_v29, 1  ;;  %v2323_v45 = vmax.f32 %v2321_v21, %v2322_v43  ;;  %v2336_v32 = vrot.slane %v2335_v44, 2 }
 0x301   : > { %v2343_v16 = vrot.slane %v2342_v35, 2  ;;  %v3031_v62 = vrot.slane %v3030_v57, 1  ;;  %v3038_v4 = vrot.slane %v3037_v56, 1  ;;  %v3045_v60 = vrot.slane %v3044_v61, 1 }
 0x302   : > { %v2150_v46 = vrot.slane %v2070_v13, 2  ;;  %v2151_v1 = vrot.slane %v2070_v13, 4  ;;  %v2152_v20 = vrot.slane %v2070_v13, 6  ;;  %v2543_v47 = vsel %vm2318_vm3, %v2070_v13, -inf }
 0x303   : > { %v2330_v5 = vmax.f32 %v2328_v33, %v2329_v63  ;;  %v2544_v8 = vrot.slane %v2543_v47, 4  ;;  %v2324_v49 = vrot.slane %v2323_v45, 1  ;;  %v2337_v58 = vmax.f32 %v2335_v44, %v2336_v32 }
 0x304   : > { %v1493_v53 = vpop.permute.xlu1 %1492  ;;  %v2550_v6 = vsel %vm2318_vm3, %v2150_v46, -inf  ;;  %v2557_v7 = vsel %vm2318_vm3, %v2151_v1, -inf  ;;  %v2564_v37 = vsel %vm2318_vm3, %v2152_v20, -inf  ;;  %v2344_v9 = vmax.f32 %v2342_v35, %v2343_v16  ;;  %v1692_v16 = vpop.permute.xlu2 %1691 }
 0x305   : > { %1577 = vst.msk [vmem:[#allocation2 + $0x30] sm:$0xff] %vm1570_vm15, %v1493_v53  ;;  %v1329_v3 = vpop.permute.xlu0 %1328  ;;  %v2551_v50 = vrot.slane %v2550_v6, 4  ;;  %v2545_v59 = vmax.f32 %v2543_v47, %v2544_v8  ;;  %v2558_v10 = vrot.slane %v2557_v7, 4  ;;  %v2565_v34 = vrot.slane %v2564_v37, 4 }
 0x306   : > { %1405 = vst.msk [vmem:[#allocation2 + $0x79] sm:$0x7f] %vm1390_vm12, %v1329_v3  ;;  %v1995_v18 = vmul.f32 %v4804_v39, %v1912_v40  ;;  %v2331_v19 = vrot.slane %v2330_v5, 1  ;;  %v2003_v22 = vmul.f32 %v4804_v39, %v1932_v38  ;;  %v1826_v27 = vpack.c.bf16 %v1806_v48, %v1805_v0 }
 0x307   : > { %1759 = vst.msk [vmem:[#allocation2 + $0x30] sm:$0xff] %vm1751_vm2, %v1674_v41  ;;  %v2552_v21 = vmax.f32 %v2550_v6, %v2551_v50  ;;  %v2546_v25 = vrot.slane %v2545_v59, 2  ;;  %v2559_v26 = vmax.f32 %v2557_v7, %v2558_v10  ;;  %v2566_v30 = vmax.f32 %v2564_v37, %v2565_v34 }
 0x308   : > { %v2031_v36 = vadd.f32 %v4810_v51, %v1995_v18  ;;  %v4923_v28 = vmax.f32 %v3023_v29, %v3024_v15  ;;  %v4925_v43 = vmax.f32 %v3030_v57, %v3031_v62  ;;  %v2039_v44 = vadd.f32 %v4810_v51, %v2003_v22  ;;  %3616 = vmatmul.msk.bf16.gmra.mxu2 %vm197_vm0, %v1826_v27 }
 0x309   : > { %v2553_v33 = vrot.slane %v2552_v21, 2  ;;  %v2338_v35 = vrot.slane %v2337_v58, 1  ;;  %v2345_v63 = vrot.slane %v2344_v9, 1  ;;  %v4929_v13 = vmax.f32 %v2545_v59, %v2546_v25 }
 0x30a   : > { %v2063_v41 = vmax.f32 %v2031_v36, 0.0  ;;  %v4931_v46 = vmax.f32 %v3037_v56, %v3038_v4  ;;  %v4933_v1 = vmax.f32 %v3044_v61, %v3045_v60  ;;  %v4935_v29 = vmax.f32 %v2323_v45, %v2324_v49 }
 0x30b   : > { %v2560_v57 = vrot.slane %v2559_v26, 2  ;;  %v4938_v20 = vmax.f32 %v2330_v5, %v2331_v19  ;;  %v4940_v47 = vmax.f32 %v2552_v21, %v2553_v33  ;;  %v2567_v53 = vrot.slane %v2566_v30, 2 }
 0x30c   : > { %v1511_v32 = vpop.permute.xlu1 %1510  ;;  %v2129_v62 = vrot.slane %v2063_v41, 2  ;;  %v2130_v40 = vrot.slane %v2063_v41, 4  ;;  %v2131_v0 = vrot.slane %v2063_v41, 6  ;;  %v2347_v56 = vsel %vm2318_vm3, %v2063_v41, -inf }
 0x30d   : > { %1586 = vst.msk [vmem:[#allocation2 + $0x78] sm:$0xff] %vm1570_vm15, %v1511_v32  ;;  %v1509_v15 = vpop.permute.xlu0 %1508  ;;  %v2071_v61 = vmax.f32 %v2039_v44, 0.0  ;;  %v4945_v45 = vmax.f32 %v2337_v58, %v2338_v35  ;;  %v4947_v4 = vmax.f32 %v2344_v9, %v2345_v63  ;;  %v2548_v60 = vrot.slane %v4929_v13, 1 }
 0x30e   : > { %1585 = vst.msk [vmem:[#allocation2 + $0x70] sm:$0xff] %vm1570_vm15, %v1509_v15  ;;  %v2348_v5 = vrot.slane %v2347_v56, 4  ;;  %v2561_v48 = vmax.f32 %v2559_v26, %v2560_v57  ;;  %v2354_v3 = vsel %vm2318_vm3, %v2129_v62, -inf  ;;  %v2361_v8 = vsel %vm2318_vm3, %v2130_v40, -inf }
 0x30f   : > { %1768 = vst.msk [vmem:[#allocation2 + $0x78] sm:$0x7f] %vm1753_vm1, %v1692_v16  ;;  %v2368_v6 = vsel %vm2318_vm3, %v2131_v0, -inf  ;;  %v2555_v7 = vrot.slane %v4940_v47, 1  ;;  %v2568_v37 = vmax.f32 %v2566_v30, %v2567_v53  ;;  %v2355_v49 = vrot.slane %v2354_v3, 4 }
 0x310   : > { %v2349_v38 = vmax.f32 %v2347_v56, %v2348_v5  ;;  %v2362_v50 = vrot.slane %v2361_v8, 4  ;;  %v2369_v58 = vrot.slane %v2368_v6, 4  ;;  %v2153_v59 = vrot.slane %v2071_v61, 2 }
 0x311   : > { %v2154_v9 = vrot.slane %v2071_v61, 4  ;;  %v2356_v34 = vmax.f32 %v2354_v3, %v2355_v49  ;;  %v2155_v18 = vrot.slane %v2071_v61, 6  ;;  %v2571_v19 = vsel %vm2318_vm3, %v2071_v61, -inf }
 0x312   : > { %v2350_v10 = vrot.slane %v2349_v38, 2  ;;  %v2363_v27 = vmax.f32 %v2361_v8, %v2362_v50  ;;  %v2370_v25 = vmax.f32 %v2368_v6, %v2369_v58  ;;  %v2572_v26 = vrot.slane %v2571_v19, 4  ;;  %v1975_v15 = vpop.f32.mrf.mxu3 }
 0x313   : > { %v1955_v21 = vpop.f32.mrf.mxu2  ;;  %v2578_v36 = vsel %vm2318_vm3, %v2153_v59, -inf  ;;  %v2357_v44 = vrot.slane %v2356_v34, 2  ;;  %v2585_v63 = vsel %vm2318_vm3, %v2154_v9, -inf  ;;  %v2562_v53 = vrot.slane %v2561_v48, 1 }
 0x314   : > { %v1690_v22 = vpop.permute.xlu1 %1689  ;;  %v2351_v33 = vmax.f32 %v2349_v38, %v2350_v10  ;;  %v2579_v35 = vrot.slane %v2578_v36, 4  ;;  %v2364_v41 = vrot.slane %v2363_v27, 2  ;;  %v2371_v32 = vrot.slane %v2370_v25, 2 }
 0x315   : > { %1767 = vst.msk [vmem:[#allocation2 + $0x70] sm:$0xff] %vm1751_vm2, %v1690_v22  ;;  %v1676_v30 = vpop.permute.xlu0 %1675  ;;  %v2573_v16 = vmax.f32 %v2571_v19, %v2572_v26  ;;  %v2586_v57 = vrot.slane %v2585_v63, 4  ;;  %v2358_v62 = vmax.f32 %v2356_v34, %v2357_v44  ;;  %v2592_v0 = vsel %vm2318_vm3, %v2155_v18, -inf }
 0x316   : > { %1760 = vst.msk [vmem:[#allocation2 + $0x38] sm:$0x7f] %vm1753_vm1, %v1676_v30  ;;  %v2580_v40 = vmax.f32 %v2578_v36, %v2579_v35  ;;  %v2365_v56 = vmax.f32 %v2363_v27, %v2364_v41  ;;  %v2372_v61 = vmax.f32 %v2370_v25, %v2371_v32  ;;  %v2569_v8 = vrot.slane %v2568_v37, 1 }
 0x317   : > { %v2574_v5 = vrot.slane %v2573_v16, 2  ;;  %v2587_v3 = vmax.f32 %v2585_v63, %v2586_v57  ;;  %v2352_v6 = vrot.slane %v2351_v33, 1  ;;  %v2593_v49 = vrot.slane %v2592_v0, 4  ;;  %v1789_v57 = vld [vmem:[#allocation2 + $0x30] sm:$0xff] }
 0x318   : > { %v2581_v38 = vrot.slane %v2580_v40, 2  ;;  %v2359_v50 = vrot.slane %v2358_v62, 1  ;;  %v2366_v58 = vrot.slane %v2365_v56, 1  ;;  %v2373_v10 = vrot.slane %v2372_v61, 1 }
 0x319   : > { %v2575_v59 = vmax.f32 %v2573_v16, %v2574_v5  ;;  %v2588_v9 = vrot.slane %v2587_v3, 2  ;;  %v2594_v22 = vmax.f32 %v2592_v0, %v2593_v49  ;;  %v2012_v34 = vmul.f32 %v4804_v39, %v1955_v21 }
 0x31a   : > { %v2582_v19 = vmax.f32 %v2580_v40, %v2581_v38  ;;  %v4962_v26 = vmax.f32 %v4929_v13, %v2548_v60  ;;  %v4965_v18 = vmax.f32 %v4940_v47, %v2555_v7  ;;  %v4967_v36 = vmax.f32 %v2561_v48, %v2562_v53  ;;  %v1977_v0 = vpop.f32.mrf.mxu3 }
 0x31b   : > { %v2576_v27 = vrot.slane %v2575_v59, 1  ;;  %v2589_v25 = vmax.f32 %v2587_v3, %v2588_v9  ;;  %v2595_v44 = vrot.slane %v2594_v22, 2  ;;  %v2048_v35 = vadd.f32 %v4810_v51, %v2012_v34  ;;  %v1957_v63 = vpop.f32.mrf.mxu2 }
 0x31c   : > { %v2583_v30 = vrot.slane %v2582_v19, 1  ;;  %v4970_v32 = vmax.f32 %v2568_v37, %v2569_v8  ;;  %v4972_v16 = vmax.f32 %v2351_v33, %v2352_v6  ;;  %v4974_v21 = vmax.f32 %v2358_v62, %v2359_v50 }
 0x31d   : > { %v1790_v41 = vld [vmem:[#allocation2 + $0x38] sm:$0xff]  ;;  %v2590_v13 = vrot.slane %v2589_v25, 1  ;;  %v4976_v60 = vmax.f32 %v2365_v56, %v2366_v58  ;;  %v4978_v47 = vmax.f32 %v2372_v61, %v2373_v10  ;;  %v2080_v7 = vmax.f32 %v2048_v35, 0.0 }
 0x31e   : > { %v2020_v48 = vmul.f32 %v4804_v39, %v1975_v15  ;;  %v4981_v53 = vmax.f32 %v2575_v59, %v2576_v27  ;;  %v4983_v40 = vmax.f32 %v2582_v19, %v2583_v30  ;;  %v2013_v37 = vmul.f32 %v4804_v39, %v1957_v63 }
 0x31f   : > { %v1818_v33 = vpack.c.bf16 %v1790_v41, %v1789_v57  ;;  %v4986_v5 = vmax.f32 %v2594_v22, %v2595_v44  ;;  %v2180_v62 = vrot.slane %v2080_v7, 2  ;;  %v2181_v3 = vrot.slane %v2080_v7, 4 }
 0x320   : > { %5507 = vst [vmem:[#allocation6_spill] sm:$0xff] %v4983_v40  ;;  %v2182_v56 = vrot.slane %v2080_v7, 6  ;;  %v4988_v8 = vmax.f32 %v2589_v25, %v2590_v13  ;;  %v2823_v61 = vsel %vm2318_vm3, %v2080_v7, -inf  ;;  %v2056_v15 = vadd.f32 %v4810_v51, %v2020_v48 }
 0x321   : > { %v2049_v6 = vadd.f32 %v4810_v51, %v2013_v37  ;;  %3608 = vmatmul.msk.bf16.gmra.mxu0 %vm197_vm0, %v1818_v33  ;;  %v2824_v38 = vrot.slane %v2823_v61, 4  ;;  %v2830_v49 = vsel %vm2318_vm3, %v2180_v62, -inf  ;;  %v2837_v50 = vsel %vm2318_vm3, %v2181_v3, -inf }
 0x322   : > { %5508 = vst [vmem:[#allocation7_spill] sm:$0xff] %v4988_v8  ;;  %v2021_v58 = vmul.f32 %v4804_v39, %v1977_v0  ;;  %v2831_v59 = vrot.slane %v2830_v49, 4  ;;  %v2838_v9 = vrot.slane %v2837_v50, 4  ;;  %v2844_v10 = vsel %vm2318_vm3, %v2182_v56, -inf }
 0x323   : > { %v2088_v19 = vmax.f32 %v2056_v15, 0.0  ;;  %v2825_v34 = vmax.f32 %v2823_v61, %v2824_v38  ;;  %v2845_v27 = vrot.slane %v2844_v10, 4  ;;  %v4999_v25 = vmax.f32 %v2049_v6, 0.0 }
 0x324   : > { %v2832_v30 = vmax.f32 %v2830_v49, %v2831_v59  ;;  %v2839_v44 = vmax.f32 %v2837_v50, %v2838_v9 }
 0x325   : > { %v2204_v35 = vrot.slane %v2088_v19, 2  ;;  %v2205_v63 = vrot.slane %v2088_v19, 4  ;;  %v2826_v41 = vrot.slane %v2825_v34, 2  ;;  %v2846_v13 = vmax.f32 %v2844_v10, %v2845_v27 }
 0x326   : > { %v2206_v7 = vrot.slane %v2088_v19, 6  ;;  %v3047_v39 = vsel %vm2318_vm3, %v2088_v19, -inf  ;;  %v2833_v48 = vrot.slane %v2832_v30, 2  ;;  %v2840_v57 = vrot.slane %v2839_v44, 2 }
 0x327   : > { %v3048_v37 = vrot.slane %v3047_v39, 4  ;;  %v3054_v0 = vsel %vm2318_vm3, %v2204_v35, -inf  ;;  %v2827_v33 = vmax.f32 %v2825_v34, %v2826_v41  ;;  %v2847_v62 = vrot.slane %v2846_v13, 2 }
 0x328   : > { %v3055_v3 = vrot.slane %v3054_v0, 4  ;;  %v3061_v56 = vsel %vm2318_vm3, %v2205_v63, -inf  ;;  %v2834_v61 = vmax.f32 %v2832_v30, %v2833_v48  ;;  %v2841_v15 = vmax.f32 %v2839_v44, %v2840_v57 }
 0x329   : > { %v3049_v6 = vmax.f32 %v3047_v39, %v3048_v37  ;;  %v3062_v38 = vrot.slane %v3061_v56, 4  ;;  %v2828_v49 = vrot.slane %v2827_v33, 1  ;;  %v2848_v50 = vmax.f32 %v2846_v13, %v2847_v62 }
 0x32a   : > { %v3056_v59 = vmax.f32 %v3054_v0, %v3055_v3  ;;  %v3068_v9 = vsel %vm2318_vm3, %v2206_v7, -inf  ;;  %v2835_v10 = vrot.slane %v2834_v61, 1  ;;  %v2842_v19 = vrot.slane %v2841_v15, 1 }
 0x32b   : > { %v3050_v27 = vrot.slane %v3049_v6, 2  ;;  %v3063_v22 = vmax.f32 %v3061_v56, %v3062_v38  ;;  %v2829_v35 = vmax.f32 %v2827_v33, %v2828_v49  ;;  %v2849_v34 = vrot.slane %v2848_v50, 1 }
 0x32c   : > { %v3057_v41 = vrot.slane %v3056_v59, 2  ;;  %v3069_v8 = vrot.slane %v3068_v9, 4  ;;  %v2836_v40 = vmax.f32 %v2834_v61, %v2835_v10  ;;  %v2843_v63 = vmax.f32 %v2841_v15, %v2842_v19 }
 0x32d   : > { %v3051_v30 = vmax.f32 %v3049_v6, %v3050_v27  ;;  %v3064_v44 = vrot.slane %v3063_v22, 2  ;;  %v2850_v39 = vmax.f32 %v2848_v50, %v2849_v34  ;;  %v3247_v48 = vmax.f32 %v4845_v14, %v2829_v35 }
 0x32e   : > { %v3058_v13 = vmax.f32 %v3056_v59, %v3057_v41  ;;  %v3070_v57 = vmax.f32 %v3068_v9, %v3069_v8  ;;  %v3248_v7 = vmax.f32 %v4847_v12, %v2836_v40  ;;  %v3249_v37 = vmax.f32 %v4854_v17, %v2843_v63 }
 0x32f   : > { %v3052_v0 = vrot.slane %v3051_v30, 1  ;;  %v3065_v62 = vmax.f32 %v3063_v22, %v3064_v44  ;;  %v2183_v56 = vrot.slane %v4999_v25, 2  ;;  %v2057_v61 = vadd.f32 %v4810_v51, %v2021_v58 }
 0x330   : > { %v3059_v33 = vrot.slane %v3058_v13, 1  ;;  %v3071_v3 = vrot.slane %v3070_v57, 2  ;;  %v3378_v15 = vsel %vm3343_vm4, %v3248_v7, %v3247_v48  ;;  %v2184_v14 = vrot.slane %v4999_v25, 4 }
 0x331   : > { %v3053_v6 = vmax.f32 %v3051_v30, %v3052_v0  ;;  %v3066_v38 = vrot.slane %v3065_v62, 1  ;;  %v3250_v8 = vmax.f32 %v4862_v23, %v2850_v39  ;;  %v2185_v17 = vrot.slane %v4999_v25, 6  ;;  %v1798_v0 = vld [vmem:[#allocation2 + $0x78] sm:$0xff] }
 0x332   : > { %v3060_v49 = vmax.f32 %v3058_v13, %v3059_v33  ;;  %v3072_v12 = vmax.f32 %v3070_v57, %v3071_v3  ;;  %v3379_v40 = vsel %vm3345_vm5, %v3249_v37, %v3378_v15  ;;  %v2851_v51 = vsel %vm2318_vm3, %v4999_v25, -inf }
 0x333   : > { %v3067_v22 = vmax.f32 %v3065_v62, %v3066_v38  ;;  %v3263_v50 = vmax.f32 %v4905_v54, %v3053_v6  ;;  %v2852_v9 = vrot.slane %v2851_v51, 4  ;;  %v2858_v10 = vsel %vm2318_vm3, %v2183_v56, -inf  ;;  %v1915_v62 = vpop.f32.mrf.mxu0 }
 0x334   : > { %v3073_v58 = vrot.slane %v3072_v12, 1  ;;  %v3264_v59 = vmax.f32 %v4907_v55, %v3060_v49  ;;  %v2859_v19 = vrot.slane %v2858_v10, 4  ;;  %v2865_v27 = vsel %vm2318_vm3, %v2184_v14, -inf }
 0x335   : > { %v3265_v23 = vmax.f32 %v4909_v2, %v3067_v22  ;;  %v2872_v35 = vsel %vm2318_vm3, %v2185_v17, -inf  ;;  %v2853_v41 = vmax.f32 %v2851_v51, %v2852_v9  ;;  %v2866_v63 = vrot.slane %v2865_v27, 4  ;;  %v1797_v2 = vld [vmem:[#allocation2 + $0x70] sm:$0xff] }
 0x336   : > { %v5023_v34 = vmax.f32 %v3072_v12, %v3073_v58  ;;  %v3392_v54 = vsel %vm3343_vm4, %v3264_v59, %v3263_v50  ;;  %v3380_v25 = vsel %vm3347_vm6, %v3250_v8, %v3379_v40  ;;  %v2860_v30 = vmax.f32 %v2858_v10, %v2859_v19  ;;  %v1935_v8 = vpop.f32.mrf.mxu1 }
 0x337   : > { %v5028_v55 = vsel %vm3345_vm5, %v3265_v23, %v3392_v54  ;;  %v2873_v44 = vrot.slane %v2872_v35, 4  ;;  %v2854_v48 = vrot.slane %v2853_v41, 2  ;;  %v2867_v13 = vmax.f32 %v2865_v27, %v2866_v63 }
 0x338   : > { %v3266_v39 = vmax.f32 %v4911_v24, %v5023_v34  ;;  %v2861_v57 = vrot.slane %v2860_v30, 2  ;;  %v2089_v37 = vmax.f32 %v2057_v61, 0.0  ;;  %v1822_v56 = vpack.c.bf16 %v1798_v0, %v1797_v2 }
 0x339   : > { %v2874_v7 = vmax.f32 %v2872_v35, %v2873_v44  ;;  %v2855_v33 = vmax.f32 %v2853_v41, %v2854_v48  ;;  %v2868_v3 = vrot.slane %v2867_v13, 2 }
 0x33a   : > { %v2862_v15 = vmax.f32 %v2860_v30, %v2861_v57  ;;  %v2207_v38 = vrot.slane %v2089_v37, 2  ;;  %v2208_v14 = vrot.slane %v2089_v37, 4  ;;  %v2209_v17 = vrot.slane %v2089_v37, 6  ;;  %3612 = vmatmul.msk.bf16.gmra.mxu1 %vm197_vm0, %v1822_v56 }
 0x33b   : > { %v2875_v6 = vrot.slane %v2874_v7, 2  ;;  %v2856_v49 = vrot.slane %v2855_v33, 1  ;;  %v2869_v12 = vmax.f32 %v2867_v13, %v2868_v3  ;;  %v3075_v40 = vsel %vm2318_vm3, %v2089_v37, -inf }
 0x33c   : > { %v2863_v61 = vrot.slane %v2862_v15, 1  ;;  %v3076_v50 = vrot.slane %v3075_v40, 4  ;;  %v3082_v51 = vsel %vm2318_vm3, %v2207_v38, -inf  ;;  %v3089_v10 = vsel %vm2318_vm3, %v2208_v14, -inf }
 0x33d   : > { %v2876_v22 = vmax.f32 %v2874_v7, %v2875_v6  ;;  %v2857_v58 = vmax.f32 %v2855_v33, %v2856_v49  ;;  %v2870_v59 = vrot.slane %v2869_v12, 1  ;;  %v3083_v9 = vrot.slane %v3082_v51, 4 }
 0x33e   : > { %v2864_v23 = vmax.f32 %v2862_v15, %v2863_v61  ;;  %v3077_v27 = vmax.f32 %v3075_v40, %v3076_v50  ;;  %v3090_v35 = vrot.slane %v3089_v10, 4  ;;  %v3096_v30 = vsel %vm2318_vm3, %v2209_v17, -inf  ;;  %v1917_v15 = vpop.f32.mrf.mxu0  ;;  %v1937_v17 = vpop.f32.mrf.mxu1 }
 0x33f   : > { %v2877_v19 = vrot.slane %v2876_v22, 1  ;;  %v2871_v54 = vmax.f32 %v2869_v12, %v2870_v59  ;;  %v3251_v41 = vmax.f32 %v4866_v11, %v2857_v58  ;;  %v3084_v63 = vmax.f32 %v3082_v51, %v3083_v9 }
 0x340   : > { %v3252_v2 = vmax.f32 %v4896_v31, %v2864_v23  ;;  %v3078_v48 = vrot.slane %v3077_v27, 2  ;;  %v3091_v13 = vmax.f32 %v3089_v10, %v3090_v35  ;;  %v3097_v0 = vrot.slane %v3096_v30, 4  ;;  %v5050_v31 = vld [vmem:[%s5502_s2] ss:$0 sm:$0xff] }
 0x341   : > { %v2878_v44 = vmax.f32 %v2876_v22, %v2877_v19  ;;  %v3253_v57 = vmax.f32 %v4899_v42, %v2871_v54  ;;  %v3381_v7 = vsel %vm3349_vm7, %v3251_v41, %v3380_v25  ;;  %v3085_v37 = vrot.slane %v3084_v63, 2  ;;  %v5061_v22 = vld [vmem:[%s5503_s3] ss:$0 sm:$0xff] }
 0x342   : > { %v3382_v3 = vsel %vm3351_vm8, %v3252_v2, %v3381_v7  ;;  %v3079_v56 = vmax.f32 %v3077_v27, %v3078_v48  ;;  %v3092_v11 = vrot.slane %v3091_v13, 2  ;;  %v3098_v14 = vmax.f32 %v3096_v30, %v3097_v0 }
 0x343   : > { %v3254_v33 = vmax.f32 %v4902_v52, %v2878_v44  ;;  %v3383_v6 = vsel %vm3353_vm9, %v3253_v57, %v3382_v3  ;;  %v3086_v38 = vmax.f32 %v3084_v63, %v3085_v37  ;;  %v1996_v42 = vmul.f32 %v5050_v31, %v1915_v62 }
 0x344   : > { %v3080_v49 = vrot.slane %v3079_v56, 1  ;;  %v3093_v52 = vmax.f32 %v3091_v13, %v3092_v11  ;;  %v2004_v12 = vmul.f32 %v5050_v31, %v1935_v8  ;;  %v3099_v61 = vrot.slane %v3098_v14, 2 }
 0x345   : > { %v3384_v25 = vsel %vm3355_vm10, %v3254_v33, %v3383_v6  ;;  %v3087_v40 = vrot.slane %v3086_v38, 1  ;;  %v2032_v62 = vadd.f32 %v5061_v22, %v1996_v42  ;;  %v1997_v50 = vmul.f32 %v5050_v31, %v1917_v15 }
 0x346   : > { %3418 = vst [vmem:[%s5055_s11 + $0x20] sm:$0xff] %v3384_v25  ;;  %v3394_v8 = vsel %vm3347_vm6, %v3266_v39, %v5028_v55  ;;  %v3081_v51 = vmax.f32 %v3079_v56, %v3080_v49  ;;  %v3094_v58 = vrot.slane %v3093_v52, 1  ;;  %v2040_v59 = vadd.f32 %v5061_v22, %v2004_v12 }
 0x347   : > { %v3088_v9 = vmax.f32 %v3086_v38, %v3087_v40  ;;  %v3100_v10 = vmax.f32 %v3098_v14, %v3099_v61  ;;  %v2064_v23 = vmax.f32 %v2032_v62, 0.0  ;;  %v5072_v19 = vmul.f32 %v5050_v31, %v1937_v17 }
 0x348   : > { %v3095_v27 = vmax.f32 %v3093_v52, %v3094_v58  ;;  %v3267_v35 = vmax.f32 %v4923_v28, %v3081_v51  ;;  %v2072_v54 = vmax.f32 %v2040_v59, 0.0  ;;  %v5076_v41 = vadd.f32 %v5061_v22, %v1997_v50 }
 0x349   : > { %v3101_v24 = vrot.slane %v3100_v10, 1  ;;  %v3268_v34 = vmax.f32 %v4925_v43, %v3088_v9  ;;  %v2132_v55 = vrot.slane %v2064_v23, 2  ;;  %v2133_v39 = vrot.slane %v2064_v23, 4 }
 0x34a   : > { %v3269_v63 = vmax.f32 %v4931_v46, %v3095_v27  ;;  %v3395_v30 = vsel %vm3349_vm7, %v3267_v35, %v3394_v8  ;;  %v2134_v44 = vrot.slane %v2064_v23, 6  ;;  %v2375_v2 = vsel %vm2318_vm3, %v2064_v23, -inf }
 0x34b   : > { %v3102_v48 = vmax.f32 %v3100_v10, %v3101_v24  ;;  %v3396_v13 = vsel %vm3351_vm8, %v3268_v34, %v3395_v30  ;;  %v2376_v28 = vrot.slane %v2375_v2, 4  ;;  %v2382_v57 = vsel %vm2318_vm3, %v2132_v55, -inf }
 0x34c   : > { %v3397_v7 = vsel %vm3353_vm9, %v3269_v63, %v3396_v13  ;;  %v2383_v37 = vrot.slane %v2382_v57, 4  ;;  %v2389_v43 = vsel %vm2318_vm3, %v2133_v39, -inf  ;;  %v2396_v0 = vsel %vm2318_vm3, %v2134_v44, -inf }
 0x34d   : > { %v3270_v46 = vmax.f32 %v4933_v1, %v3102_v48  ;;  %v2377_v33 = vmax.f32 %v2375_v2, %v2376_v28  ;;  %v2390_v3 = vrot.slane %v2389_v43, 4  ;;  %v2397_v56 = vrot.slane %v2396_v0, 4 }
 0x34e   : > { %v2384_v11 = vmax.f32 %v2382_v57, %v2383_v37  ;;  %v2156_v15 = vrot.slane %v2072_v54, 2  ;;  %v2157_v6 = vrot.slane %v2072_v54, 4  ;;  %v2158_v38 = vrot.slane %v2072_v54, 6 }
 0x34f   : > { %v3398_v14 = vsel %vm3355_vm10, %v3270_v46, %v3397_v7  ;;  %v2378_v42 = vrot.slane %v2377_v33, 2  ;;  %v2391_v25 = vmax.f32 %v2389_v43, %v2390_v3  ;;  %v2398_v49 = vmax.f32 %v2396_v0, %v2397_v56 }
 0x350   : > { %3420 = vst [vmem:[%s5055_s11 + $0x30] sm:$0xff] %v3398_v14  ;;  %v2385_v52 = vrot.slane %v2384_v11, 2  ;;  %v2599_v12 = vsel %vm2318_vm3, %v2072_v54, -inf  ;;  %v2606_v17 = vsel %vm2318_vm3, %v2156_v15, -inf  ;;  %v2613_v1 = vsel %vm2318_vm3, %v2157_v6, -inf }
 0x351   : > { %v2379_v40 = vmax.f32 %v2377_v33, %v2378_v42  ;;  %v2392_v61 = vrot.slane %v2391_v25, 2  ;;  %v2399_v62 = vrot.slane %v2398_v49, 2  ;;  %v2600_v50 = vrot.slane %v2599_v12, 4 }
 0x352   : > { %v2386_v8 = vmax.f32 %v2384_v11, %v2385_v52  ;;  %v2607_v51 = vrot.slane %v2606_v17, 4  ;;  %v2614_v58 = vrot.slane %v2613_v1, 4  ;;  %v2620_v59 = vsel %vm2318_vm3, %v2158_v38, -inf }
 0x353   : > { %v2380_v9 = vrot.slane %v2379_v40, 1  ;;  %v2393_v10 = vmax.f32 %v2391_v25, %v2392_v61  ;;  %v2400_v23 = vmax.f32 %v2398_v49, %v2399_v62  ;;  %v2601_v27 = vmax.f32 %v2599_v12, %v2600_v50 }
 0x354   : > { %v2387_v35 = vrot.slane %v2386_v8, 1  ;;  %v2608_v24 = vmax.f32 %v2606_v17, %v2607_v51  ;;  %v2615_v54 = vmax.f32 %v2613_v1, %v2614_v58  ;;  %v2621_v34 = vrot.slane %v2620_v59, 4 }
 0x355   : > { %v2381_v55 = vmax.f32 %v2379_v40, %v2380_v9  ;;  %v2394_v39 = vrot.slane %v2393_v10, 1  ;;  %v2401_v63 = vrot.slane %v2400_v23, 1  ;;  %v2602_v30 = vrot.slane %v2601_v27, 2 }
 0x356   : > { %v2388_v44 = vmax.f32 %v2386_v8, %v2387_v35  ;;  %v2609_v2 = vrot.slane %v2608_v24, 2  ;;  %v2616_v48 = vrot.slane %v2615_v54, 2  ;;  %v2622_v13 = vmax.f32 %v2620_v59, %v2621_v34 }
 0x357   : > { %v2395_v28 = vmax.f32 %v2393_v10, %v2394_v39  ;;  %v2402_v57 = vmax.f32 %v2400_v23, %v2401_v63  ;;  %v3215_v7 = vmax.f32 %v4935_v29, %v2381_v55  ;;  %v2603_v37 = vmax.f32 %v2601_v27, %v2602_v30 }
 0x358   : > { %v3216_v43 = vmax.f32 %v4938_v20, %v2388_v44  ;;  %v2610_v0 = vmax.f32 %v2608_v24, %v2609_v2  ;;  %v2617_v46 = vmax.f32 %v2615_v54, %v2616_v48  ;;  %v2623_v33 = vrot.slane %v2622_v13, 2 }
 0x359   : > { %v3217_v3 = vmax.f32 %v4945_v45, %v2395_v28  ;;  %v2604_v56 = vrot.slane %v2603_v37, 1  ;;  %v2065_v11 = vmax.f32 %v5076_v41, 0.0  ;;  %v2041_v15 = vadd.f32 %v5061_v22, %v5072_v19 }
 0x35a   : > { %v3344_v6 = vsel %vm3343_vm4, %v3216_v43, %v3215_v7  ;;  %v2611_v38 = vrot.slane %v2610_v0, 1  ;;  %v2618_v14 = vrot.slane %v2617_v46, 1  ;;  %v2624_v42 = vmax.f32 %v2622_v13, %v2623_v33 }
 0x35b   : > { %v3218_v29 = vmax.f32 %v4947_v4, %v2402_v57  ;;  %v2605_v25 = vmax.f32 %v2603_v37, %v2604_v56  ;;  %v2135_v20 = vrot.slane %v2065_v11, 2  ;;  %v2136_v49 = vrot.slane %v2065_v11, 4 }
 0x35c   : > { %v3346_v52 = vsel %vm3345_vm5, %v3217_v3, %v3344_v6  ;;  %v2612_v12 = vmax.f32 %v2610_v0, %v2611_v38  ;;  %v2619_v45 = vmax.f32 %v2617_v46, %v2618_v14  ;;  %v2625_v17 = vrot.slane %v2624_v42, 1  ;;  %v1960_v0 = vpop.f32.mrf.mxu2 }
 0x35d   : > { %v3231_v41 = vmax.f32 %v4962_v26, %v2605_v25  ;;  %v2137_v1 = vrot.slane %v2065_v11, 6  ;;  %v2403_v19 = vsel %vm2318_vm3, %v2065_v11, -inf  ;;  %v2410_v40 = vsel %vm2318_vm3, %v2135_v20, -inf  ;;  %v1980_v11 = vpop.f32.mrf.mxu3 }
 0x35e   : > { %v5106_v61 = vmax.f32 %v2624_v42, %v2625_v17  ;;  %v3232_v62 = vmax.f32 %v4965_v18, %v2612_v12  ;;  %v3233_v4 = vmax.f32 %v4967_v36, %v2619_v45  ;;  %v2404_v50 = vrot.slane %v2403_v19, 4 }
 0x35f   : > { %v2411_v8 = vrot.slane %v2410_v40, 4  ;;  %v2417_v51 = vsel %vm2318_vm3, %v2136_v49, -inf  ;;  %v2424_v58 = vsel %vm2318_vm3, %v2137_v1, -inf  ;;  %v2073_v59 = vmax.f32 %v2041_v15, 0.0 }
 0x360   : > { %v3348_v26 = vsel %vm3347_vm6, %v3218_v29, %v3346_v52  ;;  %v3364_v9 = vsel %vm3343_vm4, %v3232_v62, %v3231_v41  ;;  %v2405_v10 = vmax.f32 %v2403_v19, %v2404_v50  ;;  %v2418_v23 = vrot.slane %v2417_v51, 4 }
 0x361   : > { %v3234_v27 = vmax.f32 %v4970_v32, %v5106_v61  ;;  %v2412_v35 = vmax.f32 %v2410_v40, %v2411_v8  ;;  %v2425_v18 = vrot.slane %v2424_v58, 4  ;;  %v2159_v24 = vrot.slane %v2073_v59, 2 }
 0x362   : > { %v5117_v36 = vsel %vm3345_vm5, %v3233_v4, %v3364_v9  ;;  %v2406_v54 = vrot.slane %v2405_v10, 2  ;;  %v2419_v34 = vmax.f32 %v2417_v51, %v2418_v23  ;;  %v2160_v55 = vrot.slane %v2073_v59, 4 }
 0x363   : > { %v2413_v39 = vrot.slane %v2412_v35, 2  ;;  %v2426_v63 = vmax.f32 %v2424_v58, %v2425_v18  ;;  %v2161_v30 = vrot.slane %v2073_v59, 6  ;;  %v2627_v44 = vsel %vm2318_vm3, %v2073_v59, -inf }
 0x364   : > { %v2407_v2 = vmax.f32 %v2405_v10, %v2406_v54  ;;  %v2420_v48 = vrot.slane %v2419_v34, 2  ;;  %v2628_v13 = vrot.slane %v2627_v44, 4  ;;  %v2634_v28 = vsel %vm2318_vm3, %v2159_v24, -inf }
 0x365   : > { %v2414_v57 = vmax.f32 %v2412_v35, %v2413_v39  ;;  %v2427_v7 = vrot.slane %v2426_v63, 2  ;;  %v2635_v37 = vrot.slane %v2634_v28, 4  ;;  %v2641_v43 = vsel %vm2318_vm3, %v2160_v55, -inf  ;;  %v1962_v55 = vpop.f32.mrf.mxu2 }
 0x366   : > { %v2408_v46 = vrot.slane %v2407_v2, 1  ;;  %v2421_v33 = vmax.f32 %v2419_v34, %v2420_v48  ;;  %v2629_v3 = vmax.f32 %v2627_v44, %v2628_v13  ;;  %v2642_v56 = vrot.slane %v2641_v43, 4 }
 0x367   : > { %v2415_v15 = vrot.slane %v2414_v57, 1  ;;  %v2428_v6 = vmax.f32 %v2426_v63, %v2427_v7  ;;  %v2636_v38 = vmax.f32 %v2634_v28, %v2635_v37  ;;  %v2648_v14 = vsel %vm2318_vm3, %v2161_v30, -inf  ;;  %v5510_v28 = vld [vmem:[#allocation6_spill] sm:$0xff]  ;;  %v5511_v37 = vld [vmem:[#allocation7_spill] sm:$0xff] }
 0x368   : > { %v2409_v42 = vmax.f32 %v2407_v2, %v2408_v46  ;;  %v2422_v29 = vrot.slane %v2421_v33, 1  ;;  %v2630_v25 = vrot.slane %v2629_v3, 2  ;;  %v2643_v20 = vmax.f32 %v2641_v43, %v2642_v56  ;;  %v1982_v2 = vpop.f32.mrf.mxu3 }
 0x369   : > { %v2416_v49 = vmax.f32 %v2414_v57, %v2415_v15  ;;  %v2429_v52 = vrot.slane %v2428_v6, 1  ;;  %v2637_v12 = vrot.slane %v2636_v38, 2  ;;  %v2649_v45 = vrot.slane %v2648_v14, 4 }
 0x36a   : > { %v2423_v17 = vmax.f32 %v2421_v33, %v2422_v29  ;;  %v3219_v41 = vmax.f32 %v4972_v16, %v2409_v42  ;;  %v2631_v1 = vmax.f32 %v2629_v3, %v2630_v25  ;;  %v2644_v19 = vrot.slane %v2643_v20, 2 }
 0x36b   : > { %v2430_v40 = vmax.f32 %v2428_v6, %v2429_v52  ;;  %v3220_v62 = vmax.f32 %v4974_v21, %v2416_v49  ;;  %v2638_v4 = vmax.f32 %v2636_v38, %v2637_v12  ;;  %v2650_v50 = vmax.f32 %v2648_v14, %v2649_v45 }
 0x36c   : > { %v3221_v8 = vmax.f32 %v4976_v60, %v2423_v17  ;;  %v3350_v51 = vsel %vm3349_vm7, %v3219_v41, %v3348_v26  ;;  %v2632_v58 = vrot.slane %v2631_v1, 1  ;;  %v2645_v59 = vmax.f32 %v2643_v20, %v2644_v19 }
 0x36d   : > { %v3222_v9 = vmax.f32 %v4978_v47, %v2430_v40  ;;  %v3352_v10 = vsel %vm3351_vm8, %v3220_v62, %v3350_v51  ;;  %v2639_v23 = vrot.slane %v2638_v4, 1  ;;  %v2651_v16 = vrot.slane %v2650_v50, 2 }
 0x36e   : > { %v3354_v35 = vsel %vm3353_vm9, %v3221_v8, %v3352_v10  ;;  %v2633_v18 = vmax.f32 %v2631_v1, %v2632_v58  ;;  %v2646_v24 = vrot.slane %v2645_v59, 1  ;;  %v2014_v21 = vmul.f32 %v5050_v31, %v1960_v0 }
 0x36f   : > { %v3356_v54 = vsel %vm3355_vm10, %v3222_v9, %v3354_v35  ;;  %v2640_v60 = vmax.f32 %v2638_v4, %v2639_v23  ;;  %v2652_v34 = vmax.f32 %v2650_v50, %v2651_v16  ;;  %v2022_v26 = vmul.f32 %v5050_v31, %v1980_v11 }
 0x370   : > { %v5509_v39 = vrot.slane %v4986_v5, 1  ;;  %3414 = vst [vmem:[%s5055_s11] sm:$0xff] %v3356_v54  ;;  %v2647_v63 = vmax.f32 %v2645_v59, %v2646_v24  ;;  %v3235_v30 = vmax.f32 %v4981_v53, %v2633_v18  ;;  %v2050_v44 = vadd.f32 %v5061_v22, %v2014_v21 }
 0x371   : > { %v3366_v48 = vsel %vm3347_vm6, %v3234_v27, %v5117_v36  ;;  %v2653_v13 = vrot.slane %v2652_v34, 1  ;;  %v3236_v57 = vmax.f32 %v5510_v28, %v2640_v60  ;;  %v2058_v7 = vadd.f32 %v5061_v22, %v2022_v26  ;;  %v1985_v28 = vpop.f32.mrf.mxu3 }
 0x372   : > { %v2598_v47 = vmax.f32 %v4986_v5, %v5509_v39  ;;  %v3237_v5 = vmax.f32 %v5511_v37, %v2647_v63  ;;  %v3367_v43 = vsel %vm3349_vm7, %v3235_v30, %v3366_v48  ;;  %v2082_v0 = vmax.f32 %v2050_v44, 0.0 }
 0x373   : > { %v2015_v53 = vmul.f32 %v5050_v31, %v1962_v55  ;;  %v2654_v46 = vmax.f32 %v2652_v34, %v2653_v13  ;;  %v3368_v33 = vsel %vm3351_vm8, %v3236_v57, %v3367_v43  ;;  %v2090_v3 = vmax.f32 %v2058_v7, 0.0 }
 0x374   : > { %v2023_v32 = vmul.f32 %v5050_v31, %v1982_v2  ;;  %v3369_v61 = vsel %vm3353_vm9, %v3237_v5, %v3368_v33  ;;  %v2186_v27 = vrot.slane %v2082_v0, 2  ;;  %v2187_v36 = vrot.slane %v2082_v0, 4 }
 0x375   : > { %v2188_v56 = vrot.slane %v2082_v0, 6  ;;  %v3238_v11 = vmax.f32 %v2598_v47, %v2654_v46  ;;  %v2879_v15 = vsel %vm2318_vm3, %v2082_v0, -inf  ;;  %v2210_v6 = vrot.slane %v2090_v3, 2 }
 0x376   : > { %v2211_v38 = vrot.slane %v2090_v3, 4  ;;  %v2880_v14 = vrot.slane %v2879_v15, 4  ;;  %v2886_v42 = vsel %vm2318_vm3, %v2186_v27, -inf  ;;  %v2893_v29 = vsel %vm2318_vm3, %v2187_v36, -inf }
 0x377   : > { %v2900_v25 = vsel %vm2318_vm3, %v2188_v56, -inf  ;;  %v3370_v20 = vsel %vm3355_vm10, %v3238_v11, %v3369_v61  ;;  %v2887_v49 = vrot.slane %v2886_v42, 4  ;;  %v2894_v52 = vrot.slane %v2893_v29, 4 }
 0x378   : > { %v2901_v12 = vrot.slane %v2900_v25, 4  ;;  %3416 = vst [vmem:[%s5055_s11 + $0x10] sm:$0xff] %v3370_v20  ;;  %v2881_v45 = vmax.f32 %v2879_v15, %v2880_v14  ;;  %v2212_v17 = vrot.slane %v2090_v3, 6  ;;  %v3103_v41 = vsel %vm2318_vm3, %v2090_v3, -inf }
 0x379   : > { %v3110_v1 = vsel %vm2318_vm3, %v2210_v6, -inf  ;;  %v2888_v19 = vmax.f32 %v2886_v42, %v2887_v49  ;;  %v2895_v40 = vmax.f32 %v2893_v29, %v2894_v52  ;;  %v3104_v4 = vrot.slane %v3103_v41, 4 }
 0x37a   : > { %v2902_v62 = vmax.f32 %v2900_v25, %v2901_v12  ;;  %v2882_v50 = vrot.slane %v2881_v45, 2  ;;  %v3111_v8 = vrot.slane %v3110_v1, 4  ;;  %v3117_v51 = vsel %vm2318_vm3, %v2211_v38, -inf }
 0x37b   : > { %v3124_v58 = vsel %vm2318_vm3, %v2212_v17, -inf  ;;  %v2889_v59 = vrot.slane %v2888_v19, 2  ;;  %v2896_v9 = vrot.slane %v2895_v40, 2  ;;  %v3105_v23 = vmax.f32 %v3103_v41, %v3104_v4 }
 0x37c   : > { %v2903_v10 = vrot.slane %v2902_v62, 2  ;;  %v2883_v16 = vmax.f32 %v2881_v45, %v2882_v50  ;;  %v3112_v35 = vmax.f32 %v3110_v1, %v3111_v8  ;;  %v3118_v18 = vrot.slane %v3117_v51, 4 }
 0x37d   : > { %v3125_v24 = vrot.slane %v3124_v58, 4  ;;  %v2890_v21 = vmax.f32 %v2888_v19, %v2889_v59  ;;  %v2897_v54 = vmax.f32 %v2895_v40, %v2896_v9  ;;  %v3106_v60 = vrot.slane %v3105_v23, 2  ;;  %v1987_v59 = vpop.f32.mrf.mxu3 }
 0x37e   : > { %v3113_v34 = vrot.slane %v3112_v35, 2  ;;  %v3119_v26 = vmax.f32 %v3117_v51, %v3118_v18  ;;  %v2051_v39 = vadd.f32 %v5061_v22, %v2015_v53  ;;  %v2884_v47 = vrot.slane %v2883_v16, 1 }
 0x37f   : > { %v3126_v55 = vmax.f32 %v3124_v58, %v3125_v24  ;;  %v2891_v63 = vrot.slane %v2890_v21, 1  ;;  %v5163_v30 = vmax.f32 %v2902_v62, %v2903_v10  ;;  %v2059_v44 = vadd.f32 %v5061_v22, %v2023_v32 }
 0x380   : > { %v2898_v2 = vrot.slane %v2897_v54, 1  ;;  %v3107_v48 = vmax.f32 %v3105_v23, %v3106_v60  ;;  %v3114_v13 = vmax.f32 %v3112_v35, %v3113_v34  ;;  %v3120_v57 = vrot.slane %v3119_v26, 2 }
 0x381   : > { %v3127_v7 = vrot.slane %v3126_v55, 2  ;;  %v2083_v37 = vmax.f32 %v2051_v39, 0.0  ;;  %v5166_v5 = vmax.f32 %v2883_v16, %v2884_v47  ;;  %v5168_v43 = vmax.f32 %v2890_v21, %v2891_v63 }
 0x382   : > { %v2905_v0 = vrot.slane %v5163_v30, 1  ;;  %v2091_v53 = vmax.f32 %v2059_v44, 0.0  ;;  %v5171_v46 = vmax.f32 %v2897_v54, %v2898_v2  ;;  %v3108_v33 = vrot.slane %v3107_v48, 1 }
 0x383   : > { %v3115_v3 = vrot.slane %v3114_v13, 1  ;;  %v2189_v61 = vrot.slane %v2083_v37, 2  ;;  %v2190_v32 = vrot.slane %v2083_v37, 4  ;;  %v2191_v27 = vrot.slane %v2083_v37, 6 }
 0x384   : > { %v2907_v36 = vsel %vm2318_vm3, %v2083_v37, -inf  ;;  %v2213_v56 = vrot.slane %v2091_v53, 2  ;;  %v3121_v11 = vmax.f32 %v3119_v26, %v3120_v57  ;;  %v3128_v15 = vmax.f32 %v3126_v55, %v3127_v7 }
 0x385   : > { %v2908_v6 = vrot.slane %v2907_v36, 4  ;;  %v2914_v38 = vsel %vm2318_vm3, %v2189_v61, -inf  ;;  %v2921_v42 = vsel %vm2318_vm3, %v2190_v32, -inf  ;;  %v2928_v29 = vsel %vm2318_vm3, %v2191_v27, -inf  ;;  %v1940_v27 = vpop.f32.mrf.mxu1 }
 0x386   : > { %v2915_v14 = vrot.slane %v2914_v38, 4  ;;  %v2214_v25 = vrot.slane %v2091_v53, 4  ;;  %v2922_v49 = vrot.slane %v2921_v42, 4  ;;  %v2929_v52 = vrot.slane %v2928_v29, 4 }
 0x387   : > { %v2909_v20 = vmax.f32 %v2907_v36, %v2908_v6  ;;  %v2215_v12 = vrot.slane %v2091_v53, 6  ;;  %v3131_v17 = vsel %vm2318_vm3, %v2091_v53, -inf  ;;  %v3138_v41 = vsel %vm2318_vm3, %v2213_v56, -inf }
 0x388   : > { %v2916_v45 = vmax.f32 %v2914_v38, %v2915_v14  ;;  %v3145_v1 = vsel %vm2318_vm3, %v2214_v25, -inf  ;;  %v5180_v19 = vmax.f32 %v3107_v48, %v3108_v33  ;;  %v2923_v62 = vmax.f32 %v2921_v42, %v2922_v49  ;;  %v1920_v33 = vpop.f32.mrf.mxu0 }
 0x389   : > { %v2910_v40 = vrot.slane %v2909_v20, 2  ;;  %v3132_v4 = vrot.slane %v3131_v17, 4  ;;  %v3139_v50 = vrot.slane %v3138_v41, 4  ;;  %v3146_v8 = vrot.slane %v3145_v1, 4 }
 0x38a   : > { %v3152_v51 = vsel %vm2318_vm3, %v2215_v12, -inf  ;;  %v2024_v58 = vmul.f32 %v5050_v31, %v1985_v28  ;;  %v3122_v9 = vrot.slane %v3121_v11, 1  ;;  %v3129_v10 = vrot.slane %v3128_v15, 1 }
 0x38b   : > { %v2930_v23 = vmax.f32 %v2928_v29, %v2929_v52  ;;  %v3133_v16 = vmax.f32 %v3131_v17, %v3132_v4  ;;  %v2917_v35 = vrot.slane %v2916_v45, 2  ;;  %v3140_v18 = vmax.f32 %v3138_v41, %v3139_v50 }
 0x38c   : > { %v3147_v24 = vmax.f32 %v3145_v1, %v3146_v8  ;;  %v3153_v21 = vrot.slane %v3152_v51, 4  ;;  %v5184_v54 = vmax.f32 %v2909_v20, %v2910_v40  ;;  %v2924_v60 = vrot.slane %v2923_v62, 2 }
 0x38d   : > { %v3134_v34 = vrot.slane %v3133_v16, 2  ;;  %v2025_v26 = vmul.f32 %v5050_v31, %v1987_v59  ;;  %v5187_v55 = vmax.f32 %v3114_v13, %v3115_v3  ;;  %v3141_v39 = vrot.slane %v3140_v18, 2 }
 0x38e   : > { %v3148_v47 = vrot.slane %v3147_v24, 2  ;;  %v3154_v63 = vmax.f32 %v3152_v51, %v3153_v21  ;;  %v5189_v44 = vmax.f32 %v3121_v11, %v3122_v9  ;;  %v5191_v2 = vmax.f32 %v3128_v15, %v3129_v10 }
 0x38f   : > { %v2931_v48 = vrot.slane %v2930_v23, 2  ;;  %v3135_v28 = vmax.f32 %v3133_v16, %v3134_v34  ;;  %v5193_v57 = vmax.f32 %v2916_v45, %v2917_v35  ;;  %v3142_v7 = vmax.f32 %v3140_v18, %v3141_v39 }
 0x390   : > { %v3149_v37 = vmax.f32 %v3147_v24, %v3148_v47  ;;  %v3155_v53 = vrot.slane %v3154_v63, 2  ;;  %v2912_v61 = vrot.slane %v5184_v54, 1  ;;  %v5196_v32 = vmax.f32 %v2923_v62, %v2924_v60 }
 0x391   : > { %v3136_v13 = vrot.slane %v3135_v28, 1  ;;  %v2060_v3 = vadd.f32 %v5061_v22, %v2024_v58  ;;  %v3143_v36 = vrot.slane %v3142_v7, 1  ;;  %v2061_v15 = vadd.f32 %v5061_v22, %v2025_v26 }
 0x392   : > { %v3150_v56 = vrot.slane %v3149_v37, 1  ;;  %v3156_v11 = vmax.f32 %v3154_v63, %v3155_v53  ;;  %v5200_v6 = vmax.f32 %v2930_v23, %v2931_v48  ;;  %v5205_v42 = vmul.f32 %v5050_v31, %v1920_v33 }
 0x393   : > { %v5202_v38 = vmax.f32 %v3135_v28, %v3136_v13  ;;  %v2092_v14 = vmax.f32 %v2060_v3, 0.0  ;;  %v5207_v29 = vmax.f32 %v3142_v7, %v3143_v36  ;;  %v2093_v20 = vmax.f32 %v2061_v15, 0.0 }
 0x394   : > { %v5209_v25 = vmax.f32 %v3149_v37, %v3150_v56  ;;  %v5212_v49 = vmul.f32 %v5050_v31, %v1940_v27  ;;  %v3157_v41 = vrot.slane %v3156_v11, 1 }
 0x395   : > { %v2216_v52 = vrot.slane %v2092_v14, 2  ;;  %v2217_v12 = vrot.slane %v2092_v14, 4  ;;  %v2218_v45 = vrot.slane %v2092_v14, 6  ;;  %v3159_v17 = vsel %vm2318_vm3, %v2092_v14, -inf }
 0x396   : > { %v3160_v1 = vrot.slane %v3159_v17, 4  ;;  %v2219_v40 = vrot.slane %v2093_v20, 2  ;;  %v2220_v62 = vrot.slane %v2093_v20, 4  ;;  %v2221_v51 = vrot.slane %v2093_v20, 6 }
 0x397   : > { %v3166_v4 = vsel %vm2318_vm3, %v2216_v52, -inf  ;;  %v3173_v50 = vsel %vm2318_vm3, %v2217_v12, -inf  ;;  %v3180_v8 = vsel %vm2318_vm3, %v2218_v45, -inf  ;;  %v3187_v23 = vsel %vm2318_vm3, %v2093_v20, -inf }
 0x398   : > { %v3161_v58 = vmax.f32 %v3159_v17, %v3160_v1  ;;  %v3167_v59 = vrot.slane %v3166_v4, 4  ;;  %v3174_v9 = vrot.slane %v3173_v50, 4  ;;  %v3181_v10 = vrot.slane %v3180_v8, 4 }
 0x399   : > { %v3194_v16 = vsel %vm2318_vm3, %v2219_v40, -inf  ;;  %v3201_v35 = vsel %vm2318_vm3, %v2220_v62, -inf  ;;  %v3208_v18 = vsel %vm2318_vm3, %v2221_v51, -inf  ;;  %v3188_v26 = vrot.slane %v3187_v23, 4 }
 0x39a   : > { %v3162_v24 = vrot.slane %v3161_v58, 2  ;;  %v3168_v21 = vmax.f32 %v3166_v4, %v3167_v59  ;;  %v3175_v60 = vmax.f32 %v3173_v50, %v3174_v9  ;;  %v3182_v34 = vmax.f32 %v3180_v8, %v3181_v10 }
 0x39b   : > { %v3195_v39 = vrot.slane %v3194_v16, 4  ;;  %v3202_v47 = vrot.slane %v3201_v35, 4  ;;  %v3209_v63 = vrot.slane %v3208_v18, 4  ;;  %v3189_v53 = vmax.f32 %v3187_v23, %v3188_v26 }
 0x39c   : > { %v3163_v48 = vmax.f32 %v3161_v58, %v3162_v24  ;;  %v3169_v28 = vrot.slane %v3168_v21, 2  ;;  %v3176_v7 = vrot.slane %v3175_v60, 2  ;;  %v3183_v37 = vrot.slane %v3182_v34, 2 }
 0x39d   : > { %v3196_v33 = vmax.f32 %v3194_v16, %v3195_v39  ;;  %v3203_v13 = vmax.f32 %v3201_v35, %v3202_v47  ;;  %v3210_v3 = vmax.f32 %v3208_v18, %v3209_v63  ;;  %v3190_v14 = vrot.slane %v3189_v53, 2 }
 0x39e   : > { %v3164_v27 = vrot.slane %v3163_v48, 1  ;;  %v3170_v36 = vmax.f32 %v3168_v21, %v3169_v28  ;;  %v3177_v56 = vmax.f32 %v3175_v60, %v3176_v7  ;;  %v3184_v15 = vmax.f32 %v3182_v34, %v3183_v37 }
 0x39f   : > { %v3197_v20 = vrot.slane %v3196_v33, 2  ;;  %v3204_v52 = vrot.slane %v3203_v13, 2  ;;  %v3211_v12 = vrot.slane %v3210_v3, 2  ;;  %v3191_v62 = vmax.f32 %v3189_v53, %v3190_v14 }
 0x3a0   : > { %v3165_v45 = vmax.f32 %v3163_v48, %v3164_v27  ;;  %v3171_v17 = vrot.slane %v3170_v36, 1  ;;  %v3178_v1 = vrot.slane %v3177_v56, 1  ;;  %v3185_v40 = vrot.slane %v3184_v15, 1 }
 0x3a1   : > { %v3198_v4 = vmax.f32 %v3196_v33, %v3197_v20  ;;  %v3205_v50 = vmax.f32 %v3203_v13, %v3204_v52  ;;  %v3212_v8 = vmax.f32 %v3210_v3, %v3211_v12  ;;  %v3158_v51 = vmax.f32 %v3156_v11, %v3157_v41 }
 0x3a2   : > { %v3172_v58 = vmax.f32 %v3170_v36, %v3171_v17  ;;  %v3179_v59 = vmax.f32 %v3177_v56, %v3178_v1  ;;  %v3186_v9 = vmax.f32 %v3184_v15, %v3185_v40  ;;  %v3192_v10 = vrot.slane %v3191_v62, 1 }
 0x3a3   : > { %v3199_v23 = vrot.slane %v3198_v4, 1  ;;  %v3206_v16 = vrot.slane %v3205_v50, 1  ;;  %v3213_v35 = vrot.slane %v3212_v8, 1  ;;  %v3271_v18 = vmax.f32 %v5180_v19, %v3165_v45 }
 0x3a4   : > { %v3272_v24 = vmax.f32 %v5187_v55, %v3172_v58  ;;  %v3273_v21 = vmax.f32 %v5189_v44, %v3179_v59  ;;  %v2034_v60 = vadd.f32 %v5061_v22, %v5205_v42  ;;  %v3193_v34 = vmax.f32 %v3191_v62, %v3192_v10  ;;  %v1922_v10 = vpop.f32.mrf.mxu0 }
 0x3a5   : > { %v3200_v26 = vmax.f32 %v3198_v4, %v3199_v23  ;;  %v3207_v39 = vmax.f32 %v3205_v50, %v3206_v16  ;;  %v3214_v11 = vmax.f32 %v3212_v8, %v3213_v35  ;;  %v3274_v41 = vmax.f32 %v5191_v2, %v3186_v9 }
 0x3a6   : > { %v3399_v47 = vsel %vm3343_vm4, %v3272_v24, %v3271_v18  ;;  %v2066_v63 = vmax.f32 %v2034_v60, 0.0  ;;  %v2042_v48 = vadd.f32 %v5061_v22, %v5212_v49  ;;  %v3275_v55 = vmax.f32 %v5202_v38, %v3193_v34 }
 0x3a7   : > { %v3400_v19 = vsel %vm3345_vm5, %v3273_v21, %v3399_v47  ;;  %v3276_v44 = vmax.f32 %v5207_v29, %v3200_v26  ;;  %v3277_v42 = vmax.f32 %v5209_v25, %v3207_v39  ;;  %v3278_v7 = vmax.f32 %v3158_v51, %v3214_v11 }
 0x3a8   : > { %v3401_v28 = vsel %vm3347_vm6, %v3274_v41, %v3400_v19  ;;  %v2138_v37 = vrot.slane %v2066_v63, 2  ;;  %v2139_v53 = vrot.slane %v2066_v63, 4  ;;  %v2140_v33 = vrot.slane %v2066_v63, 6 }
 0x3a9   : > { %v3402_v2 = vsel %vm3349_vm7, %v3275_v55, %v3401_v28  ;;  %v2431_v13 = vsel %vm2318_vm3, %v2066_v63, -inf  ;;  %v2074_v49 = vmax.f32 %v2042_v48, 0.0  ;;  %v2919_v51 = vrot.slane %v5193_v57, 1 }
 0x3aa   : > { %v3403_v3 = vsel %vm3351_vm8, %v3276_v44, %v3402_v2  ;;  %v2432_v27 = vrot.slane %v2431_v13, 4  ;;  %v2438_v38 = vsel %vm2318_vm3, %v2138_v37, -inf  ;;  %v2445_v29 = vsel %vm2318_vm3, %v2139_v53, -inf  ;;  %v1965_v2 = vpop.f32.mrf.mxu2 }
 0x3ab   : > { %v3404_v25 = vsel %vm3353_vm9, %v3277_v42, %v3403_v3  ;;  %v2439_v36 = vrot.slane %v2438_v38, 4  ;;  %v2446_v56 = vrot.slane %v2445_v29, 4  ;;  %v2452_v15 = vsel %vm2318_vm3, %v2140_v33, -inf }
 0x3ac   : > { %v3405_v14 = vsel %vm3355_vm10, %v3278_v7, %v3404_v25  ;;  %v2433_v20 = vmax.f32 %v2431_v13, %v2432_v27  ;;  %v2453_v52 = vrot.slane %v2452_v15, 4  ;;  %v2162_v12 = vrot.slane %v2074_v49, 2 }
 0x3ad   : > { %3421 = vst [vmem:[%s5055_s11 + $0x38] sm:$0xff] %v3405_v14  ;;  %v2440_v45 = vmax.f32 %v2438_v38, %v2439_v36  ;;  %v2447_v17 = vmax.f32 %v2445_v29, %v2446_v56  ;;  %v2163_v1 = vrot.slane %v2074_v49, 4  ;;  %v2164_v40 = vrot.slane %v2074_v49, 6 }
 0x3ae   : > { %v2434_v62 = vrot.slane %v2433_v20, 2  ;;  %v2454_v4 = vmax.f32 %v2452_v15, %v2453_v52  ;;  %v2655_v50 = vsel %vm2318_vm3, %v2074_v49, -inf  ;;  %v2662_v8 = vsel %vm2318_vm3, %v2162_v12, -inf }
 0x3af   : > { %v2441_v58 = vrot.slane %v2440_v45, 2  ;;  %v2656_v59 = vrot.slane %v2655_v50, 4  ;;  %v2663_v9 = vrot.slane %v2662_v8, 4  ;;  %v2448_v16 = vrot.slane %v2447_v17, 2 }
 0x3b0   : > { %v2435_v23 = vmax.f32 %v2433_v20, %v2434_v62  ;;  %v2669_v35 = vsel %vm2318_vm3, %v2163_v1, -inf  ;;  %v2676_v18 = vsel %vm2318_vm3, %v2164_v40, -inf  ;;  %v2455_v21 = vrot.slane %v2454_v4, 2 }
 0x3b1   : > { %v2442_v24 = vmax.f32 %v2440_v45, %v2441_v58  ;;  %v2657_v60 = vmax.f32 %v2655_v50, %v2656_v59  ;;  %v2664_v34 = vmax.f32 %v2662_v8, %v2663_v9  ;;  %v5253_v26 = vmax.f32 %v5163_v30, %v2905_v0  ;;  %v1942_v0 = vpop.f32.mrf.mxu1 }
 0x3b2   : > { %v2670_v39 = vrot.slane %v2669_v35, 4  ;;  %v2677_v11 = vrot.slane %v2676_v18, 4  ;;  %v1999_v41 = vmul.f32 %v5050_v31, %v1922_v10  ;;  %v2926_v47 = vrot.slane %v5196_v32, 1 }
 0x3b3   : > { %v2933_v63 = vrot.slane %v5200_v6, 1  ;;  %v2658_v48 = vrot.slane %v2657_v60, 2  ;;  %v2665_v19 = vrot.slane %v2664_v34, 2  ;;  %v5261_v55 = vmax.f32 %v5184_v54, %v2912_v61 }
 0x3b4   : > { %v5263_v44 = vmax.f32 %v2447_v17, %v2448_v16  ;;  %v2671_v42 = vmax.f32 %v2669_v35, %v2670_v39  ;;  %v2678_v30 = vmax.f32 %v2676_v18, %v2677_v11  ;;  %v5266_v28 = vmax.f32 %v5193_v57, %v2919_v51 }
 0x3b5   : > { %v2436_v7 = vrot.slane %v2435_v23, 1  ;;  %v2443_v37 = vrot.slane %v2442_v24, 1  ;;  %v5268_v53 = vmax.f32 %v2454_v4, %v2455_v21  ;;  %v5270_v33 = vmax.f32 %v2657_v60, %v2658_v48 }
 0x3b6   : > { %v5272_v13 = vmax.f32 %v2664_v34, %v2665_v19  ;;  %v2672_v49 = vrot.slane %v2671_v42, 2  ;;  %v2035_v54 = vadd.f32 %v5061_v22, %v1999_v41  ;;  %v5276_v61 = vmax.f32 %v5196_v32, %v2926_v47 }
 0x3b7   : > { %v5279_v3 = vmax.f32 %v5200_v6, %v2933_v63  ;;  %v2679_v57 = vrot.slane %v2678_v30, 2  ;;  %v2007_v27 = vmul.f32 %v5050_v31, %v1942_v0  ;;  %v2450_v38 = vrot.slane %v5263_v44, 1  ;;  %v1925_v0 = vpop.f32.mrf.mxu0 }
 0x3b8   : > { %v5283_v29 = vmax.f32 %v2671_v42, %v2672_v49  ;;  %v2067_v25 = vmax.f32 %v2035_v54, 0.0  ;;  %v2016_v36 = vmul.f32 %v5050_v31, %v1965_v2  ;;  %v5286_v56 = vmax.f32 %v2435_v23, %v2436_v7  ;;  %v1967_v54 = vpop.f32.mrf.mxu2 }
 0x3b9   : > { %v5288_v15 = vmax.f32 %v2442_v24, %v2443_v37  ;;  %v2457_v32 = vrot.slane %v5268_v53, 1  ;;  %v2043_v14 = vadd.f32 %v5061_v22, %v2007_v27  ;;  %v2660_v6 = vrot.slane %v5270_v33, 1 }
 0x3ba   : > { %v2667_v20 = vrot.slane %v5272_v13, 1  ;;  %v2141_v52 = vrot.slane %v2067_v25, 2  ;;  %v2142_v12 = vrot.slane %v2067_v25, 4  ;;  %v2680_v45 = vmax.f32 %v2678_v30, %v2679_v57 }
 0x3bb   : > { %v2143_v17 = vrot.slane %v2067_v25, 6  ;;  %v2459_v1 = vsel %vm2318_vm3, %v2067_v25, -inf  ;;  %v2075_v40 = vmax.f32 %v2043_v14, 0.0  ;;  %v2674_v31 = vrot.slane %v5283_v29, 1 }
 0x3bc   : > { %v2460_v62 = vrot.slane %v2459_v1, 4  ;;  %v2466_v4 = vsel %vm2318_vm3, %v2141_v52, -inf  ;;  %v2052_v50 = vadd.f32 %v5061_v22, %v2016_v36  ;;  %v2473_v51 = vsel %vm2318_vm3, %v2142_v12, -inf }
 0x3bd   : > { %v2467_v8 = vrot.slane %v2466_v4, 4  ;;  %v2480_v58 = vsel %vm2318_vm3, %v2143_v17, -inf  ;;  %v2165_v59 = vrot.slane %v2075_v40, 2  ;;  %v2474_v10 = vrot.slane %v2473_v51, 4 }
 0x3be   : > { %v2461_v9 = vmax.f32 %v2459_v1, %v2460_v62  ;;  %v2481_v23 = vrot.slane %v2480_v58, 4  ;;  %v2166_v16 = vrot.slane %v2075_v40, 4  ;;  %v2167_v18 = vrot.slane %v2075_v40, 6 }
 0x3bf   : > { %v2468_v35 = vmax.f32 %v2466_v4, %v2467_v8  ;;  %v2683_v24 = vsel %vm2318_vm3, %v2075_v40, -inf  ;;  %v2690_v21 = vsel %vm2318_vm3, %v2165_v59, -inf  ;;  %v2475_v34 = vmax.f32 %v2473_v51, %v2474_v10  ;;  %v5316_v4 = vld [vmem:[%s5502_s2] ss:$0 sm:$0xff] }
 0x3c0   : > { %v2462_v60 = vrot.slane %v2461_v9, 2  ;;  %v2482_v39 = vmax.f32 %v2480_v58, %v2481_v23  ;;  %v2684_v22 = vrot.slane %v2683_v24, 4  ;;  %v2691_v41 = vrot.slane %v2690_v21, 4 }
 0x3c1   : > { %v2469_v11 = vrot.slane %v2468_v35, 2  ;;  %v2697_v47 = vsel %vm2318_vm3, %v2166_v16, -inf  ;;  %v2704_v63 = vsel %vm2318_vm3, %v2167_v18, -inf  ;;  %v2476_v19 = vrot.slane %v2475_v34, 2 }
 0x3c2   : > { %v2463_v48 = vmax.f32 %v2461_v9, %v2462_v60  ;;  %v2483_v42 = vrot.slane %v2482_v39, 2  ;;  %v2685_v30 = vmax.f32 %v2683_v24, %v2684_v22  ;;  %v2692_v37 = vmax.f32 %v2690_v21, %v2691_v41  ;;  %v5350_v60 = vld [vmem:[%s5503_s3] ss:$0 sm:$0xff]  ;;  %v1927_v22 = vpop.f32.mrf.mxu0 }
 0x3c3   : > { %v2470_v7 = vmax.f32 %v2468_v35, %v2469_v11  ;;  %v2698_v2 = vrot.slane %v2697_v47, 4  ;;  %v2705_v49 = vrot.slane %v2704_v63, 4  ;;  %v2681_v57 = vrot.slane %v2680_v45, 1 }
 0x3c4   : > { %v2464_v27 = vrot.slane %v2463_v48, 1  ;;  %v2477_v25 = vmax.f32 %v2475_v34, %v2476_v19  ;;  %v2084_v36 = vmax.f32 %v2052_v50, 0.0  ;;  %v5305_v14 = vmax.f32 %v5263_v44, %v2450_v38 }
 0x3c5   : > { %v2471_v52 = vrot.slane %v2470_v7, 1  ;;  %v2484_v12 = vmax.f32 %v2482_v39, %v2483_v42  ;;  %v2686_v17 = vrot.slane %v2685_v30, 2  ;;  %v5308_v1 = vmax.f32 %v5268_v53, %v2457_v32  ;;  %v1945_v39 = vpop.f32.mrf.mxu1 }
 0x3c6   : > { %v5311_v40 = vmax.f32 %v5270_v33, %v2660_v6  ;;  %v2693_v62 = vrot.slane %v2692_v37, 2  ;;  %v2017_v50 = vmul.f32 %v5316_v4, %v1967_v54  ;;  %v5320_v44 = vmax.f32 %v5272_v13, %v2667_v20 }
 0x3c7   : > { %v2478_v38 = vrot.slane %v2477_v25, 1  ;;  %v5322_v8 = vmax.f32 %v2697_v47, %v2698_v2  ;;  %v5324_v51 = vmax.f32 %v2704_v63, %v2705_v49  ;;  %v5327_v53 = vmax.f32 %v5283_v29, %v2674_v31 }
 0x3c8   : > { %v5329_v33 = vmax.f32 %v2680_v45, %v2681_v57  ;;  %v5331_v32 = vmax.f32 %v2463_v48, %v2464_v27  ;;  %v2192_v6 = vrot.slane %v2084_v36, 2  ;;  %v5333_v58 = vmax.f32 %v2470_v7, %v2471_v52 }
 0x3c9   : > { %v2485_v59 = vrot.slane %v2484_v12, 1  ;;  %v5335_v9 = vmax.f32 %v2685_v30, %v2686_v17  ;;  %v2193_v13 = vrot.slane %v2084_v36, 4  ;;  %v5337_v20 = vmax.f32 %v2692_v37, %v2693_v62 }
 0x3ca   : > { %v2194_v10 = vrot.slane %v2084_v36, 6  ;;  %v2935_v23 = vsel %vm2318_vm3, %v2084_v36, -inf  ;;  %v2942_v16 = vsel %vm2318_vm3, %v2192_v6, -inf  ;;  %v5341_v29 = vmax.f32 %v2477_v25, %v2478_v38 }
 0x3cb   : > { %v2700_v45 = vrot.slane %v5322_v8, 2  ;;  %v2707_v31 = vrot.slane %v5324_v51, 2  ;;  %v2936_v35 = vrot.slane %v2935_v23, 4  ;;  %v2943_v18 = vrot.slane %v2942_v16, 4 }
 0x3cc   : > { %v2949_v24 = vsel %vm2318_vm3, %v2193_v13, -inf  ;;  %v2956_v21 = vsel %vm2318_vm3, %v2194_v10, -inf  ;;  %v2053_v34 = vadd.f32 %v5350_v60, %v2017_v50  ;;  %v5353_v11 = vmax.f32 %v2484_v12, %v2485_v59 }
 0x3cd   : > { %v2688_v41 = vrot.slane %v5335_v9, 1  ;;  %v2937_v47 = vmax.f32 %v2935_v23, %v2936_v35  ;;  %v2950_v63 = vrot.slane %v2949_v24, 4  ;;  %v2944_v48 = vmax.f32 %v2942_v16, %v2943_v18 }
 0x3ce   : > { %v2957_v19 = vrot.slane %v2956_v21, 4  ;;  %v2085_v42 = vmax.f32 %v2053_v34, 0.0  ;;  %v2000_v30 = vmul.f32 %v5316_v4, %v1925_v0  ;;  %v2008_v2 = vmul.f32 %v5316_v4, %v1945_v39 }
 0x3cf   : > { %v2938_v7 = vrot.slane %v2937_v47, 2  ;;  %v2951_v37 = vmax.f32 %v2949_v24, %v2950_v63  ;;  %v5359_v49 = vmul.f32 %v5316_v4, %v1927_v22  ;;  %v2945_v54 = vrot.slane %v2944_v48, 2 }
 0x3d0   : > { %v2958_v57 = vmax.f32 %v2956_v21, %v2957_v19  ;;  %v2195_v27 = vrot.slane %v2085_v42, 2  ;;  %v2196_v25 = vrot.slane %v2085_v42, 4  ;;  %v2197_v12 = vrot.slane %v2085_v42, 6 }
 0x3d1   : > { %v2939_v36 = vmax.f32 %v2937_v47, %v2938_v7  ;;  %v2952_v52 = vrot.slane %v2951_v37, 2  ;;  %v2963_v17 = vsel %vm2318_vm3, %v2085_v42, -inf  ;;  %v2946_v62 = vmax.f32 %v2944_v48, %v2945_v54 }
 0x3d2   : > { %v2959_v50 = vrot.slane %v2958_v57, 2  ;;  %v2964_v38 = vrot.slane %v2963_v17, 4  ;;  %v2970_v0 = vsel %vm2318_vm3, %v2195_v27, -inf  ;;  %v2977_v10 = vsel %vm2318_vm3, %v2196_v25, -inf }
 0x3d3   : > { %v2940_v6 = vrot.slane %v2939_v36, 1  ;;  %v2953_v59 = vmax.f32 %v2951_v37, %v2952_v52  ;;  %v2971_v13 = vrot.slane %v2970_v0, 4  ;;  %v2947_v23 = vrot.slane %v2946_v62, 1 }
 0x3d4   : > { %v2960_v16 = vmax.f32 %v2958_v57, %v2959_v50  ;;  %v2965_v35 = vmax.f32 %v2963_v17, %v2964_v38  ;;  %v2978_v18 = vrot.slane %v2977_v10, 4  ;;  %v2984_v39 = vsel %vm2318_vm3, %v2197_v12, -inf }
 0x3d5   : > { %v2941_v24 = vmax.f32 %v2939_v36, %v2940_v6  ;;  %v2954_v21 = vrot.slane %v2953_v59, 1  ;;  %v2972_v34 = vmax.f32 %v2970_v0, %v2971_v13  ;;  %v2948_v22 = vmax.f32 %v2946_v62, %v2947_v23 }
 0x3d6   : > { %v2961_v47 = vrot.slane %v2960_v16, 1  ;;  %v2966_v63 = vrot.slane %v2965_v35, 2  ;;  %v2979_v48 = vmax.f32 %v2977_v10, %v2978_v18  ;;  %v2985_v37 = vrot.slane %v2984_v39, 4 }
 0x3d7   : > { %v2955_v19 = vmax.f32 %v2953_v59, %v2954_v21  ;;  %v3255_v42 = vmax.f32 %v5166_v5, %v2941_v24  ;;  %v2973_v7 = vrot.slane %v2972_v34, 2  ;;  %v3256_v27 = vmax.f32 %v5168_v43, %v2948_v22 }
 0x3d8   : > { %v2962_v54 = vmax.f32 %v2960_v16, %v2961_v47  ;;  %v2967_v57 = vmax.f32 %v2965_v35, %v2966_v63  ;;  %v2980_v25 = vrot.slane %v2979_v48, 2  ;;  %v2986_v17 = vmax.f32 %v2984_v39, %v2985_v37 }
 0x3d9   : > { %v3257_v36 = vmax.f32 %v5171_v46, %v2955_v19  ;;  %v2974_v52 = vmax.f32 %v2972_v34, %v2973_v7  ;;  %v2036_v12 = vadd.f32 %v5350_v60, %v2000_v30  ;;  %v3385_v50 = vsel %vm3343_vm4, %v3256_v27, %v3255_v42 }
 0x3da   : > { %v3258_v62 = vmax.f32 %v5253_v26, %v2962_v54  ;;  %v2968_v38 = vrot.slane %v2967_v57, 1  ;;  %v2981_v0 = vmax.f32 %v2979_v48, %v2980_v25  ;;  %v2987_v59 = vrot.slane %v2986_v17, 2 }
 0x3db   : > { %v3386_v5 = vsel %vm3345_vm5, %v3257_v36, %v3385_v50  ;;  %v2975_v6 = vrot.slane %v2974_v52, 1  ;;  %v2068_v13 = vmax.f32 %v2036_v12, 0.0  ;;  %v2044_v46 = vadd.f32 %v5350_v60, %v2008_v2 }
 0x3dc   : > { %v3387_v43 = vsel %vm3347_vm6, %v3258_v62, %v3386_v5  ;;  %v2969_v10 = vmax.f32 %v2967_v57, %v2968_v38  ;;  %v2982_v23 = vrot.slane %v2981_v0, 1  ;;  %v2988_v35 = vmax.f32 %v2986_v17, %v2987_v59 }
 0x3dd   : > { %v2976_v16 = vmax.f32 %v2974_v52, %v2975_v6  ;;  %v2144_v30 = vrot.slane %v2068_v13, 2  ;;  %v2145_v18 = vrot.slane %v2068_v13, 4  ;;  %v2146_v21 = vrot.slane %v2068_v13, 6 }
 0x3de   : > { %v2983_v26 = vmax.f32 %v2981_v0, %v2982_v23  ;;  %v3259_v24 = vmax.f32 %v5261_v55, %v2969_v10  ;;  %v2487_v34 = vsel %vm2318_vm3, %v2068_v13, -inf  ;;  %v2989_v39 = vrot.slane %v2988_v35, 1 }
 0x3df   : > { %v3260_v22 = vmax.f32 %v5266_v28, %v2976_v16  ;;  %v2488_v47 = vrot.slane %v2487_v34, 4  ;;  %v2494_v63 = vsel %vm2318_vm3, %v2144_v30, -inf  ;;  %v2501_v42 = vsel %vm2318_vm3, %v2145_v18, -inf }
 0x3e0   : > { %v3261_v48 = vmax.f32 %v5276_v61, %v2983_v26  ;;  %v3388_v2 = vsel %vm3349_vm7, %v3259_v24, %v3387_v43  ;;  %v2495_v19 = vrot.slane %v2494_v63, 4  ;;  %v2990_v7 = vmax.f32 %v2988_v35, %v2989_v39 }
 0x3e1   : > { %v3389_v37 = vsel %vm3351_vm8, %v3260_v22, %v3388_v2  ;;  %v2489_v55 = vmax.f32 %v2487_v34, %v2488_v47  ;;  %v2502_v54 = vrot.slane %v2501_v42, 4  ;;  %v2508_v28 = vsel %vm2318_vm3, %v2146_v21, -inf }
 0x3e2   : > { %v3390_v27 = vsel %vm3353_vm9, %v3261_v48, %v3389_v37  ;;  %v2496_v57 = vmax.f32 %v2494_v63, %v2495_v19  ;;  %v2076_v25 = vmax.f32 %v2044_v46, 0.0  ;;  %v3262_v36 = vmax.f32 %v5279_v3, %v2990_v7 }
 0x3e3   : > { %v2490_v61 = vrot.slane %v2489_v55, 2  ;;  %v2503_v52 = vmax.f32 %v2501_v42, %v2502_v54  ;;  %v2509_v17 = vrot.slane %v2508_v28, 4  ;;  %v2695_v19 = vrot.slane %v5337_v20, 1 }
 0x3e4   : > { %v2497_v12 = vrot.slane %v2496_v57, 2  ;;  %v2168_v62 = vrot.slane %v2076_v25, 2  ;;  %v2169_v50 = vrot.slane %v2076_v25, 4  ;;  %v2170_v38 = vrot.slane %v2076_v25, 6 }
 0x3e5   : > { %v3391_v0 = vsel %vm3355_vm10, %v3262_v36, %v3390_v27  ;;  %v2491_v5 = vmax.f32 %v2489_v55, %v2490_v61  ;;  %v2504_v6 = vrot.slane %v2503_v52, 2  ;;  %v2510_v59 = vmax.f32 %v2508_v28, %v2509_v17 }
 0x3e6   : > { %3419 = vst [vmem:[%s5055_s11 + $0x28] sm:$0xff] %v3391_v0  ;;  %v2498_v13 = vmax.f32 %v2496_v57, %v2497_v12  ;;  %v2711_v43 = vsel %vm2318_vm3, %v2076_v25, -inf  ;;  %v2718_v10 = vsel %vm2318_vm3, %v2168_v62, -inf  ;;  %v2725_v3 = vsel %vm2318_vm3, %v2169_v50, -inf }
 0x3e7   : > { %v2492_v23 = vrot.slane %v2491_v5, 1  ;;  %v2505_v46 = vmax.f32 %v2503_v52, %v2504_v6  ;;  %v2511_v16 = vrot.slane %v2510_v59, 2  ;;  %v2712_v35 = vrot.slane %v2711_v43, 4 }
 0x3e8   : > { %v2499_v30 = vrot.slane %v2498_v13, 1  ;;  %v2719_v18 = vrot.slane %v2718_v10, 4  ;;  %v2726_v26 = vrot.slane %v2725_v3, 4  ;;  %v2732_v24 = vsel %vm2318_vm3, %v2170_v38, -inf }
 0x3e9   : > { %v2493_v21 = vmax.f32 %v2491_v5, %v2492_v23  ;;  %v2506_v34 = vrot.slane %v2505_v46, 1  ;;  %v2512_v39 = vmax.f32 %v2510_v59, %v2511_v16  ;;  %v2713_v22 = vmax.f32 %v2711_v43, %v2712_v35 }
 0x3ea   : > { %v2500_v47 = vmax.f32 %v2498_v13, %v2499_v30  ;;  %v2720_v63 = vmax.f32 %v2718_v10, %v2719_v18  ;;  %v2727_v48 = vmax.f32 %v2725_v3, %v2726_v26  ;;  %v2733_v2 = vrot.slane %v2732_v24, 4 }
 0x3eb   : > { %v2507_v42 = vmax.f32 %v2505_v46, %v2506_v34  ;;  %v2513_v7 = vrot.slane %v2512_v39, 1  ;;  %v2714_v37 = vrot.slane %v2713_v22, 2  ;;  %v5396_v28 = vmax.f32 %v5322_v8, %v2700_v45 }
 0x3ec   : > { %v3224_v55 = vmax.f32 %v5288_v15, %v2500_v47  ;;  %v2721_v54 = vrot.slane %v2720_v63, 2  ;;  %v2728_v27 = vrot.slane %v2727_v48, 2  ;;  %v2734_v57 = vmax.f32 %v2732_v24, %v2733_v2  ;;  %v1947_v15 = vpop.f32.mrf.mxu1 }
 0x3ed   : > { %v3223_v25 = vmax.f32 %v5286_v56, %v2493_v21  ;;  %v2715_v36 = vmax.f32 %v2713_v22, %v2714_v37  ;;  %v2037_v61 = vadd.f32 %v5350_v60, %v5359_v49  ;;  %v3225_v52 = vmax.f32 %v5305_v14, %v2507_v42 }
 0x3ee   : > { %v2722_v17 = vmax.f32 %v2720_v63, %v2721_v54  ;;  %v2729_v12 = vmax.f32 %v2727_v48, %v2728_v27  ;;  %v2735_v62 = vrot.slane %v2734_v57, 2  ;;  %v5405_v50 = vmax.f32 %v5324_v51, %v2707_v31 }
 0x3ef   : > { %v3357_v8 = vsel %vm3343_vm4, %v3224_v55, %v3223_v25  ;;  %v2716_v45 = vrot.slane %v2715_v36, 1  ;;  %v2069_v38 = vmax.f32 %v2037_v61, 0.0  ;;  %v2514_v56 = vmax.f32 %v2512_v39, %v2513_v7 }
 0x3f0   : > { %v2723_v0 = vrot.slane %v2722_v17, 1  ;;  %v2730_v5 = vrot.slane %v2729_v12, 1  ;;  %v2736_v6 = vmax.f32 %v2734_v57, %v2735_v62  ;;  %v5411_v14 = vmax.f32 %v5335_v9, %v2688_v41 }
 0x3f1   : > { %v2147_v49 = vrot.slane %v2069_v38, 2  ;;  %v2148_v59 = vrot.slane %v2069_v38, 4  ;;  %v2009_v13 = vmul.f32 %v5316_v4, %v1947_v15  ;;  %v2702_v51 = vrot.slane %v5396_v28, 1 }
 0x3f2   : > { %v3358_v31 = vsel %vm3345_vm5, %v3225_v52, %v3357_v8  ;;  %v5416_v43 = vmax.f32 %v2715_v36, %v2716_v45  ;;  %v2149_v10 = vrot.slane %v2069_v38, 6  ;;  %v2737_v3 = vrot.slane %v2736_v6, 1 }
 0x3f3   : > { %v2515_v23 = vsel %vm2318_vm3, %v2069_v38, -inf  ;;  %v2522_v46 = vsel %vm2318_vm3, %v2147_v49, -inf  ;;  %v2529_v16 = vsel %vm2318_vm3, %v2148_v59, -inf  ;;  %v3226_v9 = vmax.f32 %v5308_v1, %v2514_v56 }
 0x3f4   : > { %v2724_v41 = vmax.f32 %v2722_v17, %v2723_v0  ;;  %v5422_v35 = vmax.f32 %v2729_v12, %v2730_v5  ;;  %v2516_v4 = vrot.slane %v2515_v23, 4  ;;  %v2523_v30 = vrot.slane %v2522_v46, 4 }
 0x3f5   : > { %v2530_v18 = vrot.slane %v2529_v16, 4  ;;  %v2536_v26 = vsel %vm2318_vm3, %v2149_v10, -inf  ;;  %v2045_v24 = vadd.f32 %v5350_v60, %v2009_v13  ;;  %v3359_v21 = vsel %vm3347_vm6, %v3226_v9, %v3358_v31 }
 0x3f6   : > { %v3239_v34 = vmax.f32 %v5311_v40, %v5416_v43  ;;  %v2517_v39 = vmax.f32 %v2515_v23, %v2516_v4  ;;  %v2537_v22 = vrot.slane %v2536_v26, 4  ;;  %v5429_v47 = vmax.f32 %v2736_v6, %v2737_v3 }
 0x3f7   : > { %v2524_v1 = vmax.f32 %v2522_v46, %v2523_v30  ;;  %v2531_v63 = vmax.f32 %v2529_v16, %v2530_v18  ;;  %v2077_v48 = vmax.f32 %v2045_v24, 0.0  ;;  %v3240_v2 = vmax.f32 %v5320_v44, %v2724_v41 }
 0x3f8   : > { %v3241_v42 = vmax.f32 %v5327_v53, %v5422_v35  ;;  %v2518_v7 = vrot.slane %v2517_v39, 2  ;;  %v2538_v37 = vmax.f32 %v2536_v26, %v2537_v22 }
 0x3f9   : > { %v2525_v60 = vrot.slane %v2524_v1, 2  ;;  %v2532_v55 = vrot.slane %v2531_v63, 2  ;;  %v2171_v54 = vrot.slane %v2077_v48, 2  ;;  %v2172_v27 = vrot.slane %v2077_v48, 4 }
 0x3fa   : > { %v2519_v57 = vmax.f32 %v2517_v39, %v2518_v7  ;;  %v2539_v40 = vrot.slane %v2538_v37, 2  ;;  %v2173_v25 = vrot.slane %v2077_v48, 6  ;;  %v2739_v36 = vsel %vm2318_vm3, %v2077_v48, -inf }
 0x3fb   : > { %v2526_v61 = vmax.f32 %v2524_v1, %v2525_v60  ;;  %v2533_v52 = vmax.f32 %v2531_v63, %v2532_v55  ;;  %v2740_v17 = vrot.slane %v2739_v36, 4  ;;  %v2746_v12 = vsel %vm2318_vm3, %v2171_v54, -inf }
 0x3fc   : > { %v2520_v44 = vrot.slane %v2519_v57, 1  ;;  %v2540_v62 = vmax.f32 %v2538_v37, %v2539_v40  ;;  %v2747_v15 = vrot.slane %v2746_v12, 4  ;;  %v2753_v53 = vsel %vm2318_vm3, %v2172_v27, -inf }
 0x3fd   : > { %v2527_v8 = vrot.slane %v2526_v61, 1  ;;  %v2534_v45 = vrot.slane %v2533_v52, 1  ;;  %v2741_v38 = vmax.f32 %v2739_v36, %v2740_v17  ;;  %v2754_v56 = vrot.slane %v2753_v53, 4 }
 0x3fe   : > { %v2521_v0 = vmax.f32 %v2519_v57, %v2520_v44  ;;  %v2541_v5 = vrot.slane %v2540_v62, 1  ;;  %v2748_v6 = vmax.f32 %v2746_v12, %v2747_v15  ;;  %v2760_v49 = vsel %vm2318_vm3, %v2173_v25, -inf }
 0x3ff   : > { %v2528_v59 = vmax.f32 %v2526_v61, %v2527_v8  ;;  %v2535_v13 = vmax.f32 %v2533_v52, %v2534_v45  ;;  %v2742_v31 = vrot.slane %v2741_v38, 2  ;;  %v2755_v43 = vmax.f32 %v2753_v53, %v2754_v56 }
 0x400   : > { %v2542_v10 = vmax.f32 %v2540_v62, %v2541_v5  ;;  %v3227_v3 = vmax.f32 %v5331_v32, %v2521_v0  ;;  %v2749_v23 = vrot.slane %v2748_v6, 2  ;;  %v2761_v46 = vrot.slane %v2760_v49, 4 }
 0x401   : > { %v3228_v16 = vmax.f32 %v5333_v58, %v2528_v59  ;;  %v3229_v9 = vmax.f32 %v5341_v29, %v2535_v13  ;;  %v2743_v41 = vmax.f32 %v2741_v38, %v2742_v31  ;;  %v2756_v35 = vrot.slane %v2755_v43, 2 }
 0x402   : > { %v3371_v4 = vsel %vm3343_vm4, %v3240_v2, %v3239_v34  ;;  %v3360_v30 = vsel %vm3349_vm7, %v3227_v3, %v3359_v21  ;;  %v2750_v18 = vmax.f32 %v2748_v6, %v2749_v23  ;;  %v2762_v26 = vmax.f32 %v2760_v49, %v2761_v46 }
 0x403   : > { %v3230_v24 = vmax.f32 %v5353_v11, %v2542_v10  ;;  %v3361_v39 = vsel %vm3351_vm8, %v3228_v16, %v3360_v30  ;;  %v2744_v32 = vrot.slane %v2743_v41, 1  ;;  %v2757_v22 = vmax.f32 %v2755_v43, %v2756_v35 }
 0x404   : > { %v2696_v58 = vmax.f32 %v5337_v20, %v2695_v19  ;;  %v3362_v29 = vsel %vm3353_vm9, %v3229_v9, %v3361_v39  ;;  %v2751_v1 = vrot.slane %v2750_v18, 1  ;;  %v2763_v34 = vrot.slane %v2762_v26, 2 }
 0x405   : > { %v3372_v21 = vsel %vm3345_vm5, %v3241_v42, %v3371_v4  ;;  %v3363_v63 = vsel %vm3355_vm10, %v3230_v24, %v3362_v29  ;;  %v2745_v48 = vmax.f32 %v2743_v41, %v2744_v32  ;;  %v2758_v11 = vrot.slane %v2757_v22, 1 }
 0x406   : > { %v2709_v2 = vrot.slane %v5405_v50, 1  ;;  %v3242_v7 = vmax.f32 %v5329_v33, %v5429_v47  ;;  %3415 = vst [vmem:[%s5055_s11 + $0x8] sm:$0xff] %v3363_v63  ;;  %v2752_v37 = vmax.f32 %v2750_v18, %v2751_v1  ;;  %v2764_v60 = vmax.f32 %v2762_v26, %v2763_v34 }
 0x407   : > { %v2703_v20 = vmax.f32 %v5396_v28, %v2702_v51  ;;  %v2759_v19 = vmax.f32 %v2757_v22, %v2758_v11  ;;  %v3243_v42 = vmax.f32 %v5411_v14, %v2745_v48 }
 0x408   : > { %v3373_v55 = vsel %vm3347_vm6, %v3242_v7, %v3372_v21  ;;  %v2765_v54 = vrot.slane %v2764_v60, 1  ;;  %v3244_v33 = vmax.f32 %v2696_v58, %v2752_v37  ;;  %v2710_v57 = vmax.f32 %v5405_v50, %v2709_v2 }
 0x409   : > { %v3245_v47 = vmax.f32 %v2703_v20, %v2759_v19  ;;  %v3374_v27 = vsel %vm3349_vm7, %v3243_v42, %v3373_v55 }
 0x40a   : > { %v2766_v40 = vmax.f32 %v2764_v60, %v2765_v54  ;;  %v3375_v28 = vsel %vm3351_vm8, %v3244_v33, %v3374_v27 }
 0x40b   : > { %v3376_v51 = vsel %vm3353_vm9, %v3245_v47, %v3375_v28 }
 0x40c   : > { %v3246_v14 = vmax.f32 %v2710_v57, %v2766_v40 }
 0x40e   : > { %v3377_v25 = vsel %vm3355_vm10, %v3246_v14, %v3376_v51 }
 0x40f   : > { %3417 = vst [vmem:[%s5055_s11 + $0x18] sm:$0xff] %v3377_v25 }
 0x410   : > { %3720 = shalt.err (!%p3717_p3)
}
 0x411   : > { %s3767_s7 = smov 128   ;;  %s3768_s11 = smov 8  }
 0x412   : > { %3636 = dma.vmem_to_hbm [thread:$0]  (%p3832_p5), %s3436_s30, 1024, %s3438_s5, %s3423_s6, %s3767_s7, %s3767_s7, %s3768_s11  }
 0x413 PF: > { %p3642_p4 = scmp.ge.s32.totalorder %s3755_s18, 2  ;;  %s3452_s22 = sand.u32 1, %s3743_s15  }
 0x414   : > { %s3453_s23 = scalar_lea.sflag [#allocation4], %s3452_s22 }
 0x415   : > { %p3639_p7 = pnand %p3642_p4, %p3836_p6 }
 0x417   : > { %p3640_p8 = pneg %p3639_p7 }
 0x419   : > { %3738 = dma.done.wait (%p3640_p8), %s3453_s23, 1024  }
 0x41a   : > { %3740 = vsyncadd (%p3640_p8), %s3453_s23, 4294966272  ;;  %p14_p9 = scmp.ge.s32.totalorder %s3819_s21, 4   ;;  %s5512_s15 = smov %s3747_s16 }
 0x41b   : > { %s5513_s16 = smov %s3751_s17  ;;  %s5514_s17 = smov %s3830_s24 }
 0x41c   : > { %s5515_s18 = smov %s3819_s21  ;;  %16 = sbr.rel (!%p14_p9) target bundleno = 3 (0x3), region = 73 }
 0x421   :  { %3459 = vsyncpa [#allocation4], 1 }
 0x422   :  { %3461 = vsyncpa [#allocation4 + $0x1], 1 }

</bundles_post_ra>
